<compile_context>
chip_gen: v7x
topology: tpu7x:2x2x1
jax: 0.10.0
libtpu: 0.0.40
codegen_flags: <defaults>
</compile_context>

<pallas_src>
import math

import jax
import jax.numpy as jnp
from jax.experimental import pallas as pl
from jax.experimental.pallas import tpu as pltpu


# ------------------------------ fused kernel ---------------------------------
def make_lstm2_kernel(num_layers, T, Bb, H):
    """Bb = batch rows handled by this program, H = hidden size (4H lanes per gate row)."""
    G = 4 * H

    def kernel(*refs):
        x_ref = refs[0]                                           # (Bb, T, I)
        lstm_refs = refs[1:1 + 3 * num_layers]
        (w1_ref, b1_ref, s1_ref, t1_ref,
         w2_ref, b2_ref, s2_ref, t2_ref,
         w3_ref, b3_ref, out_ref) = refs[1 + 3 * num_layers:]

        # Per-lane post-tanh affine: sigmoid(x) = 0.5*tanh(0.5x)+0.5 for i/f/o lanes,
        # tanh(x) for g lanes.  (The 0.5 pre-scale is already folded into the weights.)
        lane = jax.lax.broadcasted_iota(jnp.int32, (1, G), 1)
        is_g = (lane >= 2 * H) & (lane < 3 * H)
        post_scale = jnp.where(is_g, 1.0, 0.5).astype(jnp.float32)
        post_shift = jnp.where(is_g, 0.0, 0.5).astype(jnp.float32)

        # Hoist all weight loads (loop-invariant, VMEM resident).
        w_ih = [lstm_refs[3 * l][...] for l in range(num_layers)]  # (in_dim, 4H)
        w_hh = [lstm_refs[3 * l + 1][...] for l in range(num_layers)]  # (H, 4H)
        bias = [lstm_refs[3 * l + 2][...] for l in range(num_layers)]  # (1, 4H)

        x = x_ref[...]                                            # (Bb, T, I)
        in_dim = x.shape[-1]
        # Hoisted layer-0 input projection: ONE MXU pass over all T steps (free views).
        gx0 = jnp.dot(x.reshape(Bb * T, in_dim), w_ih[0],
                      preferred_element_type=jnp.float32) + bias[0]  # (Bb*T, 4H)
        gx0 = gx0.reshape(Bb, T, G)

        h = [jnp.zeros((Bb, H), jnp.float32) for _ in range(num_layers)]
        c = [jnp.zeros((Bb, H), jnp.float32) for _ in range(num_layers)]

        # Wavefront over (t, layer): h[l] at step t only needs h[l-1] at step t and
        # h[l]/c[l] at step t-1, so the critical path is T + L - 1 cell updates.
        # T=8, L=4 stays fully unrolled; switch to lax.fori_loop(..., unroll=k) over a
        # VMEM scratch buffer if T grows large.
        for t in range(T):
            for l in range(num_layers):
                if l == 0:
                    gin = gx0[:, t, :]                            # (Bb, 4H)
                else:
                    # off the critical path relative to the h@W_hh chain
                    gin = jnp.dot(h[l - 1], w_ih[l],
                                  preferred_element_type=jnp.float32) + bias[l]
                gates = gin + jnp.dot(h[l], w_hh[l],
                                      preferred_element_type=jnp.float32)  # (Bb, 4H)
                # single EUP push for all four gates
                act = jnp.tanh(gates) * post_scale + post_shift
                i_g = act[:, 0 * H:1 * H]
                f_g = act[:, 1 * H:2 * H]
                g_g = act[:, 2 * H:3 * H]
                o_g = act[:, 3 * H:4 * H]
                c[l] = f_g * c[l] + i_g * g_g
                h[l] = o_g * jnp.tanh(c[l])
                # TODO(synk): inter-layer LSTM dropout (p=0.2) is identity (inference).

        # MLP head on hn[-1]: fc1 -> bn1(eval) -> relu -> fc2 -> bn2(eval) -> relu -> fc3.
        # TODO(synk): dp1 (p=0.25) and dp2 (p=0.2) are identity (inference mode).
        h1 = jnp.dot(h[-1], w1_ref[...], preferred_element_type=jnp.float32) + b1_ref[...]
        h1 = jnp.maximum(h1 * s1_ref[...] + t1_ref[...], 0.0)
        h2 = jnp.dot(h1, w2_ref[...], preferred_element_type=jnp.float32) + b2_ref[...]
        h2 = jnp.maximum(h2 * s2_ref[...] + t2_ref[...], 0.0)
        # fc3 (128 -> 1) as a lane reduction (avoids an N=1 MXU pass on the epilogue).
        out_ref[...] = (jnp.sum(h2 * w3_ref[...], axis=-1, keepdims=True) + b3_ref[...])

    return kernel


def lstm2_forward(x, params, *, num_batch_blocks=1):
    """x: (B, T, input_size) float32 -> (B, 1). Single fused pallas_call.

    num_batch_blocks=1 on v5e/v6e (single TensorCore).  On v7x set it to 2 so the
    "parallel" grid axis shards the independent batch recurrences across both TCs.
    VMEM footprint is ~0.3 MiB of weights + tiny activations, far under the 64 MiB
    (v7x) / 128 MiB (v5e/v6e) budgets, so no vmem_limit override is needed.
    """
    B, T, in_dim = x.shape
    assert B % num_batch_blocks == 0
    nb = num_batch_blocks
    Bb = B // nb
    num_layers = len(params["lstm"])
    H = params["lstm"][0]["w_hh_t"].shape[0]

    # Cheapest throughput lever: raise B per call (independent rows ride the same
    # vregs/MXU passes); the serial-chain latency is essentially flat in B here.
    x_blocked = x.astype(jnp.float32).reshape(nb, Bb, T, in_dim)

    flat = [x_blocked]
    in_specs = [pl.BlockSpec((None, Bb, T, in_dim), lambda i: (i, 0, 0, 0))]

    def full_block(arr):
        nd = arr.ndim
        return pl.BlockSpec(arr.shape, lambda i, _nd=nd: (0,) * _nd)

    for lp in params["lstm"]:
        for name in ("w_ih_t", "w_hh_t", "b"):
            a = lp[name]
            flat.append(a)
            in_specs.append(full_block(a))
    hp = params["head"]
    for name in ("w1", "b1", "s1", "t1", "w2", "b2", "s2", "t2", "w3_row", "b3"):
        a = hp[name]
        flat.append(a)
        in_specs.append(full_block(a))

    out = pl.pallas_call(
        make_lstm2_kernel(num_layers, T, Bb, H),
        grid=(nb,),
        in_specs=in_specs,
        out_specs=pl.BlockSpec((None, Bb, 1), lambda i: (i, 0, 0)),
        out_shape=jax.ShapeDtypeStruct((nb, Bb, 1), jnp.float32),
        compiler_params=pltpu.CompilerParams(dimension_semantics=("parallel",)),
    )(*flat)
    return out.reshape(B, 1)


# ------------------------------ parameter setup -------------------------------
def _uniform(key, shape, bound):
    return jax.random.uniform(key, shape, jnp.float32, minval=-bound, maxval=bound)


def init_raw_params(key, input_size, hidden_size, num_layers):
    """PyTorch-layout parameters (what nn.LSTM / nn.Linear would hold)."""
    H = hidden_size
    k_lstm = 1.0 / math.sqrt(H)
    lstm = []
    for layer in range(num_layers):
        in_dim = input_size if layer == 0 else H
        key, k1, k2, k3, k4 = jax.random.split(key, 5)
        lstm.append(dict(
            w_ih=_uniform(k1, (4 * H, in_dim), k_lstm),   # gates [i; f; g; o]
            w_hh=_uniform(k2, (4 * H, H), k_lstm),
            b_ih=_uniform(k3, (4 * H,), k_lstm),
            b_hh=_uniform(k4, (4 * H,), k_lstm)))

    def linear(key, fan_in, fan_out):
        k = 1.0 / math.sqrt(fan_in)
        key, kw, kb = jax.random.split(key, 3)
        return key, _uniform(kw, (fan_out, fan_in), k), _uniform(kb, (fan_out,), k)

    key, w1, b1 = linear(key, H, 256)
    key, w2, b2 = linear(key, 256, 128)
    key, w3, b3 = linear(key, 128, 1)
    return {"lstm": lstm, "head": dict(w1=w1, b1=b1, w2=w2, b2=b2, w3=w3, b3=b3)}


def pack_params(raw, eps=1e-5):
    """Kernel layout: transposed weights, packed 4H gate columns, and the 0.5 pre-scale
    of the i/f/o gate columns folded in (so one tanh covers all four gates)."""
    H = raw["lstm"][0]["w_hh"].shape[1]
    col_scale = jnp.concatenate([
        jnp.full((H,), 0.5), jnp.full((H,), 0.5),      # i, f
        jnp.ones((H,)), jnp.full((H,), 0.5)]).astype(jnp.float32)  # g, o

    lstm = []
    for lp in raw["lstm"]:
        lstm.append(dict(
            w_ih_t=jnp.transpose(lp["w_ih"]) * col_scale,            # (in_dim, 4H)
            w_hh_t=jnp.transpose(lp["w_hh"]) * col_scale,            # (H, 4H)
            b=((lp["b_ih"] + lp["b_hh"]) * col_scale).reshape(1, -1)))  # (1, 4H)

    hd = raw["head"]
    bn_s = 1.0 / math.sqrt(1.0 + eps)   # eval-mode BN, fresh running stats
    head = dict(
        w1=jnp.transpose(hd["w1"]), b1=hd["b1"].reshape(1, -1),
        s1=jnp.full((1, 256), bn_s, jnp.float32), t1=jnp.zeros((1, 256), jnp.float32),
        w2=jnp.transpose(hd["w2"]), b2=hd["b2"].reshape(1, -1),
        s2=jnp.full((1, 128), bn_s, jnp.float32), t2=jnp.zeros((1, 128), jnp.float32),
        w3_row=hd["w3"].reshape(1, -1),                               # (1, 128)
        b3=hd["b3"].reshape(1, 1))
    return {"lstm": lstm, "head": head}


# ------------------------------ pure-JAX reference ----------------------------
def lstm2_reference(x, raw, eps=1e-5):
    B, T, _ = x.shape
    H = raw["lstm"][0]["w_hh"].shape[1]
    inp = x
    h_last = None
    for lp in raw["lstm"]:
        w_ih, w_hh = lp["w_ih"], lp["w_hh"]
        b = lp["b_ih"] + lp["b_hh"]
        h = jnp.zeros((B, H), jnp.float32)
        c = jnp.zeros((B, H), jnp.float32)
        hs = []
        for t in range(T):
            g = inp[:, t, :] @ w_ih.T + h @ w_hh.T + b
            i_g = jax.nn.sigmoid(g[:, 0 * H:1 * H])
            f_g = jax.nn.sigmoid(g[:, 1 * H:2 * H])
            g_g = jnp.tanh(g[:, 2 * H:3 * H])
            o_g = jax.nn.sigmoid(g[:, 3 * H:4 * H])
            c = f_g * c + i_g * g_g
            h = o_g * jnp.tanh(c)
            hs.append(h)
        inp = jnp.stack(hs, axis=1)
        h_last = h
    hd = raw["head"]
    z = jnp.maximum((h_last @ hd["w1"].T + hd["b1"]) / math.sqrt(1.0 + eps), 0.0)
    z = jnp.maximum((z @ hd["w2"].T + hd["b2"]) / math.sqrt(1.0 + eps), 0.0)
    return z @ hd["w3"].T + hd["b3"]


# ----------------------------------- main -------------------------------------
if __name__ == "__main__":
    B, T = 2, 8
    input_size = 18
    hidden_size = 32
    num_layers = 4

    key = jax.random.PRNGKey(0)
    key, kx, kp = jax.random.split(key, 3)
    x = jax.random.normal(kx, (B, T, input_size), jnp.float32)

    raw = init_raw_params(kp, input_size, hidden_size, num_layers)
    params = pack_params(raw)

    out = jax.jit(lstm2_forward)(x, params)
    jax.block_until_ready(out)
    assert out.shape == (B, 1), out.shape

    with jax.default_matmul_precision("highest"):
        ref = lstm2_reference(x, raw)
    err = float(jnp.max(jnp.abs(out - ref)))
    assert err < 2e-2, f"kernel mismatch vs reference: max abs err = {err}"

    print("KERNEL_OK")
</pallas_src>

<mosaic_0001>
module attributes {stable_mosaic.version = 11 : i64} {
  func.func @kernel(%arg0: i32, %arg1: memref<1x2x8x18xf32, #tpu.memory_space<vmem>>, %arg2: memref<18x128xf32, #tpu.memory_space<vmem>>, %arg3: memref<32x128xf32, #tpu.memory_space<vmem>>, %arg4: memref<1x128xf32, #tpu.memory_space<vmem>>, %arg5: memref<32x128xf32, #tpu.memory_space<vmem>>, %arg6: memref<32x128xf32, #tpu.memory_space<vmem>>, %arg7: memref<1x128xf32, #tpu.memory_space<vmem>>, %arg8: memref<32x128xf32, #tpu.memory_space<vmem>>, %arg9: memref<32x128xf32, #tpu.memory_space<vmem>>, %arg10: memref<1x128xf32, #tpu.memory_space<vmem>>, %arg11: memref<32x128xf32, #tpu.memory_space<vmem>>, %arg12: memref<32x128xf32, #tpu.memory_space<vmem>>, %arg13: memref<1x128xf32, #tpu.memory_space<vmem>>, %arg14: memref<32x256xf32, #tpu.memory_space<vmem>>, %arg15: memref<1x256xf32, #tpu.memory_space<vmem>>, %arg16: memref<1x256xf32, #tpu.memory_space<vmem>>, %arg17: memref<1x256xf32, #tpu.memory_space<vmem>>, %arg18: memref<256x128xf32, #tpu.memory_space<vmem>>, %arg19: memref<1x128xf32, #tpu.memory_space<vmem>>, %arg20: memref<1x128xf32, #tpu.memory_space<vmem>>, %arg21: memref<1x128xf32, #tpu.memory_space<vmem>>, %arg22: memref<1x128xf32, #tpu.memory_space<vmem>>, %arg23: memref<1x1xf32, #tpu.memory_space<vmem>>, %arg24: memref<1x2x1xf32, #tpu.memory_space<vmem>>) attributes {dimension_semantics = [#tpu.dimension_semantics<parallel>], iteration_bounds = array<i64: 1>, scalar_prefetch = 0 : i64, scratch_operands = 0 : i64, tpu.core_type = #tpu.core_type<tc>, window_params = [{transform_indices = @transform_0, window_bounds = array<i64: 1, 2, 8, 18>}, {pipeline_mode = #tpu.pipeline_mode<synchronous>, transform_indices = @transform_1, window_bounds = array<i64: 18, 128>}, {pipeline_mode = #tpu.pipeline_mode<synchronous>, transform_indices = @transform_2, window_bounds = array<i64: 32, 128>}, {pipeline_mode = #tpu.pipeline_mode<synchronous>, transform_indices = @transform_3, window_bounds = array<i64: 1, 128>}, {pipeline_mode = #tpu.pipeline_mode<synchronous>, transform_indices = @transform_4, window_bounds = array<i64: 32, 128>}, {pipeline_mode = #tpu.pipeline_mode<synchronous>, transform_indices = @transform_5, window_bounds = array<i64: 32, 128>}, {pipeline_mode = #tpu.pipeline_mode<synchronous>, transform_indices = @transform_6, window_bounds = array<i64: 1, 128>}, {pipeline_mode = #tpu.pipeline_mode<synchronous>, transform_indices = @transform_7, window_bounds = array<i64: 32, 128>}, {pipeline_mode = #tpu.pipeline_mode<synchronous>, transform_indices = @transform_8, window_bounds = array<i64: 32, 128>}, {pipeline_mode = #tpu.pipeline_mode<synchronous>, transform_indices = @transform_9, window_bounds = array<i64: 1, 128>}, {pipeline_mode = #tpu.pipeline_mode<synchronous>, transform_indices = @transform_10, window_bounds = array<i64: 32, 128>}, {pipeline_mode = #tpu.pipeline_mode<synchronous>, transform_indices = @transform_11, window_bounds = array<i64: 32, 128>}, {pipeline_mode = #tpu.pipeline_mode<synchronous>, transform_indices = @transform_12, window_bounds = array<i64: 1, 128>}, {pipeline_mode = #tpu.pipeline_mode<synchronous>, transform_indices = @transform_13, window_bounds = array<i64: 32, 256>}, {pipeline_mode = #tpu.pipeline_mode<synchronous>, transform_indices = @transform_14, window_bounds = array<i64: 1, 256>}, {pipeline_mode = #tpu.pipeline_mode<synchronous>, transform_indices = @transform_15, window_bounds = array<i64: 1, 256>}, {pipeline_mode = #tpu.pipeline_mode<synchronous>, transform_indices = @transform_16, window_bounds = array<i64: 1, 256>}, {pipeline_mode = #tpu.pipeline_mode<synchronous>, transform_indices = @transform_17, window_bounds = array<i64: 256, 128>}, {pipeline_mode = #tpu.pipeline_mode<synchronous>, transform_indices = @transform_18, window_bounds = array<i64: 1, 128>}, {pipeline_mode = #tpu.pipeline_mode<synchronous>, transform_indices = @transform_19, window_bounds = array<i64: 1, 128>}, {pipeline_mode = #tpu.pipeline_mode<synchronous>, transform_indices = @transform_20, window_bounds = array<i64: 1, 128>}, {pipeline_mode = #tpu.pipeline_mode<synchronous>, transform_indices = @transform_21, window_bounds = array<i64: 1, 128>}, {pipeline_mode = #tpu.pipeline_mode<synchronous>, transform_indices = @transform_22, window_bounds = array<i64: 1, 1>}, {transform_indices = @transform_23, window_bounds = array<i64: 1, 2, 1>}]} {
    %0 = tpu.iota {dimensions = array<i32: 1>} : vector<1x128xi32>
    %c64_i32 = arith.constant 64 : i32
    %1 = vector.broadcast %c64_i32 : i32 to vector<1x128xi32>
    %2 = arith.cmpi sge, %0, %1 : vector<1x128xi32>
    %c96_i32 = arith.constant 96 : i32
    %3 = vector.broadcast %c96_i32 : i32 to vector<1x128xi32>
    %4 = arith.cmpi slt, %0, %3 : vector<1x128xi32>
    %5 = arith.andi %2, %4 : vector<1x128xi1>
    %cst = arith.constant 1.000000e+00 : f32
    %cst_0 = arith.constant 5.000000e-01 : f32
    %6 = vector.broadcast %cst : f32 to vector<1x128xf32>
    %7 = vector.broadcast %cst_0 : f32 to vector<1x128xf32>
    %8 = arith.select %5, %6, %7 : vector<1x128xi1>, vector<1x128xf32>
    %cst_1 = arith.constant 0.000000e+00 : f32
    %cst_2 = arith.constant 5.000000e-01 : f32
    %9 = vector.broadcast %cst_1 : f32 to vector<1x128xf32>
    %10 = vector.broadcast %cst_2 : f32 to vector<1x128xf32>
    %11 = arith.select %5, %9, %10 : vector<1x128xi1>, vector<1x128xf32>
    %c0 = arith.constant 0 : index
    %c0_3 = arith.constant 0 : index
    %12 = vector.load %arg2[%c0, %c0_3] : memref<18x128xf32, #tpu.memory_space<vmem>>, vector<18x128xf32>
    %c0_4 = arith.constant 0 : index
    %c0_5 = arith.constant 0 : index
    %13 = vector.load %arg5[%c0_4, %c0_5] : memref<32x128xf32, #tpu.memory_space<vmem>>, vector<32x128xf32>
    %c0_6 = arith.constant 0 : index
    %c0_7 = arith.constant 0 : index
    %14 = vector.load %arg8[%c0_6, %c0_7] : memref<32x128xf32, #tpu.memory_space<vmem>>, vector<32x128xf32>
    %c0_8 = arith.constant 0 : index
    %c0_9 = arith.constant 0 : index
    %15 = vector.load %arg11[%c0_8, %c0_9] : memref<32x128xf32, #tpu.memory_space<vmem>>, vector<32x128xf32>
    %c0_10 = arith.constant 0 : index
    %c0_11 = arith.constant 0 : index
    %16 = vector.load %arg3[%c0_10, %c0_11] : memref<32x128xf32, #tpu.memory_space<vmem>>, vector<32x128xf32>
    %c0_12 = arith.constant 0 : index
    %c0_13 = arith.constant 0 : index
    %17 = vector.load %arg6[%c0_12, %c0_13] : memref<32x128xf32, #tpu.memory_space<vmem>>, vector<32x128xf32>
    %c0_14 = arith.constant 0 : index
    %c0_15 = arith.constant 0 : index
    %18 = vector.load %arg9[%c0_14, %c0_15] : memref<32x128xf32, #tpu.memory_space<vmem>>, vector<32x128xf32>
    %c0_16 = arith.constant 0 : index
    %c0_17 = arith.constant 0 : index
    %19 = vector.load %arg12[%c0_16, %c0_17] : memref<32x128xf32, #tpu.memory_space<vmem>>, vector<32x128xf32>
    %c0_18 = arith.constant 0 : index
    %c0_19 = arith.constant 0 : index
    %20 = vector.load %arg4[%c0_18, %c0_19] : memref<1x128xf32, #tpu.memory_space<vmem>>, vector<1x128xf32>
    %c0_20 = arith.constant 0 : index
    %c0_21 = arith.constant 0 : index
    %21 = vector.load %arg7[%c0_20, %c0_21] : memref<1x128xf32, #tpu.memory_space<vmem>>, vector<1x128xf32>
    %c0_22 = arith.constant 0 : index
    %c0_23 = arith.constant 0 : index
    %22 = vector.load %arg10[%c0_22, %c0_23] : memref<1x128xf32, #tpu.memory_space<vmem>>, vector<1x128xf32>
    %c0_24 = arith.constant 0 : index
    %c0_25 = arith.constant 0 : index
    %23 = vector.load %arg13[%c0_24, %c0_25] : memref<1x128xf32, #tpu.memory_space<vmem>>, vector<1x128xf32>
    %c0_26 = arith.constant 0 : index
    %c0_27 = arith.constant 0 : index
    %c0_28 = arith.constant 0 : index
    %c0_29 = arith.constant 0 : index
    %24 = vector.load %arg1[%c0_26, %c0_27, %c0_28, %c0_29] : memref<1x2x8x18xf32, #tpu.memory_space<vmem>>, vector<1x2x8x18xf32>
    %25 = vector.shape_cast %24 : vector<1x2x8x18xf32> to vector<2x8x18xf32>
    %26 = vector.shape_cast %25 : vector<2x8x18xf32> to vector<16x18xf32>
    %cst_30 = arith.constant dense<0.000000e+00> : vector<16x128xf32>
    %27 = tpu.matmul %26, %12, %cst_30 {dimension_numbers = #tpu.dot_dimension_numbers<[1], [0], [0], [1], [0, 0, 1, 1], [], []>} : vector<16x18xf32>, vector<18x128xf32>, vector<16x128xf32> -> vector<16x128xf32>
    %28 = vector.broadcast %20 : vector<1x128xf32> to vector<16x128xf32>
    %29 = arith.addf %27, %28 : vector<16x128xf32>
    %30 = vector.shape_cast %29 : vector<16x128xf32> to vector<2x8x128xf32>
    %cst_31 = arith.constant 0.000000e+00 : f32
    %31 = vector.broadcast %cst_31 : f32 to vector<2x32xf32>
    %cst_32 = arith.constant 0.000000e+00 : f32
    %32 = vector.broadcast %cst_32 : f32 to vector<2x32xf32>
    %cst_33 = arith.constant 0.000000e+00 : f32
    %33 = vector.broadcast %cst_33 : f32 to vector<2x32xf32>
    %cst_34 = arith.constant 0.000000e+00 : f32
    %34 = vector.broadcast %cst_34 : f32 to vector<2x32xf32>
    %cst_35 = arith.constant 0.000000e+00 : f32
    %35 = vector.broadcast %cst_35 : f32 to vector<2x32xf32>
    %cst_36 = arith.constant 0.000000e+00 : f32
    %36 = vector.broadcast %cst_36 : f32 to vector<2x32xf32>
    %cst_37 = arith.constant 0.000000e+00 : f32
    %37 = vector.broadcast %cst_37 : f32 to vector<2x32xf32>
    %cst_38 = arith.constant 0.000000e+00 : f32
    %38 = vector.broadcast %cst_38 : f32 to vector<2x32xf32>
    %39 = vector.extract_strided_slice %30 {offsets = [0, 0, 0], sizes = [2, 1, 128], strides = [1, 1, 1]} : vector<2x8x128xf32> to vector<2x1x128xf32>
    %40 = vector.shape_cast %39 : vector<2x1x128xf32> to vector<2x128xf32>
    %cst_39 = arith.constant dense<0.000000e+00> : vector<2x128xf32>
    %41 = tpu.matmul %31, %16, %cst_39 {dimension_numbers = #tpu.dot_dimension_numbers<[1], [0], [0], [1], [0, 0, 1, 1], [], []>} : vector<2x32xf32>, vector<32x128xf32>, vector<2x128xf32> -> vector<2x128xf32>
    %42 = arith.addf %40, %41 : vector<2x128xf32>
    %43 = math.tanh %42 : vector<2x128xf32>
    %44 = vector.broadcast %8 : vector<1x128xf32> to vector<2x128xf32>
    %45 = arith.mulf %43, %44 : vector<2x128xf32>
    %46 = vector.broadcast %11 : vector<1x128xf32> to vector<2x128xf32>
    %47 = arith.addf %45, %46 : vector<2x128xf32>
    %48 = vector.extract_strided_slice %47 {offsets = [0, 0], sizes = [2, 32], strides = [1, 1]} : vector<2x128xf32> to vector<2x32xf32>
    %49 = vector.extract_strided_slice %47 {offsets = [0, 32], sizes = [2, 32], strides = [1, 1]} : vector<2x128xf32> to vector<2x32xf32>
    %50 = vector.extract_strided_slice %47 {offsets = [0, 64], sizes = [2, 32], strides = [1, 1]} : vector<2x128xf32> to vector<2x32xf32>
    %51 = vector.extract_strided_slice %47 {offsets = [0, 96], sizes = [2, 32], strides = [1, 1]} : vector<2x128xf32> to vector<2x32xf32>
    %52 = arith.mulf %49, %35 : vector<2x32xf32>
    %53 = arith.mulf %48, %50 : vector<2x32xf32>
    %54 = arith.addf %52, %53 : vector<2x32xf32>
    %55 = math.tanh %54 : vector<2x32xf32>
    %56 = arith.mulf %51, %55 : vector<2x32xf32>
    %cst_40 = arith.constant dense<0.000000e+00> : vector<2x128xf32>
    %57 = tpu.matmul %56, %13, %cst_40 {dimension_numbers = #tpu.dot_dimension_numbers<[1], [0], [0], [1], [0, 0, 1, 1], [], []>} : vector<2x32xf32>, vector<32x128xf32>, vector<2x128xf32> -> vector<2x128xf32>
    %58 = vector.broadcast %21 : vector<1x128xf32> to vector<2x128xf32>
    %59 = arith.addf %57, %58 : vector<2x128xf32>
    %cst_41 = arith.constant dense<0.000000e+00> : vector<2x128xf32>
    %60 = tpu.matmul %32, %17, %cst_41 {dimension_numbers = #tpu.dot_dimension_numbers<[1], [0], [0], [1], [0, 0, 1, 1], [], []>} : vector<2x32xf32>, vector<32x128xf32>, vector<2x128xf32> -> vector<2x128xf32>
    %61 = arith.addf %59, %60 : vector<2x128xf32>
    %62 = math.tanh %61 : vector<2x128xf32>
    %63 = vector.broadcast %8 : vector<1x128xf32> to vector<2x128xf32>
    %64 = arith.mulf %62, %63 : vector<2x128xf32>
    %65 = vector.broadcast %11 : vector<1x128xf32> to vector<2x128xf32>
    %66 = arith.addf %64, %65 : vector<2x128xf32>
    %67 = vector.extract_strided_slice %66 {offsets = [0, 0], sizes = [2, 32], strides = [1, 1]} : vector<2x128xf32> to vector<2x32xf32>
    %68 = vector.extract_strided_slice %66 {offsets = [0, 32], sizes = [2, 32], strides = [1, 1]} : vector<2x128xf32> to vector<2x32xf32>
    %69 = vector.extract_strided_slice %66 {offsets = [0, 64], sizes = [2, 32], strides = [1, 1]} : vector<2x128xf32> to vector<2x32xf32>
    %70 = vector.extract_strided_slice %66 {offsets = [0, 96], sizes = [2, 32], strides = [1, 1]} : vector<2x128xf32> to vector<2x32xf32>
    %71 = arith.mulf %68, %36 : vector<2x32xf32>
    %72 = arith.mulf %67, %69 : vector<2x32xf32>
    %73 = arith.addf %71, %72 : vector<2x32xf32>
    %74 = math.tanh %73 : vector<2x32xf32>
    %75 = arith.mulf %70, %74 : vector<2x32xf32>
    %cst_42 = arith.constant dense<0.000000e+00> : vector<2x128xf32>
    %76 = tpu.matmul %75, %14, %cst_42 {dimension_numbers = #tpu.dot_dimension_numbers<[1], [0], [0], [1], [0, 0, 1, 1], [], []>} : vector<2x32xf32>, vector<32x128xf32>, vector<2x128xf32> -> vector<2x128xf32>
    %77 = vector.broadcast %22 : vector<1x128xf32> to vector<2x128xf32>
    %78 = arith.addf %76, %77 : vector<2x128xf32>
    %cst_43 = arith.constant dense<0.000000e+00> : vector<2x128xf32>
    %79 = tpu.matmul %33, %18, %cst_43 {dimension_numbers = #tpu.dot_dimension_numbers<[1], [0], [0], [1], [0, 0, 1, 1], [], []>} : vector<2x32xf32>, vector<32x128xf32>, vector<2x128xf32> -> vector<2x128xf32>
    %80 = arith.addf %78, %79 : vector<2x128xf32>
    %81 = math.tanh %80 : vector<2x128xf32>
    %82 = vector.broadcast %8 : vector<1x128xf32> to vector<2x128xf32>
    %83 = arith.mulf %81, %82 : vector<2x128xf32>
    %84 = vector.broadcast %11 : vector<1x128xf32> to vector<2x128xf32>
    %85 = arith.addf %83, %84 : vector<2x128xf32>
    %86 = vector.extract_strided_slice %85 {offsets = [0, 0], sizes = [2, 32], strides = [1, 1]} : vector<2x128xf32> to vector<2x32xf32>
    %87 = vector.extract_strided_slice %85 {offsets = [0, 32], sizes = [2, 32], strides = [1, 1]} : vector<2x128xf32> to vector<2x32xf32>
    %88 = vector.extract_strided_slice %85 {offsets = [0, 64], sizes = [2, 32], strides = [1, 1]} : vector<2x128xf32> to vector<2x32xf32>
    %89 = vector.extract_strided_slice %85 {offsets = [0, 96], sizes = [2, 32], strides = [1, 1]} : vector<2x128xf32> to vector<2x32xf32>
    %90 = arith.mulf %87, %37 : vector<2x32xf32>
    %91 = arith.mulf %86, %88 : vector<2x32xf32>
    %92 = arith.addf %90, %91 : vector<2x32xf32>
    %93 = math.tanh %92 : vector<2x32xf32>
    %94 = arith.mulf %89, %93 : vector<2x32xf32>
    %cst_44 = arith.constant dense<0.000000e+00> : vector<2x128xf32>
    %95 = tpu.matmul %94, %15, %cst_44 {dimension_numbers = #tpu.dot_dimension_numbers<[1], [0], [0], [1], [0, 0, 1, 1], [], []>} : vector<2x32xf32>, vector<32x128xf32>, vector<2x128xf32> -> vector<2x128xf32>
    %96 = vector.broadcast %23 : vector<1x128xf32> to vector<2x128xf32>
    %97 = arith.addf %95, %96 : vector<2x128xf32>
    %cst_45 = arith.constant dense<0.000000e+00> : vector<2x128xf32>
    %98 = tpu.matmul %34, %19, %cst_45 {dimension_numbers = #tpu.dot_dimension_numbers<[1], [0], [0], [1], [0, 0, 1, 1], [], []>} : vector<2x32xf32>, vector<32x128xf32>, vector<2x128xf32> -> vector<2x128xf32>
    %99 = arith.addf %97, %98 : vector<2x128xf32>
    %100 = math.tanh %99 : vector<2x128xf32>
    %101 = vector.broadcast %8 : vector<1x128xf32> to vector<2x128xf32>
    %102 = arith.mulf %100, %101 : vector<2x128xf32>
    %103 = vector.broadcast %11 : vector<1x128xf32> to vector<2x128xf32>
    %104 = arith.addf %102, %103 : vector<2x128xf32>
    %105 = vector.extract_strided_slice %104 {offsets = [0, 0], sizes = [2, 32], strides = [1, 1]} : vector<2x128xf32> to vector<2x32xf32>
    %106 = vector.extract_strided_slice %104 {offsets = [0, 32], sizes = [2, 32], strides = [1, 1]} : vector<2x128xf32> to vector<2x32xf32>
    %107 = vector.extract_strided_slice %104 {offsets = [0, 64], sizes = [2, 32], strides = [1, 1]} : vector<2x128xf32> to vector<2x32xf32>
    %108 = vector.extract_strided_slice %104 {offsets = [0, 96], sizes = [2, 32], strides = [1, 1]} : vector<2x128xf32> to vector<2x32xf32>
    %109 = arith.mulf %106, %38 : vector<2x32xf32>
    %110 = arith.mulf %105, %107 : vector<2x32xf32>
    %111 = arith.addf %109, %110 : vector<2x32xf32>
    %112 = math.tanh %111 : vector<2x32xf32>
    %113 = arith.mulf %108, %112 : vector<2x32xf32>
    %114 = vector.extract_strided_slice %30 {offsets = [0, 1, 0], sizes = [2, 1, 128], strides = [1, 1, 1]} : vector<2x8x128xf32> to vector<2x1x128xf32>
    %115 = vector.shape_cast %114 : vector<2x1x128xf32> to vector<2x128xf32>
    %cst_46 = arith.constant dense<0.000000e+00> : vector<2x128xf32>
    %116 = tpu.matmul %56, %16, %cst_46 {dimension_numbers = #tpu.dot_dimension_numbers<[1], [0], [0], [1], [0, 0, 1, 1], [], []>} : vector<2x32xf32>, vector<32x128xf32>, vector<2x128xf32> -> vector<2x128xf32>
    %117 = arith.addf %115, %116 : vector<2x128xf32>
    %118 = math.tanh %117 : vector<2x128xf32>
    %119 = vector.broadcast %8 : vector<1x128xf32> to vector<2x128xf32>
    %120 = arith.mulf %118, %119 : vector<2x128xf32>
    %121 = vector.broadcast %11 : vector<1x128xf32> to vector<2x128xf32>
    %122 = arith.addf %120, %121 : vector<2x128xf32>
    %123 = vector.extract_strided_slice %122 {offsets = [0, 0], sizes = [2, 32], strides = [1, 1]} : vector<2x128xf32> to vector<2x32xf32>
    %124 = vector.extract_strided_slice %122 {offsets = [0, 32], sizes = [2, 32], strides = [1, 1]} : vector<2x128xf32> to vector<2x32xf32>
    %125 = vector.extract_strided_slice %122 {offsets = [0, 64], sizes = [2, 32], strides = [1, 1]} : vector<2x128xf32> to vector<2x32xf32>
    %126 = vector.extract_strided_slice %122 {offsets = [0, 96], sizes = [2, 32], strides = [1, 1]} : vector<2x128xf32> to vector<2x32xf32>
    %127 = arith.mulf %124, %54 : vector<2x32xf32>
    %128 = arith.mulf %123, %125 : vector<2x32xf32>
    %129 = arith.addf %127, %128 : vector<2x32xf32>
    %130 = math.tanh %129 : vector<2x32xf32>
    %131 = arith.mulf %126, %130 : vector<2x32xf32>
    %cst_47 = arith.constant dense<0.000000e+00> : vector<2x128xf32>
    %132 = tpu.matmul %131, %13, %cst_47 {dimension_numbers = #tpu.dot_dimension_numbers<[1], [0], [0], [1], [0, 0, 1, 1], [], []>} : vector<2x32xf32>, vector<32x128xf32>, vector<2x128xf32> -> vector<2x128xf32>
    %133 = vector.broadcast %21 : vector<1x128xf32> to vector<2x128xf32>
    %134 = arith.addf %132, %133 : vector<2x128xf32>
    %cst_48 = arith.constant dense<0.000000e+00> : vector<2x128xf32>
    %135 = tpu.matmul %75, %17, %cst_48 {dimension_numbers = #tpu.dot_dimension_numbers<[1], [0], [0], [1], [0, 0, 1, 1], [], []>} : vector<2x32xf32>, vector<32x128xf32>, vector<2x128xf32> -> vector<2x128xf32>
    %136 = arith.addf %134, %135 : vector<2x128xf32>
    %137 = math.tanh %136 : vector<2x128xf32>
    %138 = vector.broadcast %8 : vector<1x128xf32> to vector<2x128xf32>
    %139 = arith.mulf %137, %138 : vector<2x128xf32>
    %140 = vector.broadcast %11 : vector<1x128xf32> to vector<2x128xf32>
    %141 = arith.addf %139, %140 : vector<2x128xf32>
    %142 = vector.extract_strided_slice %141 {offsets = [0, 0], sizes = [2, 32], strides = [1, 1]} : vector<2x128xf32> to vector<2x32xf32>
    %143 = vector.extract_strided_slice %141 {offsets = [0, 32], sizes = [2, 32], strides = [1, 1]} : vector<2x128xf32> to vector<2x32xf32>
    %144 = vector.extract_strided_slice %141 {offsets = [0, 64], sizes = [2, 32], strides = [1, 1]} : vector<2x128xf32> to vector<2x32xf32>
    %145 = vector.extract_strided_slice %141 {offsets = [0, 96], sizes = [2, 32], strides = [1, 1]} : vector<2x128xf32> to vector<2x32xf32>
    %146 = arith.mulf %143, %73 : vector<2x32xf32>
    %147 = arith.mulf %142, %144 : vector<2x32xf32>
    %148 = arith.addf %146, %147 : vector<2x32xf32>
    %149 = math.tanh %148 : vector<2x32xf32>
    %150 = arith.mulf %145, %149 : vector<2x32xf32>
    %cst_49 = arith.constant dense<0.000000e+00> : vector<2x128xf32>
    %151 = tpu.matmul %150, %14, %cst_49 {dimension_numbers = #tpu.dot_dimension_numbers<[1], [0], [0], [1], [0, 0, 1, 1], [], []>} : vector<2x32xf32>, vector<32x128xf32>, vector<2x128xf32> -> vector<2x128xf32>
    %152 = vector.broadcast %22 : vector<1x128xf32> to vector<2x128xf32>
    %153 = arith.addf %151, %152 : vector<2x128xf32>
    %cst_50 = arith.constant dense<0.000000e+00> : vector<2x128xf32>
    %154 = tpu.matmul %94, %18, %cst_50 {dimension_numbers = #tpu.dot_dimension_numbers<[1], [0], [0], [1], [0, 0, 1, 1], [], []>} : vector<2x32xf32>, vector<32x128xf32>, vector<2x128xf32> -> vector<2x128xf32>
    %155 = arith.addf %153, %154 : vector<2x128xf32>
    %156 = math.tanh %155 : vector<2x128xf32>
    %157 = vector.broadcast %8 : vector<1x128xf32> to vector<2x128xf32>
    %158 = arith.mulf %156, %157 : vector<2x128xf32>
    %159 = vector.broadcast %11 : vector<1x128xf32> to vector<2x128xf32>
    %160 = arith.addf %158, %159 : vector<2x128xf32>
    %161 = vector.extract_strided_slice %160 {offsets = [0, 0], sizes = [2, 32], strides = [1, 1]} : vector<2x128xf32> to vector<2x32xf32>
    %162 = vector.extract_strided_slice %160 {offsets = [0, 32], sizes = [2, 32], strides = [1, 1]} : vector<2x128xf32> to vector<2x32xf32>
    %163 = vector.extract_strided_slice %160 {offsets = [0, 64], sizes = [2, 32], strides = [1, 1]} : vector<2x128xf32> to vector<2x32xf32>
    %164 = vector.extract_strided_slice %160 {offsets = [0, 96], sizes = [2, 32], strides = [1, 1]} : vector<2x128xf32> to vector<2x32xf32>
    %165 = arith.mulf %162, %92 : vector<2x32xf32>
    %166 = arith.mulf %161, %163 : vector<2x32xf32>
    %167 = arith.addf %165, %166 : vector<2x32xf32>
    %168 = math.tanh %167 : vector<2x32xf32>
    %169 = arith.mulf %164, %168 : vector<2x32xf32>
    %cst_51 = arith.constant dense<0.000000e+00> : vector<2x128xf32>
    %170 = tpu.matmul %169, %15, %cst_51 {dimension_numbers = #tpu.dot_dimension_numbers<[1], [0], [0], [1], [0, 0, 1, 1], [], []>} : vector<2x32xf32>, vector<32x128xf32>, vector<2x128xf32> -> vector<2x128xf32>
    %171 = vector.broadcast %23 : vector<1x128xf32> to vector<2x128xf32>
    %172 = arith.addf %170, %171 : vector<2x128xf32>
    %cst_52 = arith.constant dense<0.000000e+00> : vector<2x128xf32>
    %173 = tpu.matmul %113, %19, %cst_52 {dimension_numbers = #tpu.dot_dimension_numbers<[1], [0], [0], [1], [0, 0, 1, 1], [], []>} : vector<2x32xf32>, vector<32x128xf32>, vector<2x128xf32> -> vector<2x128xf32>
    %174 = arith.addf %172, %173 : vector<2x128xf32>
    %175 = math.tanh %174 : vector<2x128xf32>
    %176 = vector.broadcast %8 : vector<1x128xf32> to vector<2x128xf32>
    %177 = arith.mulf %175, %176 : vector<2x128xf32>
    %178 = vector.broadcast %11 : vector<1x128xf32> to vector<2x128xf32>
    %179 = arith.addf %177, %178 : vector<2x128xf32>
    %180 = vector.extract_strided_slice %179 {offsets = [0, 0], sizes = [2, 32], strides = [1, 1]} : vector<2x128xf32> to vector<2x32xf32>
    %181 = vector.extract_strided_slice %179 {offsets = [0, 32], sizes = [2, 32], strides = [1, 1]} : vector<2x128xf32> to vector<2x32xf32>
    %182 = vector.extract_strided_slice %179 {offsets = [0, 64], sizes = [2, 32], strides = [1, 1]} : vector<2x128xf32> to vector<2x32xf32>
    %183 = vector.extract_strided_slice %179 {offsets = [0, 96], sizes = [2, 32], strides = [1, 1]} : vector<2x128xf32> to vector<2x32xf32>
    %184 = arith.mulf %181, %111 : vector<2x32xf32>
    %185 = arith.mulf %180, %182 : vector<2x32xf32>
    %186 = arith.addf %184, %185 : vector<2x32xf32>
    %187 = math.tanh %186 : vector<2x32xf32>
    %188 = arith.mulf %183, %187 : vector<2x32xf32>
    %189 = vector.extract_strided_slice %30 {offsets = [0, 2, 0], sizes = [2, 1, 128], strides = [1, 1, 1]} : vector<2x8x128xf32> to vector<2x1x128xf32>
    %190 = vector.shape_cast %189 : vector<2x1x128xf32> to vector<2x128xf32>
    %cst_53 = arith.constant dense<0.000000e+00> : vector<2x128xf32>
    %191 = tpu.matmul %131, %16, %cst_53 {dimension_numbers = #tpu.dot_dimension_numbers<[1], [0], [0], [1], [0, 0, 1, 1], [], []>} : vector<2x32xf32>, vector<32x128xf32>, vector<2x128xf32> -> vector<2x128xf32>
    %192 = arith.addf %190, %191 : vector<2x128xf32>
    %193 = math.tanh %192 : vector<2x128xf32>
    %194 = vector.broadcast %8 : vector<1x128xf32> to vector<2x128xf32>
    %195 = arith.mulf %193, %194 : vector<2x128xf32>
    %196 = vector.broadcast %11 : vector<1x128xf32> to vector<2x128xf32>
    %197 = arith.addf %195, %196 : vector<2x128xf32>
    %198 = vector.extract_strided_slice %197 {offsets = [0, 0], sizes = [2, 32], strides = [1, 1]} : vector<2x128xf32> to vector<2x32xf32>
    %199 = vector.extract_strided_slice %197 {offsets = [0, 32], sizes = [2, 32], strides = [1, 1]} : vector<2x128xf32> to vector<2x32xf32>
    %200 = vector.extract_strided_slice %197 {offsets = [0, 64], sizes = [2, 32], strides = [1, 1]} : vector<2x128xf32> to vector<2x32xf32>
    %201 = vector.extract_strided_slice %197 {offsets = [0, 96], sizes = [2, 32], strides = [1, 1]} : vector<2x128xf32> to vector<2x32xf32>
    %202 = arith.mulf %199, %129 : vector<2x32xf32>
    %203 = arith.mulf %198, %200 : vector<2x32xf32>
    %204 = arith.addf %202, %203 : vector<2x32xf32>
    %205 = math.tanh %204 : vector<2x32xf32>
    %206 = arith.mulf %201, %205 : vector<2x32xf32>
    %cst_54 = arith.constant dense<0.000000e+00> : vector<2x128xf32>
    %207 = tpu.matmul %206, %13, %cst_54 {dimension_numbers = #tpu.dot_dimension_numbers<[1], [0], [0], [1], [0, 0, 1, 1], [], []>} : vector<2x32xf32>, vector<32x128xf32>, vector<2x128xf32> -> vector<2x128xf32>
    %208 = vector.broadcast %21 : vector<1x128xf32> to vector<2x128xf32>
    %209 = arith.addf %207, %208 : vector<2x128xf32>
    %cst_55 = arith.constant dense<0.000000e+00> : vector<2x128xf32>
    %210 = tpu.matmul %150, %17, %cst_55 {dimension_numbers = #tpu.dot_dimension_numbers<[1], [0], [0], [1], [0, 0, 1, 1], [], []>} : vector<2x32xf32>, vector<32x128xf32>, vector<2x128xf32> -> vector<2x128xf32>
    %211 = arith.addf %209, %210 : vector<2x128xf32>
    %212 = math.tanh %211 : vector<2x128xf32>
    %213 = vector.broadcast %8 : vector<1x128xf32> to vector<2x128xf32>
    %214 = arith.mulf %212, %213 : vector<2x128xf32>
    %215 = vector.broadcast %11 : vector<1x128xf32> to vector<2x128xf32>
    %216 = arith.addf %214, %215 : vector<2x128xf32>
    %217 = vector.extract_strided_slice %216 {offsets = [0, 0], sizes = [2, 32], strides = [1, 1]} : vector<2x128xf32> to vector<2x32xf32>
    %218 = vector.extract_strided_slice %216 {offsets = [0, 32], sizes = [2, 32], strides = [1, 1]} : vector<2x128xf32> to vector<2x32xf32>
    %219 = vector.extract_strided_slice %216 {offsets = [0, 64], sizes = [2, 32], strides = [1, 1]} : vector<2x128xf32> to vector<2x32xf32>
    %220 = vector.extract_strided_slice %216 {offsets = [0, 96], sizes = [2, 32], strides = [1, 1]} : vector<2x128xf32> to vector<2x32xf32>
    %221 = arith.mulf %218, %148 : vector<2x32xf32>
    %222 = arith.mulf %217, %219 : vector<2x32xf32>
    %223 = arith.addf %221, %222 : vector<2x32xf32>
    %224 = math.tanh %223 : vector<2x32xf32>
    %225 = arith.mulf %220, %224 : vector<2x32xf32>
    %cst_56 = arith.constant dense<0.000000e+00> : vector<2x128xf32>
    %226 = tpu.matmul %225, %14, %cst_56 {dimension_numbers = #tpu.dot_dimension_numbers<[1], [0], [0], [1], [0, 0, 1, 1], [], []>} : vector<2x32xf32>, vector<32x128xf32>, vector<2x128xf32> -> vector<2x128xf32>
    %227 = vector.broadcast %22 : vector<1x128xf32> to vector<2x128xf32>
    %228 = arith.addf %226, %227 : vector<2x128xf32>
    %cst_57 = arith.constant dense<0.000000e+00> : vector<2x128xf32>
    %229 = tpu.matmul %169, %18, %cst_57 {dimension_numbers = #tpu.dot_dimension_numbers<[1], [0], [0], [1], [0, 0, 1, 1], [], []>} : vector<2x32xf32>, vector<32x128xf32>, vector<2x128xf32> -> vector<2x128xf32>
    %230 = arith.addf %228, %229 : vector<2x128xf32>
    %231 = math.tanh %230 : vector<2x128xf32>
    %232 = vector.broadcast %8 : vector<1x128xf32> to vector<2x128xf32>
    %233 = arith.mulf %231, %232 : vector<2x128xf32>
    %234 = vector.broadcast %11 : vector<1x128xf32> to vector<2x128xf32>
    %235 = arith.addf %233, %234 : vector<2x128xf32>
    %236 = vector.extract_strided_slice %235 {offsets = [0, 0], sizes = [2, 32], strides = [1, 1]} : vector<2x128xf32> to vector<2x32xf32>
    %237 = vector.extract_strided_slice %235 {offsets = [0, 32], sizes = [2, 32], strides = [1, 1]} : vector<2x128xf32> to vector<2x32xf32>
    %238 = vector.extract_strided_slice %235 {offsets = [0, 64], sizes = [2, 32], strides = [1, 1]} : vector<2x128xf32> to vector<2x32xf32>
    %239 = vector.extract_strided_slice %235 {offsets = [0, 96], sizes = [2, 32], strides = [1, 1]} : vector<2x128xf32> to vector<2x32xf32>
    %240 = arith.mulf %237, %167 : vector<2x32xf32>
    %241 = arith.mulf %236, %238 : vector<2x32xf32>
    %242 = arith.addf %240, %241 : vector<2x32xf32>
    %243 = math.tanh %242 : vector<2x32xf32>
    %244 = arith.mulf %239, %243 : vector<2x32xf32>
    %cst_58 = arith.constant dense<0.000000e+00> : vector<2x128xf32>
    %245 = tpu.matmul %244, %15, %cst_58 {dimension_numbers = #tpu.dot_dimension_numbers<[1], [0], [0], [1], [0, 0, 1, 1], [], []>} : vector<2x32xf32>, vector<32x128xf32>, vector<2x128xf32> -> vector<2x128xf32>
    %246 = vector.broadcast %23 : vector<1x128xf32> to vector<2x128xf32>
    %247 = arith.addf %245, %246 : vector<2x128xf32>
    %cst_59 = arith.constant dense<0.000000e+00> : vector<2x128xf32>
    %248 = tpu.matmul %188, %19, %cst_59 {dimension_numbers = #tpu.dot_dimension_numbers<[1], [0], [0], [1], [0, 0, 1, 1], [], []>} : vector<2x32xf32>, vector<32x128xf32>, vector<2x128xf32> -> vector<2x128xf32>
    %249 = arith.addf %247, %248 : vector<2x128xf32>
    %250 = math.tanh %249 : vector<2x128xf32>
    %251 = vector.broadcast %8 : vector<1x128xf32> to vector<2x128xf32>
    %252 = arith.mulf %250, %251 : vector<2x128xf32>
    %253 = vector.broadcast %11 : vector<1x128xf32> to vector<2x128xf32>
    %254 = arith.addf %252, %253 : vector<2x128xf32>
    %255 = vector.extract_strided_slice %254 {offsets = [0, 0], sizes = [2, 32], strides = [1, 1]} : vector<2x128xf32> to vector<2x32xf32>
    %256 = vector.extract_strided_slice %254 {offsets = [0, 32], sizes = [2, 32], strides = [1, 1]} : vector<2x128xf32> to vector<2x32xf32>
    %257 = vector.extract_strided_slice %254 {offsets = [0, 64], sizes = [2, 32], strides = [1, 1]} : vector<2x128xf32> to vector<2x32xf32>
    %258 = vector.extract_strided_slice %254 {offsets = [0, 96], sizes = [2, 32], strides = [1, 1]} : vector<2x128xf32> to vector<2x32xf32>
    %259 = arith.mulf %256, %186 : vector<2x32xf32>
    %260 = arith.mulf %255, %257 : vector<2x32xf32>
    %261 = arith.addf %259, %260 : vector<2x32xf32>
    %262 = math.tanh %261 : vector<2x32xf32>
    %263 = arith.mulf %258, %262 : vector<2x32xf32>
    %264 = vector.extract_strided_slice %30 {offsets = [0, 3, 0], sizes = [2, 1, 128], strides = [1, 1, 1]} : vector<2x8x128xf32> to vector<2x1x128xf32>
    %265 = vector.shape_cast %264 : vector<2x1x128xf32> to vector<2x128xf32>
    %cst_60 = arith.constant dense<0.000000e+00> : vector<2x128xf32>
    %266 = tpu.matmul %206, %16, %cst_60 {dimension_numbers = #tpu.dot_dimension_numbers<[1], [0], [0], [1], [0, 0, 1, 1], [], []>} : vector<2x32xf32>, vector<32x128xf32>, vector<2x128xf32> -> vector<2x128xf32>
    %267 = arith.addf %265, %266 : vector<2x128xf32>
    %268 = math.tanh %267 : vector<2x128xf32>
    %269 = vector.broadcast %8 : vector<1x128xf32> to vector<2x128xf32>
    %270 = arith.mulf %268, %269 : vector<2x128xf32>
    %271 = vector.broadcast %11 : vector<1x128xf32> to vector<2x128xf32>
    %272 = arith.addf %270, %271 : vector<2x128xf32>
    %273 = vector.extract_strided_slice %272 {offsets = [0, 0], sizes = [2, 32], strides = [1, 1]} : vector<2x128xf32> to vector<2x32xf32>
    %274 = vector.extract_strided_slice %272 {offsets = [0, 32], sizes = [2, 32], strides = [1, 1]} : vector<2x128xf32> to vector<2x32xf32>
    %275 = vector.extract_strided_slice %272 {offsets = [0, 64], sizes = [2, 32], strides = [1, 1]} : vector<2x128xf32> to vector<2x32xf32>
    %276 = vector.extract_strided_slice %272 {offsets = [0, 96], sizes = [2, 32], strides = [1, 1]} : vector<2x128xf32> to vector<2x32xf32>
    %277 = arith.mulf %274, %204 : vector<2x32xf32>
    %278 = arith.mulf %273, %275 : vector<2x32xf32>
    %279 = arith.addf %277, %278 : vector<2x32xf32>
    %280 = math.tanh %279 : vector<2x32xf32>
    %281 = arith.mulf %276, %280 : vector<2x32xf32>
    %cst_61 = arith.constant dense<0.000000e+00> : vector<2x128xf32>
    %282 = tpu.matmul %281, %13, %cst_61 {dimension_numbers = #tpu.dot_dimension_numbers<[1], [0], [0], [1], [0, 0, 1, 1], [], []>} : vector<2x32xf32>, vector<32x128xf32>, vector<2x128xf32> -> vector<2x128xf32>
    %283 = vector.broadcast %21 : vector<1x128xf32> to vector<2x128xf32>
    %284 = arith.addf %282, %283 : vector<2x128xf32>
    %cst_62 = arith.constant dense<0.000000e+00> : vector<2x128xf32>
    %285 = tpu.matmul %225, %17, %cst_62 {dimension_numbers = #tpu.dot_dimension_numbers<[1], [0], [0], [1], [0, 0, 1, 1], [], []>} : vector<2x32xf32>, vector<32x128xf32>, vector<2x128xf32> -> vector<2x128xf32>
    %286 = arith.addf %284, %285 : vector<2x128xf32>
    %287 = math.tanh %286 : vector<2x128xf32>
    %288 = vector.broadcast %8 : vector<1x128xf32> to vector<2x128xf32>
    %289 = arith.mulf %287, %288 : vector<2x128xf32>
    %290 = vector.broadcast %11 : vector<1x128xf32> to vector<2x128xf32>
    %291 = arith.addf %289, %290 : vector<2x128xf32>
    %292 = vector.extract_strided_slice %291 {offsets = [0, 0], sizes = [2, 32], strides = [1, 1]} : vector<2x128xf32> to vector<2x32xf32>
    %293 = vector.extract_strided_slice %291 {offsets = [0, 32], sizes = [2, 32], strides = [1, 1]} : vector<2x128xf32> to vector<2x32xf32>
    %294 = vector.extract_strided_slice %291 {offsets = [0, 64], sizes = [2, 32], strides = [1, 1]} : vector<2x128xf32> to vector<2x32xf32>
    %295 = vector.extract_strided_slice %291 {offsets = [0, 96], sizes = [2, 32], strides = [1, 1]} : vector<2x128xf32> to vector<2x32xf32>
    %296 = arith.mulf %293, %223 : vector<2x32xf32>
    %297 = arith.mulf %292, %294 : vector<2x32xf32>
    %298 = arith.addf %296, %297 : vector<2x32xf32>
    %299 = math.tanh %298 : vector<2x32xf32>
    %300 = arith.mulf %295, %299 : vector<2x32xf32>
    %cst_63 = arith.constant dense<0.000000e+00> : vector<2x128xf32>
    %301 = tpu.matmul %300, %14, %cst_63 {dimension_numbers = #tpu.dot_dimension_numbers<[1], [0], [0], [1], [0, 0, 1, 1], [], []>} : vector<2x32xf32>, vector<32x128xf32>, vector<2x128xf32> -> vector<2x128xf32>
    %302 = vector.broadcast %22 : vector<1x128xf32> to vector<2x128xf32>
    %303 = arith.addf %301, %302 : vector<2x128xf32>
    %cst_64 = arith.constant dense<0.000000e+00> : vector<2x128xf32>
    %304 = tpu.matmul %244, %18, %cst_64 {dimension_numbers = #tpu.dot_dimension_numbers<[1], [0], [0], [1], [0, 0, 1, 1], [], []>} : vector<2x32xf32>, vector<32x128xf32>, vector<2x128xf32> -> vector<2x128xf32>
    %305 = arith.addf %303, %304 : vector<2x128xf32>
    %306 = math.tanh %305 : vector<2x128xf32>
    %307 = vector.broadcast %8 : vector<1x128xf32> to vector<2x128xf32>
    %308 = arith.mulf %306, %307 : vector<2x128xf32>
    %309 = vector.broadcast %11 : vector<1x128xf32> to vector<2x128xf32>
    %310 = arith.addf %308, %309 : vector<2x128xf32>
    %311 = vector.extract_strided_slice %310 {offsets = [0, 0], sizes = [2, 32], strides = [1, 1]} : vector<2x128xf32> to vector<2x32xf32>
    %312 = vector.extract_strided_slice %310 {offsets = [0, 32], sizes = [2, 32], strides = [1, 1]} : vector<2x128xf32> to vector<2x32xf32>
    %313 = vector.extract_strided_slice %310 {offsets = [0, 64], sizes = [2, 32], strides = [1, 1]} : vector<2x128xf32> to vector<2x32xf32>
    %314 = vector.extract_strided_slice %310 {offsets = [0, 96], sizes = [2, 32], strides = [1, 1]} : vector<2x128xf32> to vector<2x32xf32>
    %315 = arith.mulf %312, %242 : vector<2x32xf32>
    %316 = arith.mulf %311, %313 : vector<2x32xf32>
    %317 = arith.addf %315, %316 : vector<2x32xf32>
    %318 = math.tanh %317 : vector<2x32xf32>
    %319 = arith.mulf %314, %318 : vector<2x32xf32>
    %cst_65 = arith.constant dense<0.000000e+00> : vector<2x128xf32>
    %320 = tpu.matmul %319, %15, %cst_65 {dimension_numbers = #tpu.dot_dimension_numbers<[1], [0], [0], [1], [0, 0, 1, 1], [], []>} : vector<2x32xf32>, vector<32x128xf32>, vector<2x128xf32> -> vector<2x128xf32>
    %321 = vector.broadcast %23 : vector<1x128xf32> to vector<2x128xf32>
    %322 = arith.addf %320, %321 : vector<2x128xf32>
    %cst_66 = arith.constant dense<0.000000e+00> : vector<2x128xf32>
    %323 = tpu.matmul %263, %19, %cst_66 {dimension_numbers = #tpu.dot_dimension_numbers<[1], [0], [0], [1], [0, 0, 1, 1], [], []>} : vector<2x32xf32>, vector<32x128xf32>, vector<2x128xf32> -> vector<2x128xf32>
    %324 = arith.addf %322, %323 : vector<2x128xf32>
    %325 = math.tanh %324 : vector<2x128xf32>
    %326 = vector.broadcast %8 : vector<1x128xf32> to vector<2x128xf32>
    %327 = arith.mulf %325, %326 : vector<2x128xf32>
    %328 = vector.broadcast %11 : vector<1x128xf32> to vector<2x128xf32>
    %329 = arith.addf %327, %328 : vector<2x128xf32>
    %330 = vector.extract_strided_slice %329 {offsets = [0, 0], sizes = [2, 32], strides = [1, 1]} : vector<2x128xf32> to vector<2x32xf32>
    %331 = vector.extract_strided_slice %329 {offsets = [0, 32], sizes = [2, 32], strides = [1, 1]} : vector<2x128xf32> to vector<2x32xf32>
    %332 = vector.extract_strided_slice %329 {offsets = [0, 64], sizes = [2, 32], strides = [1, 1]} : vector<2x128xf32> to vector<2x32xf32>
    %333 = vector.extract_strided_slice %329 {offsets = [0, 96], sizes = [2, 32], strides = [1, 1]} : vector<2x128xf32> to vector<2x32xf32>
    %334 = arith.mulf %331, %261 : vector<2x32xf32>
    %335 = arith.mulf %330, %332 : vector<2x32xf32>
    %336 = arith.addf %334, %335 : vector<2x32xf32>
    %337 = math.tanh %336 : vector<2x32xf32>
    %338 = arith.mulf %333, %337 : vector<2x32xf32>
    %339 = vector.extract_strided_slice %30 {offsets = [0, 4, 0], sizes = [2, 1, 128], strides = [1, 1, 1]} : vector<2x8x128xf32> to vector<2x1x128xf32>
    %340 = vector.shape_cast %339 : vector<2x1x128xf32> to vector<2x128xf32>
    %cst_67 = arith.constant dense<0.000000e+00> : vector<2x128xf32>
    %341 = tpu.matmul %281, %16, %cst_67 {dimension_numbers = #tpu.dot_dimension_numbers<[1], [0], [0], [1], [0, 0, 1, 1], [], []>} : vector<2x32xf32>, vector<32x128xf32>, vector<2x128xf32> -> vector<2x128xf32>
    %342 = arith.addf %340, %341 : vector<2x128xf32>
    %343 = math.tanh %342 : vector<2x128xf32>
    %344 = vector.broadcast %8 : vector<1x128xf32> to vector<2x128xf32>
    %345 = arith.mulf %343, %344 : vector<2x128xf32>
    %346 = vector.broadcast %11 : vector<1x128xf32> to vector<2x128xf32>
    %347 = arith.addf %345, %346 : vector<2x128xf32>
    %348 = vector.extract_strided_slice %347 {offsets = [0, 0], sizes = [2, 32], strides = [1, 1]} : vector<2x128xf32> to vector<2x32xf32>
    %349 = vector.extract_strided_slice %347 {offsets = [0, 32], sizes = [2, 32], strides = [1, 1]} : vector<2x128xf32> to vector<2x32xf32>
    %350 = vector.extract_strided_slice %347 {offsets = [0, 64], sizes = [2, 32], strides = [1, 1]} : vector<2x128xf32> to vector<2x32xf32>
    %351 = vector.extract_strided_slice %347 {offsets = [0, 96], sizes = [2, 32], strides = [1, 1]} : vector<2x128xf32> to vector<2x32xf32>
    %352 = arith.mulf %349, %279 : vector<2x32xf32>
    %353 = arith.mulf %348, %350 : vector<2x32xf32>
    %354 = arith.addf %352, %353 : vector<2x32xf32>
    %355 = math.tanh %354 : vector<2x32xf32>
    %356 = arith.mulf %351, %355 : vector<2x32xf32>
    %cst_68 = arith.constant dense<0.000000e+00> : vector<2x128xf32>
    %357 = tpu.matmul %356, %13, %cst_68 {dimension_numbers = #tpu.dot_dimension_numbers<[1], [0], [0], [1], [0, 0, 1, 1], [], []>} : vector<2x32xf32>, vector<32x128xf32>, vector<2x128xf32> -> vector<2x128xf32>
    %358 = vector.broadcast %21 : vector<1x128xf32> to vector<2x128xf32>
    %359 = arith.addf %357, %358 : vector<2x128xf32>
    %cst_69 = arith.constant dense<0.000000e+00> : vector<2x128xf32>
    %360 = tpu.matmul %300, %17, %cst_69 {dimension_numbers = #tpu.dot_dimension_numbers<[1], [0], [0], [1], [0, 0, 1, 1], [], []>} : vector<2x32xf32>, vector<32x128xf32>, vector<2x128xf32> -> vector<2x128xf32>
    %361 = arith.addf %359, %360 : vector<2x128xf32>
    %362 = math.tanh %361 : vector<2x128xf32>
    %363 = vector.broadcast %8 : vector<1x128xf32> to vector<2x128xf32>
    %364 = arith.mulf %362, %363 : vector<2x128xf32>
    %365 = vector.broadcast %11 : vector<1x128xf32> to vector<2x128xf32>
    %366 = arith.addf %364, %365 : vector<2x128xf32>
    %367 = vector.extract_strided_slice %366 {offsets = [0, 0], sizes = [2, 32], strides = [1, 1]} : vector<2x128xf32> to vector<2x32xf32>
    %368 = vector.extract_strided_slice %366 {offsets = [0, 32], sizes = [2, 32], strides = [1, 1]} : vector<2x128xf32> to vector<2x32xf32>
    %369 = vector.extract_strided_slice %366 {offsets = [0, 64], sizes = [2, 32], strides = [1, 1]} : vector<2x128xf32> to vector<2x32xf32>
    %370 = vector.extract_strided_slice %366 {offsets = [0, 96], sizes = [2, 32], strides = [1, 1]} : vector<2x128xf32> to vector<2x32xf32>
    %371 = arith.mulf %368, %298 : vector<2x32xf32>
    %372 = arith.mulf %367, %369 : vector<2x32xf32>
    %373 = arith.addf %371, %372 : vector<2x32xf32>
    %374 = math.tanh %373 : vector<2x32xf32>
    %375 = arith.mulf %370, %374 : vector<2x32xf32>
    %cst_70 = arith.constant dense<0.000000e+00> : vector<2x128xf32>
    %376 = tpu.matmul %375, %14, %cst_70 {dimension_numbers = #tpu.dot_dimension_numbers<[1], [0], [0], [1], [0, 0, 1, 1], [], []>} : vector<2x32xf32>, vector<32x128xf32>, vector<2x128xf32> -> vector<2x128xf32>
    %377 = vector.broadcast %22 : vector<1x128xf32> to vector<2x128xf32>
    %378 = arith.addf %376, %377 : vector<2x128xf32>
    %cst_71 = arith.constant dense<0.000000e+00> : vector<2x128xf32>
    %379 = tpu.matmul %319, %18, %cst_71 {dimension_numbers = #tpu.dot_dimension_numbers<[1], [0], [0], [1], [0, 0, 1, 1], [], []>} : vector<2x32xf32>, vector<32x128xf32>, vector<2x128xf32> -> vector<2x128xf32>
    %380 = arith.addf %378, %379 : vector<2x128xf32>
    %381 = math.tanh %380 : vector<2x128xf32>
    %382 = vector.broadcast %8 : vector<1x128xf32> to vector<2x128xf32>
    %383 = arith.mulf %381, %382 : vector<2x128xf32>
    %384 = vector.broadcast %11 : vector<1x128xf32> to vector<2x128xf32>
    %385 = arith.addf %383, %384 : vector<2x128xf32>
    %386 = vector.extract_strided_slice %385 {offsets = [0, 0], sizes = [2, 32], strides = [1, 1]} : vector<2x128xf32> to vector<2x32xf32>
    %387 = vector.extract_strided_slice %385 {offsets = [0, 32], sizes = [2, 32], strides = [1, 1]} : vector<2x128xf32> to vector<2x32xf32>
    %388 = vector.extract_strided_slice %385 {offsets = [0, 64], sizes = [2, 32], strides = [1, 1]} : vector<2x128xf32> to vector<2x32xf32>
    %389 = vector.extract_strided_slice %385 {offsets = [0, 96], sizes = [2, 32], strides = [1, 1]} : vector<2x128xf32> to vector<2x32xf32>
    %390 = arith.mulf %387, %317 : vector<2x32xf32>
    %391 = arith.mulf %386, %388 : vector<2x32xf32>
    %392 = arith.addf %390, %391 : vector<2x32xf32>
    %393 = math.tanh %392 : vector<2x32xf32>
    %394 = arith.mulf %389, %393 : vector<2x32xf32>
    %cst_72 = arith.constant dense<0.000000e+00> : vector<2x128xf32>
    %395 = tpu.matmul %394, %15, %cst_72 {dimension_numbers = #tpu.dot_dimension_numbers<[1], [0], [0], [1], [0, 0, 1, 1], [], []>} : vector<2x32xf32>, vector<32x128xf32>, vector<2x128xf32> -> vector<2x128xf32>
    %396 = vector.broadcast %23 : vector<1x128xf32> to vector<2x128xf32>
    %397 = arith.addf %395, %396 : vector<2x128xf32>
    %cst_73 = arith.constant dense<0.000000e+00> : vector<2x128xf32>
    %398 = tpu.matmul %338, %19, %cst_73 {dimension_numbers = #tpu.dot_dimension_numbers<[1], [0], [0], [1], [0, 0, 1, 1], [], []>} : vector<2x32xf32>, vector<32x128xf32>, vector<2x128xf32> -> vector<2x128xf32>
    %399 = arith.addf %397, %398 : vector<2x128xf32>
    %400 = math.tanh %399 : vector<2x128xf32>
    %401 = vector.broadcast %8 : vector<1x128xf32> to vector<2x128xf32>
    %402 = arith.mulf %400, %401 : vector<2x128xf32>
    %403 = vector.broadcast %11 : vector<1x128xf32> to vector<2x128xf32>
    %404 = arith.addf %402, %403 : vector<2x128xf32>
    %405 = vector.extract_strided_slice %404 {offsets = [0, 0], sizes = [2, 32], strides = [1, 1]} : vector<2x128xf32> to vector<2x32xf32>
    %406 = vector.extract_strided_slice %404 {offsets = [0, 32], sizes = [2, 32], strides = [1, 1]} : vector<2x128xf32> to vector<2x32xf32>
    %407 = vector.extract_strided_slice %404 {offsets = [0, 64], sizes = [2, 32], strides = [1, 1]} : vector<2x128xf32> to vector<2x32xf32>
    %408 = vector.extract_strided_slice %404 {offsets = [0, 96], sizes = [2, 32], strides = [1, 1]} : vector<2x128xf32> to vector<2x32xf32>
    %409 = arith.mulf %406, %336 : vector<2x32xf32>
    %410 = arith.mulf %405, %407 : vector<2x32xf32>
    %411 = arith.addf %409, %410 : vector<2x32xf32>
    %412 = math.tanh %411 : vector<2x32xf32>
    %413 = arith.mulf %408, %412 : vector<2x32xf32>
    %414 = vector.extract_strided_slice %30 {offsets = [0, 5, 0], sizes = [2, 1, 128], strides = [1, 1, 1]} : vector<2x8x128xf32> to vector<2x1x128xf32>
    %415 = vector.shape_cast %414 : vector<2x1x128xf32> to vector<2x128xf32>
    %cst_74 = arith.constant dense<0.000000e+00> : vector<2x128xf32>
    %416 = tpu.matmul %356, %16, %cst_74 {dimension_numbers = #tpu.dot_dimension_numbers<[1], [0], [0], [1], [0, 0, 1, 1], [], []>} : vector<2x32xf32>, vector<32x128xf32>, vector<2x128xf32> -> vector<2x128xf32>
    %417 = arith.addf %415, %416 : vector<2x128xf32>
    %418 = math.tanh %417 : vector<2x128xf32>
    %419 = vector.broadcast %8 : vector<1x128xf32> to vector<2x128xf32>
    %420 = arith.mulf %418, %419 : vector<2x128xf32>
    %421 = vector.broadcast %11 : vector<1x128xf32> to vector<2x128xf32>
    %422 = arith.addf %420, %421 : vector<2x128xf32>
    %423 = vector.extract_strided_slice %422 {offsets = [0, 0], sizes = [2, 32], strides = [1, 1]} : vector<2x128xf32> to vector<2x32xf32>
    %424 = vector.extract_strided_slice %422 {offsets = [0, 32], sizes = [2, 32], strides = [1, 1]} : vector<2x128xf32> to vector<2x32xf32>
    %425 = vector.extract_strided_slice %422 {offsets = [0, 64], sizes = [2, 32], strides = [1, 1]} : vector<2x128xf32> to vector<2x32xf32>
    %426 = vector.extract_strided_slice %422 {offsets = [0, 96], sizes = [2, 32], strides = [1, 1]} : vector<2x128xf32> to vector<2x32xf32>
    %427 = arith.mulf %424, %354 : vector<2x32xf32>
    %428 = arith.mulf %423, %425 : vector<2x32xf32>
    %429 = arith.addf %427, %428 : vector<2x32xf32>
    %430 = math.tanh %429 : vector<2x32xf32>
    %431 = arith.mulf %426, %430 : vector<2x32xf32>
    %cst_75 = arith.constant dense<0.000000e+00> : vector<2x128xf32>
    %432 = tpu.matmul %431, %13, %cst_75 {dimension_numbers = #tpu.dot_dimension_numbers<[1], [0], [0], [1], [0, 0, 1, 1], [], []>} : vector<2x32xf32>, vector<32x128xf32>, vector<2x128xf32> -> vector<2x128xf32>
    %433 = vector.broadcast %21 : vector<1x128xf32> to vector<2x128xf32>
    %434 = arith.addf %432, %433 : vector<2x128xf32>
    %cst_76 = arith.constant dense<0.000000e+00> : vector<2x128xf32>
    %435 = tpu.matmul %375, %17, %cst_76 {dimension_numbers = #tpu.dot_dimension_numbers<[1], [0], [0], [1], [0, 0, 1, 1], [], []>} : vector<2x32xf32>, vector<32x128xf32>, vector<2x128xf32> -> vector<2x128xf32>
    %436 = arith.addf %434, %435 : vector<2x128xf32>
    %437 = math.tanh %436 : vector<2x128xf32>
    %438 = vector.broadcast %8 : vector<1x128xf32> to vector<2x128xf32>
    %439 = arith.mulf %437, %438 : vector<2x128xf32>
    %440 = vector.broadcast %11 : vector<1x128xf32> to vector<2x128xf32>
    %441 = arith.addf %439, %440 : vector<2x128xf32>
    %442 = vector.extract_strided_slice %441 {offsets = [0, 0], sizes = [2, 32], strides = [1, 1]} : vector<2x128xf32> to vector<2x32xf32>
    %443 = vector.extract_strided_slice %441 {offsets = [0, 32], sizes = [2, 32], strides = [1, 1]} : vector<2x128xf32> to vector<2x32xf32>
    %444 = vector.extract_strided_slice %441 {offsets = [0, 64], sizes = [2, 32], strides = [1, 1]} : vector<2x128xf32> to vector<2x32xf32>
    %445 = vector.extract_strided_slice %441 {offsets = [0, 96], sizes = [2, 32], strides = [1, 1]} : vector<2x128xf32> to vector<2x32xf32>
    %446 = arith.mulf %443, %373 : vector<2x32xf32>
    %447 = arith.mulf %442, %444 : vector<2x32xf32>
    %448 = arith.addf %446, %447 : vector<2x32xf32>
    %449 = math.tanh %448 : vector<2x32xf32>
    %450 = arith.mulf %445, %449 : vector<2x32xf32>
    %cst_77 = arith.constant dense<0.000000e+00> : vector<2x128xf32>
    %451 = tpu.matmul %450, %14, %cst_77 {dimension_numbers = #tpu.dot_dimension_numbers<[1], [0], [0], [1], [0, 0, 1, 1], [], []>} : vector<2x32xf32>, vector<32x128xf32>, vector<2x128xf32> -> vector<2x128xf32>
    %452 = vector.broadcast %22 : vector<1x128xf32> to vector<2x128xf32>
    %453 = arith.addf %451, %452 : vector<2x128xf32>
    %cst_78 = arith.constant dense<0.000000e+00> : vector<2x128xf32>
    %454 = tpu.matmul %394, %18, %cst_78 {dimension_numbers = #tpu.dot_dimension_numbers<[1], [0], [0], [1], [0, 0, 1, 1], [], []>} : vector<2x32xf32>, vector<32x128xf32>, vector<2x128xf32> -> vector<2x128xf32>
    %455 = arith.addf %453, %454 : vector<2x128xf32>
    %456 = math.tanh %455 : vector<2x128xf32>
    %457 = vector.broadcast %8 : vector<1x128xf32> to vector<2x128xf32>
    %458 = arith.mulf %456, %457 : vector<2x128xf32>
    %459 = vector.broadcast %11 : vector<1x128xf32> to vector<2x128xf32>
    %460 = arith.addf %458, %459 : vector<2x128xf32>
    %461 = vector.extract_strided_slice %460 {offsets = [0, 0], sizes = [2, 32], strides = [1, 1]} : vector<2x128xf32> to vector<2x32xf32>
    %462 = vector.extract_strided_slice %460 {offsets = [0, 32], sizes = [2, 32], strides = [1, 1]} : vector<2x128xf32> to vector<2x32xf32>
    %463 = vector.extract_strided_slice %460 {offsets = [0, 64], sizes = [2, 32], strides = [1, 1]} : vector<2x128xf32> to vector<2x32xf32>
    %464 = vector.extract_strided_slice %460 {offsets = [0, 96], sizes = [2, 32], strides = [1, 1]} : vector<2x128xf32> to vector<2x32xf32>
    %465 = arith.mulf %462, %392 : vector<2x32xf32>
    %466 = arith.mulf %461, %463 : vector<2x32xf32>
    %467 = arith.addf %465, %466 : vector<2x32xf32>
    %468 = math.tanh %467 : vector<2x32xf32>
    %469 = arith.mulf %464, %468 : vector<2x32xf32>
    %cst_79 = arith.constant dense<0.000000e+00> : vector<2x128xf32>
    %470 = tpu.matmul %469, %15, %cst_79 {dimension_numbers = #tpu.dot_dimension_numbers<[1], [0], [0], [1], [0, 0, 1, 1], [], []>} : vector<2x32xf32>, vector<32x128xf32>, vector<2x128xf32> -> vector<2x128xf32>
    %471 = vector.broadcast %23 : vector<1x128xf32> to vector<2x128xf32>
    %472 = arith.addf %470, %471 : vector<2x128xf32>
    %cst_80 = arith.constant dense<0.000000e+00> : vector<2x128xf32>
    %473 = tpu.matmul %413, %19, %cst_80 {dimension_numbers = #tpu.dot_dimension_numbers<[1], [0], [0], [1], [0, 0, 1, 1], [], []>} : vector<2x32xf32>, vector<32x128xf32>, vector<2x128xf32> -> vector<2x128xf32>
    %474 = arith.addf %472, %473 : vector<2x128xf32>
    %475 = math.tanh %474 : vector<2x128xf32>
    %476 = vector.broadcast %8 : vector<1x128xf32> to vector<2x128xf32>
    %477 = arith.mulf %475, %476 : vector<2x128xf32>
    %478 = vector.broadcast %11 : vector<1x128xf32> to vector<2x128xf32>
    %479 = arith.addf %477, %478 : vector<2x128xf32>
    %480 = vector.extract_strided_slice %479 {offsets = [0, 0], sizes = [2, 32], strides = [1, 1]} : vector<2x128xf32> to vector<2x32xf32>
    %481 = vector.extract_strided_slice %479 {offsets = [0, 32], sizes = [2, 32], strides = [1, 1]} : vector<2x128xf32> to vector<2x32xf32>
    %482 = vector.extract_strided_slice %479 {offsets = [0, 64], sizes = [2, 32], strides = [1, 1]} : vector<2x128xf32> to vector<2x32xf32>
    %483 = vector.extract_strided_slice %479 {offsets = [0, 96], sizes = [2, 32], strides = [1, 1]} : vector<2x128xf32> to vector<2x32xf32>
    %484 = arith.mulf %481, %411 : vector<2x32xf32>
    %485 = arith.mulf %480, %482 : vector<2x32xf32>
    %486 = arith.addf %484, %485 : vector<2x32xf32>
    %487 = math.tanh %486 : vector<2x32xf32>
    %488 = arith.mulf %483, %487 : vector<2x32xf32>
    %489 = vector.extract_strided_slice %30 {offsets = [0, 6, 0], sizes = [2, 1, 128], strides = [1, 1, 1]} : vector<2x8x128xf32> to vector<2x1x128xf32>
    %490 = vector.shape_cast %489 : vector<2x1x128xf32> to vector<2x128xf32>
    %cst_81 = arith.constant dense<0.000000e+00> : vector<2x128xf32>
    %491 = tpu.matmul %431, %16, %cst_81 {dimension_numbers = #tpu.dot_dimension_numbers<[1], [0], [0], [1], [0, 0, 1, 1], [], []>} : vector<2x32xf32>, vector<32x128xf32>, vector<2x128xf32> -> vector<2x128xf32>
    %492 = arith.addf %490, %491 : vector<2x128xf32>
    %493 = math.tanh %492 : vector<2x128xf32>
    %494 = vector.broadcast %8 : vector<1x128xf32> to vector<2x128xf32>
    %495 = arith.mulf %493, %494 : vector<2x128xf32>
    %496 = vector.broadcast %11 : vector<1x128xf32> to vector<2x128xf32>
    %497 = arith.addf %495, %496 : vector<2x128xf32>
    %498 = vector.extract_strided_slice %497 {offsets = [0, 0], sizes = [2, 32], strides = [1, 1]} : vector<2x128xf32> to vector<2x32xf32>
    %499 = vector.extract_strided_slice %497 {offsets = [0, 32], sizes = [2, 32], strides = [1, 1]} : vector<2x128xf32> to vector<2x32xf32>
    %500 = vector.extract_strided_slice %497 {offsets = [0, 64], sizes = [2, 32], strides = [1, 1]} : vector<2x128xf32> to vector<2x32xf32>
    %501 = vector.extract_strided_slice %497 {offsets = [0, 96], sizes = [2, 32], strides = [1, 1]} : vector<2x128xf32> to vector<2x32xf32>
    %502 = arith.mulf %499, %429 : vector<2x32xf32>
    %503 = arith.mulf %498, %500 : vector<2x32xf32>
    %504 = arith.addf %502, %503 : vector<2x32xf32>
    %505 = math.tanh %504 : vector<2x32xf32>
    %506 = arith.mulf %501, %505 : vector<2x32xf32>
    %cst_82 = arith.constant dense<0.000000e+00> : vector<2x128xf32>
    %507 = tpu.matmul %506, %13, %cst_82 {dimension_numbers = #tpu.dot_dimension_numbers<[1], [0], [0], [1], [0, 0, 1, 1], [], []>} : vector<2x32xf32>, vector<32x128xf32>, vector<2x128xf32> -> vector<2x128xf32>
    %508 = vector.broadcast %21 : vector<1x128xf32> to vector<2x128xf32>
    %509 = arith.addf %507, %508 : vector<2x128xf32>
    %cst_83 = arith.constant dense<0.000000e+00> : vector<2x128xf32>
    %510 = tpu.matmul %450, %17, %cst_83 {dimension_numbers = #tpu.dot_dimension_numbers<[1], [0], [0], [1], [0, 0, 1, 1], [], []>} : vector<2x32xf32>, vector<32x128xf32>, vector<2x128xf32> -> vector<2x128xf32>
    %511 = arith.addf %509, %510 : vector<2x128xf32>
    %512 = math.tanh %511 : vector<2x128xf32>
    %513 = vector.broadcast %8 : vector<1x128xf32> to vector<2x128xf32>
    %514 = arith.mulf %512, %513 : vector<2x128xf32>
    %515 = vector.broadcast %11 : vector<1x128xf32> to vector<2x128xf32>
    %516 = arith.addf %514, %515 : vector<2x128xf32>
    %517 = vector.extract_strided_slice %516 {offsets = [0, 0], sizes = [2, 32], strides = [1, 1]} : vector<2x128xf32> to vector<2x32xf32>
    %518 = vector.extract_strided_slice %516 {offsets = [0, 32], sizes = [2, 32], strides = [1, 1]} : vector<2x128xf32> to vector<2x32xf32>
    %519 = vector.extract_strided_slice %516 {offsets = [0, 64], sizes = [2, 32], strides = [1, 1]} : vector<2x128xf32> to vector<2x32xf32>
    %520 = vector.extract_strided_slice %516 {offsets = [0, 96], sizes = [2, 32], strides = [1, 1]} : vector<2x128xf32> to vector<2x32xf32>
    %521 = arith.mulf %518, %448 : vector<2x32xf32>
    %522 = arith.mulf %517, %519 : vector<2x32xf32>
    %523 = arith.addf %521, %522 : vector<2x32xf32>
    %524 = math.tanh %523 : vector<2x32xf32>
    %525 = arith.mulf %520, %524 : vector<2x32xf32>
    %cst_84 = arith.constant dense<0.000000e+00> : vector<2x128xf32>
    %526 = tpu.matmul %525, %14, %cst_84 {dimension_numbers = #tpu.dot_dimension_numbers<[1], [0], [0], [1], [0, 0, 1, 1], [], []>} : vector<2x32xf32>, vector<32x128xf32>, vector<2x128xf32> -> vector<2x128xf32>
    %527 = vector.broadcast %22 : vector<1x128xf32> to vector<2x128xf32>
    %528 = arith.addf %526, %527 : vector<2x128xf32>
    %cst_85 = arith.constant dense<0.000000e+00> : vector<2x128xf32>
    %529 = tpu.matmul %469, %18, %cst_85 {dimension_numbers = #tpu.dot_dimension_numbers<[1], [0], [0], [1], [0, 0, 1, 1], [], []>} : vector<2x32xf32>, vector<32x128xf32>, vector<2x128xf32> -> vector<2x128xf32>
    %530 = arith.addf %528, %529 : vector<2x128xf32>
    %531 = math.tanh %530 : vector<2x128xf32>
    %532 = vector.broadcast %8 : vector<1x128xf32> to vector<2x128xf32>
    %533 = arith.mulf %531, %532 : vector<2x128xf32>
    %534 = vector.broadcast %11 : vector<1x128xf32> to vector<2x128xf32>
    %535 = arith.addf %533, %534 : vector<2x128xf32>
    %536 = vector.extract_strided_slice %535 {offsets = [0, 0], sizes = [2, 32], strides = [1, 1]} : vector<2x128xf32> to vector<2x32xf32>
    %537 = vector.extract_strided_slice %535 {offsets = [0, 32], sizes = [2, 32], strides = [1, 1]} : vector<2x128xf32> to vector<2x32xf32>
    %538 = vector.extract_strided_slice %535 {offsets = [0, 64], sizes = [2, 32], strides = [1, 1]} : vector<2x128xf32> to vector<2x32xf32>
    %539 = vector.extract_strided_slice %535 {offsets = [0, 96], sizes = [2, 32], strides = [1, 1]} : vector<2x128xf32> to vector<2x32xf32>
    %540 = arith.mulf %537, %467 : vector<2x32xf32>
    %541 = arith.mulf %536, %538 : vector<2x32xf32>
    %542 = arith.addf %540, %541 : vector<2x32xf32>
    %543 = math.tanh %542 : vector<2x32xf32>
    %544 = arith.mulf %539, %543 : vector<2x32xf32>
    %cst_86 = arith.constant dense<0.000000e+00> : vector<2x128xf32>
    %545 = tpu.matmul %544, %15, %cst_86 {dimension_numbers = #tpu.dot_dimension_numbers<[1], [0], [0], [1], [0, 0, 1, 1], [], []>} : vector<2x32xf32>, vector<32x128xf32>, vector<2x128xf32> -> vector<2x128xf32>
    %546 = vector.broadcast %23 : vector<1x128xf32> to vector<2x128xf32>
    %547 = arith.addf %545, %546 : vector<2x128xf32>
    %cst_87 = arith.constant dense<0.000000e+00> : vector<2x128xf32>
    %548 = tpu.matmul %488, %19, %cst_87 {dimension_numbers = #tpu.dot_dimension_numbers<[1], [0], [0], [1], [0, 0, 1, 1], [], []>} : vector<2x32xf32>, vector<32x128xf32>, vector<2x128xf32> -> vector<2x128xf32>
    %549 = arith.addf %547, %548 : vector<2x128xf32>
    %550 = math.tanh %549 : vector<2x128xf32>
    %551 = vector.broadcast %8 : vector<1x128xf32> to vector<2x128xf32>
    %552 = arith.mulf %550, %551 : vector<2x128xf32>
    %553 = vector.broadcast %11 : vector<1x128xf32> to vector<2x128xf32>
    %554 = arith.addf %552, %553 : vector<2x128xf32>
    %555 = vector.extract_strided_slice %554 {offsets = [0, 0], sizes = [2, 32], strides = [1, 1]} : vector<2x128xf32> to vector<2x32xf32>
    %556 = vector.extract_strided_slice %554 {offsets = [0, 32], sizes = [2, 32], strides = [1, 1]} : vector<2x128xf32> to vector<2x32xf32>
    %557 = vector.extract_strided_slice %554 {offsets = [0, 64], sizes = [2, 32], strides = [1, 1]} : vector<2x128xf32> to vector<2x32xf32>
    %558 = vector.extract_strided_slice %554 {offsets = [0, 96], sizes = [2, 32], strides = [1, 1]} : vector<2x128xf32> to vector<2x32xf32>
    %559 = arith.mulf %556, %486 : vector<2x32xf32>
    %560 = arith.mulf %555, %557 : vector<2x32xf32>
    %561 = arith.addf %559, %560 : vector<2x32xf32>
    %562 = math.tanh %561 : vector<2x32xf32>
    %563 = arith.mulf %558, %562 : vector<2x32xf32>
    %564 = vector.extract_strided_slice %30 {offsets = [0, 7, 0], sizes = [2, 1, 128], strides = [1, 1, 1]} : vector<2x8x128xf32> to vector<2x1x128xf32>
    %565 = vector.shape_cast %564 : vector<2x1x128xf32> to vector<2x128xf32>
    %cst_88 = arith.constant dense<0.000000e+00> : vector<2x128xf32>
    %566 = tpu.matmul %506, %16, %cst_88 {dimension_numbers = #tpu.dot_dimension_numbers<[1], [0], [0], [1], [0, 0, 1, 1], [], []>} : vector<2x32xf32>, vector<32x128xf32>, vector<2x128xf32> -> vector<2x128xf32>
    %567 = arith.addf %565, %566 : vector<2x128xf32>
    %568 = math.tanh %567 : vector<2x128xf32>
    %569 = vector.broadcast %8 : vector<1x128xf32> to vector<2x128xf32>
    %570 = arith.mulf %568, %569 : vector<2x128xf32>
    %571 = vector.broadcast %11 : vector<1x128xf32> to vector<2x128xf32>
    %572 = arith.addf %570, %571 : vector<2x128xf32>
    %573 = vector.extract_strided_slice %572 {offsets = [0, 0], sizes = [2, 32], strides = [1, 1]} : vector<2x128xf32> to vector<2x32xf32>
    %574 = vector.extract_strided_slice %572 {offsets = [0, 32], sizes = [2, 32], strides = [1, 1]} : vector<2x128xf32> to vector<2x32xf32>
    %575 = vector.extract_strided_slice %572 {offsets = [0, 64], sizes = [2, 32], strides = [1, 1]} : vector<2x128xf32> to vector<2x32xf32>
    %576 = vector.extract_strided_slice %572 {offsets = [0, 96], sizes = [2, 32], strides = [1, 1]} : vector<2x128xf32> to vector<2x32xf32>
    %577 = arith.mulf %574, %504 : vector<2x32xf32>
    %578 = arith.mulf %573, %575 : vector<2x32xf32>
    %579 = arith.addf %577, %578 : vector<2x32xf32>
    %580 = math.tanh %579 : vector<2x32xf32>
    %581 = arith.mulf %576, %580 : vector<2x32xf32>
    %cst_89 = arith.constant dense<0.000000e+00> : vector<2x128xf32>
    %582 = tpu.matmul %581, %13, %cst_89 {dimension_numbers = #tpu.dot_dimension_numbers<[1], [0], [0], [1], [0, 0, 1, 1], [], []>} : vector<2x32xf32>, vector<32x128xf32>, vector<2x128xf32> -> vector<2x128xf32>
    %583 = vector.broadcast %21 : vector<1x128xf32> to vector<2x128xf32>
    %584 = arith.addf %582, %583 : vector<2x128xf32>
    %cst_90 = arith.constant dense<0.000000e+00> : vector<2x128xf32>
    %585 = tpu.matmul %525, %17, %cst_90 {dimension_numbers = #tpu.dot_dimension_numbers<[1], [0], [0], [1], [0, 0, 1, 1], [], []>} : vector<2x32xf32>, vector<32x128xf32>, vector<2x128xf32> -> vector<2x128xf32>
    %586 = arith.addf %584, %585 : vector<2x128xf32>
    %587 = math.tanh %586 : vector<2x128xf32>
    %588 = vector.broadcast %8 : vector<1x128xf32> to vector<2x128xf32>
    %589 = arith.mulf %587, %588 : vector<2x128xf32>
    %590 = vector.broadcast %11 : vector<1x128xf32> to vector<2x128xf32>
    %591 = arith.addf %589, %590 : vector<2x128xf32>
    %592 = vector.extract_strided_slice %591 {offsets = [0, 0], sizes = [2, 32], strides = [1, 1]} : vector<2x128xf32> to vector<2x32xf32>
    %593 = vector.extract_strided_slice %591 {offsets = [0, 32], sizes = [2, 32], strides = [1, 1]} : vector<2x128xf32> to vector<2x32xf32>
    %594 = vector.extract_strided_slice %591 {offsets = [0, 64], sizes = [2, 32], strides = [1, 1]} : vector<2x128xf32> to vector<2x32xf32>
    %595 = vector.extract_strided_slice %591 {offsets = [0, 96], sizes = [2, 32], strides = [1, 1]} : vector<2x128xf32> to vector<2x32xf32>
    %596 = arith.mulf %593, %523 : vector<2x32xf32>
    %597 = arith.mulf %592, %594 : vector<2x32xf32>
    %598 = arith.addf %596, %597 : vector<2x32xf32>
    %599 = math.tanh %598 : vector<2x32xf32>
    %600 = arith.mulf %595, %599 : vector<2x32xf32>
    %cst_91 = arith.constant dense<0.000000e+00> : vector<2x128xf32>
    %601 = tpu.matmul %600, %14, %cst_91 {dimension_numbers = #tpu.dot_dimension_numbers<[1], [0], [0], [1], [0, 0, 1, 1], [], []>} : vector<2x32xf32>, vector<32x128xf32>, vector<2x128xf32> -> vector<2x128xf32>
    %602 = vector.broadcast %22 : vector<1x128xf32> to vector<2x128xf32>
    %603 = arith.addf %601, %602 : vector<2x128xf32>
    %cst_92 = arith.constant dense<0.000000e+00> : vector<2x128xf32>
    %604 = tpu.matmul %544, %18, %cst_92 {dimension_numbers = #tpu.dot_dimension_numbers<[1], [0], [0], [1], [0, 0, 1, 1], [], []>} : vector<2x32xf32>, vector<32x128xf32>, vector<2x128xf32> -> vector<2x128xf32>
    %605 = arith.addf %603, %604 : vector<2x128xf32>
    %606 = math.tanh %605 : vector<2x128xf32>
    %607 = vector.broadcast %8 : vector<1x128xf32> to vector<2x128xf32>
    %608 = arith.mulf %606, %607 : vector<2x128xf32>
    %609 = vector.broadcast %11 : vector<1x128xf32> to vector<2x128xf32>
    %610 = arith.addf %608, %609 : vector<2x128xf32>
    %611 = vector.extract_strided_slice %610 {offsets = [0, 0], sizes = [2, 32], strides = [1, 1]} : vector<2x128xf32> to vector<2x32xf32>
    %612 = vector.extract_strided_slice %610 {offsets = [0, 32], sizes = [2, 32], strides = [1, 1]} : vector<2x128xf32> to vector<2x32xf32>
    %613 = vector.extract_strided_slice %610 {offsets = [0, 64], sizes = [2, 32], strides = [1, 1]} : vector<2x128xf32> to vector<2x32xf32>
    %614 = vector.extract_strided_slice %610 {offsets = [0, 96], sizes = [2, 32], strides = [1, 1]} : vector<2x128xf32> to vector<2x32xf32>
    %615 = arith.mulf %612, %542 : vector<2x32xf32>
    %616 = arith.mulf %611, %613 : vector<2x32xf32>
    %617 = arith.addf %615, %616 : vector<2x32xf32>
    %618 = math.tanh %617 : vector<2x32xf32>
    %619 = arith.mulf %614, %618 : vector<2x32xf32>
    %cst_93 = arith.constant dense<0.000000e+00> : vector<2x128xf32>
    %620 = tpu.matmul %619, %15, %cst_93 {dimension_numbers = #tpu.dot_dimension_numbers<[1], [0], [0], [1], [0, 0, 1, 1], [], []>} : vector<2x32xf32>, vector<32x128xf32>, vector<2x128xf32> -> vector<2x128xf32>
    %621 = vector.broadcast %23 : vector<1x128xf32> to vector<2x128xf32>
    %622 = arith.addf %620, %621 : vector<2x128xf32>
    %cst_94 = arith.constant dense<0.000000e+00> : vector<2x128xf32>
    %623 = tpu.matmul %563, %19, %cst_94 {dimension_numbers = #tpu.dot_dimension_numbers<[1], [0], [0], [1], [0, 0, 1, 1], [], []>} : vector<2x32xf32>, vector<32x128xf32>, vector<2x128xf32> -> vector<2x128xf32>
    %624 = arith.addf %622, %623 : vector<2x128xf32>
    %625 = math.tanh %624 : vector<2x128xf32>
    %626 = vector.broadcast %8 : vector<1x128xf32> to vector<2x128xf32>
    %627 = arith.mulf %625, %626 : vector<2x128xf32>
    %628 = vector.broadcast %11 : vector<1x128xf32> to vector<2x128xf32>
    %629 = arith.addf %627, %628 : vector<2x128xf32>
    %630 = vector.extract_strided_slice %629 {offsets = [0, 0], sizes = [2, 32], strides = [1, 1]} : vector<2x128xf32> to vector<2x32xf32>
    %631 = vector.extract_strided_slice %629 {offsets = [0, 32], sizes = [2, 32], strides = [1, 1]} : vector<2x128xf32> to vector<2x32xf32>
    %632 = vector.extract_strided_slice %629 {offsets = [0, 64], sizes = [2, 32], strides = [1, 1]} : vector<2x128xf32> to vector<2x32xf32>
    %633 = vector.extract_strided_slice %629 {offsets = [0, 96], sizes = [2, 32], strides = [1, 1]} : vector<2x128xf32> to vector<2x32xf32>
    %634 = arith.mulf %631, %561 : vector<2x32xf32>
    %635 = arith.mulf %630, %632 : vector<2x32xf32>
    %636 = arith.addf %634, %635 : vector<2x32xf32>
    %637 = math.tanh %636 : vector<2x32xf32>
    %638 = arith.mulf %633, %637 : vector<2x32xf32>
    %c0_95 = arith.constant 0 : index
    %c0_96 = arith.constant 0 : index
    %639 = vector.load %arg14[%c0_95, %c0_96] : memref<32x256xf32, #tpu.memory_space<vmem>>, vector<32x256xf32>
    %cst_97 = arith.constant dense<0.000000e+00> : vector<2x256xf32>
    %640 = tpu.matmul %638, %639, %cst_97 {dimension_numbers = #tpu.dot_dimension_numbers<[1], [0], [0], [1], [0, 0, 1, 1], [], []>} : vector<2x32xf32>, vector<32x256xf32>, vector<2x256xf32> -> vector<2x256xf32>
    %c0_98 = arith.constant 0 : index
    %c0_99 = arith.constant 0 : index
    %641 = vector.load %arg15[%c0_98, %c0_99] : memref<1x256xf32, #tpu.memory_space<vmem>>, vector<1x256xf32>
    %642 = vector.broadcast %641 : vector<1x256xf32> to vector<2x256xf32>
    %643 = arith.addf %640, %642 : vector<2x256xf32>
    %c0_100 = arith.constant 0 : index
    %c0_101 = arith.constant 0 : index
    %644 = vector.load %arg16[%c0_100, %c0_101] : memref<1x256xf32, #tpu.memory_space<vmem>>, vector<1x256xf32>
    %645 = vector.broadcast %644 : vector<1x256xf32> to vector<2x256xf32>
    %646 = arith.mulf %643, %645 : vector<2x256xf32>
    %c0_102 = arith.constant 0 : index
    %c0_103 = arith.constant 0 : index
    %647 = vector.load %arg17[%c0_102, %c0_103] : memref<1x256xf32, #tpu.memory_space<vmem>>, vector<1x256xf32>
    %648 = vector.broadcast %647 : vector<1x256xf32> to vector<2x256xf32>
    %649 = arith.addf %646, %648 : vector<2x256xf32>
    %cst_104 = arith.constant 0.000000e+00 : f32
    %650 = vector.broadcast %cst_104 : f32 to vector<2x256xf32>
    %651 = arith.maximumf %649, %650 : vector<2x256xf32>
    %c0_105 = arith.constant 0 : index
    %c0_106 = arith.constant 0 : index
    %652 = vector.load %arg18[%c0_105, %c0_106] : memref<256x128xf32, #tpu.memory_space<vmem>>, vector<256x128xf32>
    %cst_107 = arith.constant dense<0.000000e+00> : vector<2x128xf32>
    %653 = tpu.matmul %651, %652, %cst_107 {dimension_numbers = #tpu.dot_dimension_numbers<[1], [0], [0], [1], [0, 0, 1, 1], [], []>} : vector<2x256xf32>, vector<256x128xf32>, vector<2x128xf32> -> vector<2x128xf32>
    %c0_108 = arith.constant 0 : index
    %c0_109 = arith.constant 0 : index
    %654 = vector.load %arg19[%c0_108, %c0_109] : memref<1x128xf32, #tpu.memory_space<vmem>>, vector<1x128xf32>
    %655 = vector.broadcast %654 : vector<1x128xf32> to vector<2x128xf32>
    %656 = arith.addf %653, %655 : vector<2x128xf32>
    %c0_110 = arith.constant 0 : index
    %c0_111 = arith.constant 0 : index
    %657 = vector.load %arg20[%c0_110, %c0_111] : memref<1x128xf32, #tpu.memory_space<vmem>>, vector<1x128xf32>
    %658 = vector.broadcast %657 : vector<1x128xf32> to vector<2x128xf32>
    %659 = arith.mulf %656, %658 : vector<2x128xf32>
    %c0_112 = arith.constant 0 : index
    %c0_113 = arith.constant 0 : index
    %660 = vector.load %arg21[%c0_112, %c0_113] : memref<1x128xf32, #tpu.memory_space<vmem>>, vector<1x128xf32>
    %661 = vector.broadcast %660 : vector<1x128xf32> to vector<2x128xf32>
    %662 = arith.addf %659, %661 : vector<2x128xf32>
    %cst_114 = arith.constant 0.000000e+00 : f32
    %663 = vector.broadcast %cst_114 : f32 to vector<2x128xf32>
    %664 = arith.maximumf %662, %663 : vector<2x128xf32>
    %c0_115 = arith.constant 0 : index
    %c0_116 = arith.constant 0 : index
    %665 = vector.load %arg22[%c0_115, %c0_116] : memref<1x128xf32, #tpu.memory_space<vmem>>, vector<1x128xf32>
    %666 = vector.broadcast %665 : vector<1x128xf32> to vector<2x128xf32>
    %667 = arith.mulf %664, %666 : vector<2x128xf32>
    %cst_117 = arith.constant dense<0.000000e+00> : vector<2xf32>
    %668 = vector.multi_reduction <add>, %667, %cst_117 [1] : vector<2x128xf32> to vector<2xf32>
    %669 = vector.shape_cast %668 : vector<2xf32> to vector<2x1xf32>
    %c0_118 = arith.constant 0 : index
    %c0_119 = arith.constant 0 : index
    %670 = vector.load %arg23[%c0_118, %c0_119] : memref<1x1xf32, #tpu.memory_space<vmem>>, vector<1x1xf32>
    %671 = vector.broadcast %670 : vector<1x1xf32> to vector<2x1xf32>
    %672 = arith.addf %669, %671 : vector<2x1xf32>
    %c0_120 = arith.constant 0 : index
    %c0_121 = arith.constant 0 : index
    %c0_122 = arith.constant 0 : index
    %673 = vector.load %arg24[%c0_120, %c0_121, %c0_122] : memref<1x2x1xf32, #tpu.memory_space<vmem>>, vector<1x2x1xf32>
    %674 = vector.shape_cast %673 : vector<1x2x1xf32> to vector<2x1xf32>
    %675 = vector.shape_cast %672 : vector<2x1xf32> to vector<1x2x1xf32>
    tpu.vector_store %arg24[%c0_120, %c0_121, %c0_122], %675 {strides = array<i32>} : memref<1x2x1xf32, #tpu.memory_space<vmem>>, vector<1x2x1xf32>,
    return
  }
  func.func @transform_0(%arg0: i32) -> (i32, i32, i32, i32) {
    %c0_i32 = arith.constant 0 : i32
    %c0_i32_0 = arith.constant 0 : i32
    %c0_i32_1 = arith.constant 0 : i32
    %c0_i32_2 = arith.constant 0 : i32
    return %arg0, %c0_i32, %c0_i32_0, %c0_i32_1 : i32, i32, i32, i32
  }
  func.func @transform_1(%arg0: i32) -> (i32, i32) {
    %c0_i32 = arith.constant 0 : i32
    %c0_i32_0 = arith.constant 0 : i32
    %c0_i32_1 = arith.constant 0 : i32
    return %c0_i32, %c0_i32_0 : i32, i32
  }
  func.func @transform_2(%arg0: i32) -> (i32, i32) {
    %c0_i32 = arith.constant 0 : i32
    %c0_i32_0 = arith.constant 0 : i32
    %c0_i32_1 = arith.constant 0 : i32
    return %c0_i32, %c0_i32_0 : i32, i32
  }
  func.func @transform_3(%arg0: i32) -> (i32, i32) {
    %c0_i32 = arith.constant 0 : i32
    %c0_i32_0 = arith.constant 0 : i32
    %c0_i32_1 = arith.constant 0 : i32
    return %c0_i32, %c0_i32_0 : i32, i32
  }
  func.func @transform_4(%arg0: i32) -> (i32, i32) {
    %c0_i32 = arith.constant 0 : i32
    %c0_i32_0 = arith.constant 0 : i32
    %c0_i32_1 = arith.constant 0 : i32
    return %c0_i32, %c0_i32_0 : i32, i32
  }
  func.func @transform_5(%arg0: i32) -> (i32, i32) {
    %c0_i32 = arith.constant 0 : i32
    %c0_i32_0 = arith.constant 0 : i32
    %c0_i32_1 = arith.constant 0 : i32
    return %c0_i32, %c0_i32_0 : i32, i32
  }
  func.func @transform_6(%arg0: i32) -> (i32, i32) {
    %c0_i32 = arith.constant 0 : i32
    %c0_i32_0 = arith.constant 0 : i32
    %c0_i32_1 = arith.constant 0 : i32
    return %c0_i32, %c0_i32_0 : i32, i32
  }
  func.func @transform_7(%arg0: i32) -> (i32, i32) {
    %c0_i32 = arith.constant 0 : i32
    %c0_i32_0 = arith.constant 0 : i32
    %c0_i32_1 = arith.constant 0 : i32
    return %c0_i32, %c0_i32_0 : i32, i32
  }
  func.func @transform_8(%arg0: i32) -> (i32, i32) {
    %c0_i32 = arith.constant 0 : i32
    %c0_i32_0 = arith.constant 0 : i32
    %c0_i32_1 = arith.constant 0 : i32
    return %c0_i32, %c0_i32_0 : i32, i32
  }
  func.func @transform_9(%arg0: i32) -> (i32, i32) {
    %c0_i32 = arith.constant 0 : i32
    %c0_i32_0 = arith.constant 0 : i32
    %c0_i32_1 = arith.constant 0 : i32
    return %c0_i32, %c0_i32_0 : i32, i32
  }
  func.func @transform_10(%arg0: i32) -> (i32, i32) {
    %c0_i32 = arith.constant 0 : i32
    %c0_i32_0 = arith.constant 0 : i32
    %c0_i32_1 = arith.constant 0 : i32
    return %c0_i32, %c0_i32_0 : i32, i32
  }
  func.func @transform_11(%arg0: i32) -> (i32, i32) {
    %c0_i32 = arith.constant 0 : i32
    %c0_i32_0 = arith.constant 0 : i32
    %c0_i32_1 = arith.constant 0 : i32
    return %c0_i32, %c0_i32_0 : i32, i32
  }
  func.func @transform_12(%arg0: i32) -> (i32, i32) {
    %c0_i32 = arith.constant 0 : i32
    %c0_i32_0 = arith.constant 0 : i32
    %c0_i32_1 = arith.constant 0 : i32
    return %c0_i32, %c0_i32_0 : i32, i32
  }
  func.func @transform_13(%arg0: i32) -> (i32, i32) {
    %c0_i32 = arith.constant 0 : i32
    %c0_i32_0 = arith.constant 0 : i32
    %c0_i32_1 = arith.constant 0 : i32
    return %c0_i32, %c0_i32_0 : i32, i32
  }
  func.func @transform_14(%arg0: i32) -> (i32, i32) {
    %c0_i32 = arith.constant 0 : i32
    %c0_i32_0 = arith.constant 0 : i32
    %c0_i32_1 = arith.constant 0 : i32
    return %c0_i32, %c0_i32_0 : i32, i32
  }
  func.func @transform_15(%arg0: i32) -> (i32, i32) {
    %c0_i32 = arith.constant 0 : i32
    %c0_i32_0 = arith.constant 0 : i32
    %c0_i32_1 = arith.constant 0 : i32
    return %c0_i32, %c0_i32_0 : i32, i32
  }
  func.func @transform_16(%arg0: i32) -> (i32, i32) {
    %c0_i32 = arith.constant 0 : i32
    %c0_i32_0 = arith.constant 0 : i32
    %c0_i32_1 = arith.constant 0 : i32
    return %c0_i32, %c0_i32_0 : i32, i32
  }
  func.func @transform_17(%arg0: i32) -> (i32, i32) {
    %c0_i32 = arith.constant 0 : i32
    %c0_i32_0 = arith.constant 0 : i32
    %c0_i32_1 = arith.constant 0 : i32
    return %c0_i32, %c0_i32_0 : i32, i32
  }
  func.func @transform_18(%arg0: i32) -> (i32, i32) {
    %c0_i32 = arith.constant 0 : i32
    %c0_i32_0 = arith.constant 0 : i32
    %c0_i32_1 = arith.constant 0 : i32
    return %c0_i32, %c0_i32_0 : i32, i32
  }
  func.func @transform_19(%arg0: i32) -> (i32, i32) {
    %c0_i32 = arith.constant 0 : i32
    %c0_i32_0 = arith.constant 0 : i32
    %c0_i32_1 = arith.constant 0 : i32
    return %c0_i32, %c0_i32_0 : i32, i32
  }
  func.func @transform_20(%arg0: i32) -> (i32, i32) {
    %c0_i32 = arith.constant 0 : i32
    %c0_i32_0 = arith.constant 0 : i32
    %c0_i32_1 = arith.constant 0 : i32
    return %c0_i32, %c0_i32_0 : i32, i32
  }
  func.func @transform_21(%arg0: i32) -> (i32, i32) {
    %c0_i32 = arith.constant 0 : i32
    %c0_i32_0 = arith.constant 0 : i32
    %c0_i32_1 = arith.constant 0 : i32
    return %c0_i32, %c0_i32_0 : i32, i32
  }
  func.func @transform_22(%arg0: i32) -> (i32, i32) {
    %c0_i32 = arith.constant 0 : i32
    %c0_i32_0 = arith.constant 0 : i32
    %c0_i32_1 = arith.constant 0 : i32
    return %c0_i32, %c0_i32_0 : i32, i32
  }
  func.func @transform_23(%arg0: i32) -> (i32, i32, i32) {
    %c0_i32 = arith.constant 0 : i32
    %c0_i32_0 = arith.constant 0 : i32
    %c0_i32_1 = arith.constant 0 : i32
    return %arg0, %c0_i32, %c0_i32_0 : i32, i32, i32
  }
}

</mosaic_0001>

<bundles_post_ra>
// kernel: lstm2_forward.1
= control target key start
LH: loop header
LB: loop body
LE: loop exit
PB: predicated region body
PF: predicated region fallthrough
CT: control target
= control target key end

     0   :  { %s9201_s0 = inlined_call_operand.hbm [shape: f32[1,2,8,18], index: 0, kind: input, shape index: {}]   ;;  %s9202_s1 = inlined_call_operand.hbm [shape: f32[18,128], index: 1, kind: input, shape index: {}]   ;;  %s9203_s2 = inlined_call_operand.vmem [shape: f32[32,128], index: 2, kind: input, shape index: {}]   ;;  %s9204_s3 = inlined_call_operand.hbm [shape: f32[1,128], index: 3, kind: input, shape index: {}]   ;;  %s9205_s4 = inlined_call_operand.vmem [shape: f32[32,128], index: 4, kind: input, shape index: {}]   ;;  %s9206_s5 = inlined_call_operand.hbm [shape: f32[32,128], index: 5, kind: input, shape index: {}]   ;;  %s9207_s6 = inlined_call_operand.hbm [shape: f32[1,128], index: 6, kind: input, shape index: {}]   ;;  %s9208_s7 = inlined_call_operand.hbm [shape: f32[32,128], index: 7, kind: input, shape index: {}]   ;;  %s9209_s8 = inlined_call_operand.hbm [shape: f32[32,128], index: 8, kind: input, shape index: {}]   ;;  %s9210_s9 = inlined_call_operand.vmem [shape: f32[1,128], index: 9, kind: input, shape index: {}]   ;;  %s9211_s10 = inlined_call_operand.hbm [shape: f32[32,128], index: 10, kind: input, shape index: {}]   ;;  %s9212_s11 = inlined_call_operand.hbm [shape: f32[32,128], index: 11, kind: input, shape index: {}]   ;;  %s9213_s12 = inlined_call_operand.vmem [shape: f32[1,128], index: 12, kind: input, shape index: {}]   ;;  %s9214_s13 = inlined_call_operand.hbm [shape: f32[32,256], index: 13, kind: input, shape index: {}]   ;;  %s9215_s14 = inlined_call_operand.hbm [shape: f32[1,256], index: 14, kind: input, shape index: {}]   ;;  %s9216_s15 = inlined_call_operand.hbm [shape: f32[1,256], index: 15, kind: input, shape index: {}]   ;;  %s9217_s16 = inlined_call_operand.hbm [shape: f32[1,256], index: 16, kind: input, shape index: {}]   ;;  %s9218_s17 = inlined_call_operand.hbm [shape: f32[256,128], index: 17, kind: input, shape index: {}]   ;;  %s9219_s18 = inlined_call_operand.hbm [shape: f32[1,128], index: 18, kind: input, shape index: {}]   ;;  %s9220_s19 = inlined_call_operand.hbm [shape: f32[1,128], index: 19, kind: input, shape index: {}]   ;;  %s9221_s20 = inlined_call_operand.hbm [shape: f32[1,128], index: 20, kind: input, shape index: {}]   ;;  %s9222_s21 = inlined_call_operand.hbm [shape: f32[1,128], index: 21, kind: input, shape index: {}]   ;;  %s9223_s22 = inlined_call_operand.<no memory space> [shape: f32[1,1], index: 22, kind: input, shape index: {}]   ;;  %s9224_s23 = inlined_call_operand.vmem [shape: f32[1,2,1], index: 23, kind: output, shape index: {}]  }
   0x1   :  { %9234 = sst [smem:[#allocation41_spill]] %s9201_s0  ;;  %v28_v0 = vstv %s9223_s22 }
   0x2   :  { %9235 = sst [smem:[#allocation42_spill]] %s9202_s1  ;;  %29 = vst [vmem:[#allocation2] sm:$0x1] %v28_v0 }
   0x3   :  { %9236 = sst [smem:[#allocation43_spill]] %s9203_s2 }
   0x4   :  { %9237 = sst [smem:[#allocation44_spill]] %s9204_s3 }
   0x5   :  { %9238 = sst [smem:[#allocation45_spill]] %s9205_s4 }
   0x6   :  { %9239 = sst [smem:[#allocation46_spill]] %s9206_s5 }
   0x7   :  { %9240 = sst [smem:[#allocation47_spill]] %s9207_s6 }
   0x8   :  { %9241 = sst [smem:[#allocation48_spill]] %s9208_s7 }
   0x9   :  { %9242 = sst [smem:[#allocation49_spill]] %s9213_s12 }
   0xa   :  { %9243 = sst [smem:[#allocation50_spill]] %s9224_s23 }
   0xb   :  { %30 = vsyncpa [#allocation4], 0 }
   0xc   :  { %31 = vsyncpa [#allocation6], 0 }
   0xd   :  { %32 = vsyncpa [#allocation9], 0 }
   0xe   :  { %33 = vsyncpa [#allocation12], 0 }
   0xf   :  { %34 = vsyncpa [#allocation15], 0 }
  0x10   :  { %35 = vsyncpa [#allocation18], 0 }
  0x11   :  { %36 = vsyncpa [#allocation21], 0 }
  0x12   :  { %37 = vsyncpa [#allocation24], 0 }
  0x13   :  { %38 = vsyncpa [#allocation27], 0 }
  0x14   :  { %39 = vsyncpa [#allocation30], 0  ;;  %s7841_s24 = smov [#allocation5]   ;;  %s7842_s5 = smov [#allocation8]  }
  0x15   :  { %s57_s25 = sshll.u32 %s7841_s24, 4  ;;  %s83_s1 = sshll.u32 %s7842_s5, 4  ;;  %s58_s25 = int_to_ptr.vmem [resolvable:$true] %s57_s25  ;;  %s7992_s1 = int_to_ptr.vmem [resolvable:$true] %s83_s1 }
  0x16   :  { %s9244_s2 = sld [smem:[#allocation42_spill]] }
  0x1c   :  { %s7425_s6 = scalar_lea.hbm %s9244_s2, 384 }
  0x1d   :  { %p7426_p0 = scmp.ne.s32.totalorder %s9244_s2, %s7425_s6  ;;  %p7429_p1 = scmp.lt.u32.totalorder %s7425_s6, %s9244_s2 }
  0x1f   :  { %p7431_p2 = pnand %p7429_p1, %p7426_p0 }
  0x21   :  { %7434 = shalt.err (!%p7431_p2)
}
  0x22   :  { %s7435_s3 = scalar_lea.vmem %s58_s25, 384  ;;  %p7440_p4 = scmp.lt.s32.totalorder %s58_s25, %s58_s25 }
  0x23   :  { %p7436_p3 = scmp.ne.s32.totalorder %s58_s25, %s7435_s3  ;;  %p7441_p5 = scmp.lt.s32.totalorder %s7435_s3, %s7435_s3 }
  0x25   :  { %p7442_p6 = por %p7441_p5, %p7440_p4 }
  0x27   :  { %p7443_p7 = pnand %p7442_p6, %p7436_p3 }
  0x29   :  { %7446 = shalt.err (!%p7443_p7)
}
  0x2a   :  { %s7843_s0 = smov 128   ;;  %s7844_s4 = smov 8  }
  0x2b   :  { %63 = dma.hbm_to_vmem [thread:$0]  %s9244_s2, 384, %s58_s25, [#allocation6], %s7843_s0, %s7843_s0, %s7844_s4  }
  0x2c   :  { %s9245_s22 = sld [smem:[#allocation46_spill]] }
  0x32   :  { %s7447_s6 = scalar_lea.hbm %s9245_s22, 512 }
  0x33   :  { %p7448_p8 = scmp.ne.s32.totalorder %s9245_s22, %s7447_s6  ;;  %p7451_p9 = scmp.lt.u32.totalorder %s7447_s6, %s9245_s22 }
  0x35   :  { %p7453_p10 = pnand %p7451_p9, %p7448_p8 }
  0x37   :  { %7456 = shalt.err (!%p7453_p10)
}
  0x38   :  { %s7457_s3 = scalar_lea.vmem %s7992_s1, 512  ;;  %p7462_p12 = scmp.lt.s32.totalorder %s7992_s1, %s7992_s1 }
  0x39   :  { %p7458_p11 = scmp.ne.s32.totalorder %s7992_s1, %s7457_s3  ;;  %p7463_p13 = scmp.lt.s32.totalorder %s7457_s3, %s7457_s3 }
  0x3b   :  { %p7464_p0 = por %p7463_p13, %p7462_p12 }
  0x3d   :  { %p7465_p1 = pnand %p7464_p0, %p7458_p11 }
  0x3f   :  { %7468 = shalt.err (!%p7465_p1)
}
  0x40   :  { %89 = dma.hbm_to_vmem [thread:$0]  %s9245_s22, 512, %s7992_s1, [#allocation9], %s7843_s0, %s7843_s0, %s7844_s4  }
  0x41   :  { %s7845_s30 = smov [#allocation11]   ;;  %s7846_s5 = smov [#allocation14]  }
  0x42   :  { %s105_s24 = sshll.u32 %s7845_s30, 4  ;;  %s131_s26 = sshll.u32 %s7846_s5, 4  ;;  %s106_s24 = int_to_ptr.vmem [resolvable:$true] %s105_s24  ;;  %s8029_s26 = int_to_ptr.vmem [resolvable:$true] %s131_s26 }
  0x43   :  { %s9246_s7 = sld [smem:[#allocation48_spill]] }
  0x49   :  { %s7469_s28 = scalar_lea.hbm %s9246_s7, 512 }
  0x4a   :  { %p7470_p2 = scmp.ne.s32.totalorder %s9246_s7, %s7469_s28  ;;  %p7473_p3 = scmp.lt.u32.totalorder %s7469_s28, %s9246_s7 }
  0x4c   :  { %p7475_p4 = pnand %p7473_p3, %p7470_p2 }
  0x4e   :  { %7478 = shalt.err (!%p7475_p4)
}
  0x4f   :  { %s7479_s1 = scalar_lea.vmem %s106_s24, 512  ;;  %p7484_p6 = scmp.lt.s32.totalorder %s106_s24, %s106_s24 }
  0x50   :  { %p7480_p5 = scmp.ne.s32.totalorder %s106_s24, %s7479_s1  ;;  %p7485_p7 = scmp.lt.s32.totalorder %s7479_s1, %s7479_s1 }
  0x52   :  { %p7486_p8 = por %p7485_p7, %p7484_p6 }
  0x54   :  { %p7487_p9 = pnand %p7486_p8, %p7480_p5 }
  0x56   :  { %7490 = shalt.err (!%p7487_p9)
}
  0x57   :  { %111 = dma.hbm_to_vmem [thread:$0]  %s9246_s7, 512, %s106_s24, [#allocation12], %s7843_s0, %s7843_s0, %s7844_s4  }
  0x58   :  { %s7491_s12 = scalar_lea.hbm %s9211_s10, 512 }
  0x59   :  { %p7492_p10 = scmp.ne.s32.totalorder %s9211_s10, %s7491_s12  ;;  %p7495_p11 = scmp.lt.u32.totalorder %s7491_s12, %s9211_s10 }
  0x5b   :  { %p7497_p12 = pnand %p7495_p11, %p7492_p10 }
  0x5d   :  { %7500 = shalt.err (!%p7497_p12)
}
  0x5e   :  { %s7501_s28 = scalar_lea.vmem %s8029_s26, 512  ;;  %p7506_p0 = scmp.lt.s32.totalorder %s8029_s26, %s8029_s26 }
  0x5f   :  { %p7502_p13 = scmp.ne.s32.totalorder %s8029_s26, %s7501_s28  ;;  %p7507_p1 = scmp.lt.s32.totalorder %s7501_s28, %s7501_s28 }
  0x61   :  { %p7508_p2 = por %p7507_p1, %p7506_p0 }
  0x63   :  { %p7509_p3 = pnand %p7508_p2, %p7502_p13 }
  0x65   :  { %7512 = shalt.err (!%p7509_p3)
}
  0x66   :  { %137 = dma.hbm_to_vmem [thread:$0]  %s9211_s10, 512, %s8029_s26, [#allocation15], %s7843_s0, %s7843_s0, %s7844_s4  }
  0x67   :  { %s7847_s29 = smov [#allocation17]   ;;  %s7513_s25 = scalar_lea.hbm %s9214_s13, 1024 }
  0x68   :  { %s157_s3 = sshll.u32 %s7847_s29, 4  ;;  %p7514_p4 = scmp.ne.s32.totalorder %s9214_s13, %s7513_s25  ;;  %s158_s3 = int_to_ptr.vmem [resolvable:$true] %s157_s3 }
  0x69   :  { %p7517_p5 = scmp.lt.u32.totalorder %s7513_s25, %s9214_s13 }
  0x6b   :  { %p7519_p6 = pnand %p7517_p5, %p7514_p4 }
  0x6d   :  { %7522 = shalt.err (!%p7519_p6)
}
  0x6e   :  { %s7523_s5 = scalar_lea.vmem %s158_s3, 1024  ;;  %p7528_p8 = scmp.lt.s32.totalorder %s158_s3, %s158_s3 }
  0x6f   :  { %p7524_p7 = scmp.ne.s32.totalorder %s158_s3, %s7523_s5  ;;  %p7529_p9 = scmp.lt.s32.totalorder %s7523_s5, %s7523_s5 }
  0x71   :  { %p7530_p10 = por %p7529_p9, %p7528_p8 }
  0x73   :  { %p7531_p11 = pnand %p7530_p10, %p7524_p7 }
  0x75   :  { %7534 = shalt.err (!%p7531_p11)
}
  0x76   :  { %s7848_s10 = smov 256   ;;  %s7849_s26 = smov 16  }
  0x77   :  { %163 = dma.hbm_to_vmem [thread:$0]  %s9214_s13, 1024, %s158_s3, [#allocation18], %s7848_s10, %s7848_s10, %s7849_s26  }
  0x78   :  { %s7850_s28 = smov [#allocation20]   ;;  %s7851_s7 = smov [#allocation23]  }
  0x79   :  { %s180_s24 = sshll.u32 %s7850_s28, 4  ;;  %s199_s29 = sshll.u32 %s7851_s7, 4  ;;  %s181_s24 = int_to_ptr.vmem [resolvable:$true] %s180_s24  ;;  %s200_s29 = int_to_ptr.vmem [resolvable:$true] %s199_s29 }
  0x7a   :  { %s7535_s25 = scalar_lea.hbm %s9216_s15, 32 }
  0x7b   :  { %p7536_p12 = scmp.ne.s32.totalorder %s9216_s15, %s7535_s25  ;;  %p7539_p13 = scmp.lt.u32.totalorder %s7535_s25, %s9216_s15 }
  0x7d   :  { %p7541_p0 = pnand %p7539_p13, %p7536_p12 }
  0x7f   :  { %7544 = shalt.err (!%p7541_p0)
}
  0x80   :  { %s7545_s13 = scalar_lea.vmem %s181_s24, 32  ;;  %p7550_p2 = scmp.lt.s32.totalorder %s181_s24, %s181_s24 }
  0x81   :  { %p7546_p1 = scmp.ne.s32.totalorder %s181_s24, %s7545_s13  ;;  %p7551_p3 = scmp.lt.s32.totalorder %s7545_s13, %s7545_s13 }
  0x83   :  { %p7552_p4 = por %p7551_p3, %p7550_p2 }
  0x85   :  { %p7553_p5 = pnand %p7552_p4, %p7546_p1 }
  0x87   :  { %7556 = shalt.err (!%p7553_p5)
}
  0x88   :  { %183 = dma.hbm_to_vmem [thread:$0]  %s9216_s15, 32, %s181_s24, [#allocation21]  }
  0x89   :  { %s7557_s6 = scalar_lea.hbm %s9218_s17, 4096 }
  0x8a   :  { %p7558_p6 = scmp.ne.s32.totalorder %s9218_s17, %s7557_s6  ;;  %p7561_p7 = scmp.lt.u32.totalorder %s7557_s6, %s9218_s17 }
  0x8c   :  { %p7563_p8 = pnand %p7561_p7, %p7558_p6 }
  0x8e   :  { %7566 = shalt.err (!%p7563_p8)
}
  0x8f   :  { %s7567_s22 = scalar_lea.vmem %s200_s29, 4096  ;;  %p7572_p10 = scmp.lt.s32.totalorder %s200_s29, %s200_s29 }
  0x90   :  { %p7568_p9 = scmp.ne.s32.totalorder %s200_s29, %s7567_s22  ;;  %p7573_p11 = scmp.lt.s32.totalorder %s7567_s22, %s7567_s22 }
  0x92   :  { %p7574_p12 = por %p7573_p11, %p7572_p10 }
  0x94   :  { %p7575_p13 = pnand %p7574_p12, %p7568_p9 }
  0x96   :  { %7578 = shalt.err (!%p7575_p13)
}
  0x97   :  { %205 = dma.hbm_to_vmem [thread:$0]  %s9218_s17, 4096, %s200_s29, [#allocation24], %s7843_s0, %s7843_s0, %s7844_s4  }
  0x98   :  { %s7852_s25 = smov [#allocation26]   ;;  %s7853_s30 = smov [#allocation3]  }
  0x99   :  { %s222_s2 = sshll.u32 %s7852_s25, 4  ;;  %s45_s12 = sshll.u32 %s7853_s30, 4  ;;  %s223_s2 = int_to_ptr.vmem [resolvable:$true] %s222_s2  ;;  %s46_s12 = int_to_ptr.vmem [resolvable:$true] %s45_s12 }
  0x9a   :  { %s7579_s3 = scalar_lea.hbm %s9220_s19, 16 }
  0x9b   :  { %p7580_p0 = scmp.ne.s32.totalorder %s9220_s19, %s7579_s3  ;;  %p7583_p1 = scmp.lt.u32.totalorder %s7579_s3, %s9220_s19 }
  0x9d   :  { %p7585_p2 = pnand %p7583_p1, %p7580_p0 }
  0x9f   :  { %7588 = shalt.err (!%p7585_p2)
}
  0xa0   :  { %s7589_s17 = scalar_lea.vmem %s223_s2, 16  ;;  %s7593_s29 = scalar_lea.vmem %s223_s2, 32 }
  0xa1   :  { %p7590_p3 = scmp.ne.s32.totalorder %s223_s2, %s7589_s17  ;;  %p7594_p4 = scmp.lt.s32.totalorder %s223_s2, %s223_s2 }
  0xa2   :  { %p7595_p5 = scmp.lt.s32.totalorder %s7593_s29, %s7589_s17 }
  0xa4   :  { %p7596_p6 = por %p7595_p5, %p7594_p4 }
  0xa6   :  { %p7597_p7 = pnand %p7596_p6, %p7590_p3 }
  0xa8   :  { %7600 = shalt.err (!%p7597_p7)
}
  0xa9   :  { %225 = dma.hbm_to_vmem [thread:$0]  %s9220_s19, 16, %s223_s2, [#allocation27]  }
  0xaa   :  { %s9247_s22 = sld [smem:[#allocation41_spill]] }
  0xb0   :  { %s7601_s15 = scalar_lea.hbm %s9247_s22, 256 }
  0xb1   :  { %p7602_p8 = scmp.ne.s32.totalorder %s9247_s22, %s7601_s15  ;;  %p7605_p9 = scmp.lt.u32.totalorder %s7601_s15, %s9247_s22 }
  0xb3   :  { %p7607_p10 = pnand %p7605_p9, %p7602_p8 }
  0xb5   :  { %7610 = shalt.err (!%p7607_p10)
}
  0xb6   :  { %s7611_s13 = scalar_lea.vmem %s46_s12, 256  ;;  %p7616_p12 = scmp.lt.s32.totalorder %s46_s12, %s46_s12 }
  0xb7   :  { %p7612_p11 = scmp.ne.s32.totalorder %s46_s12, %s7611_s13  ;;  %p7617_p13 = scmp.lt.s32.totalorder %s7611_s13, %s7611_s13 }
  0xb9   :  { %p7618_p0 = por %p7617_p13, %p7616_p12 }
  0xbb   :  { %p7619_p1 = pnand %p7618_p0, %p7612_p11 }
  0xbd   :  { %7622 = shalt.err (!%p7619_p1)
}
  0xbe   :  { %51 = dma.hbm_to_vmem [thread:$0]  %s9247_s22, 256, %s46_s12, [#allocation4], %s7843_s0, %s7843_s0, %s7844_s4  }
  0xbf   :  { %s7854_s3 = smov [#allocation7]   ;;  %s7855_s10 = smov [#allocation10]  }
  0xc0   :  { %s72_s5 = sshll.u32 %s7854_s3, 4  ;;  %s96_s26 = sshll.u32 %s7855_s10, 4  ;;  %s73_s5 = int_to_ptr.vmem [resolvable:$true] %s72_s5  ;;  %s97_s26 = int_to_ptr.vmem [resolvable:$true] %s96_s26 }
  0xc1   :  { %s9248_s29 = sld [smem:[#allocation44_spill]] }
  0xc7   :  { %s7623_s27 = scalar_lea.hbm %s9248_s29, 16 }
  0xc8   :  { %p7624_p2 = scmp.ne.s32.totalorder %s9248_s29, %s7623_s27  ;;  %p7627_p3 = scmp.lt.u32.totalorder %s7623_s27, %s9248_s29 }
  0xca   :  { %p7629_p4 = pnand %p7627_p3, %p7624_p2 }
  0xcc   :  { %7632 = shalt.err (!%p7629_p4)
}
  0xcd   :  { %s7633_s12 = scalar_lea.vmem %s73_s5, 16  ;;  %s7637_s22 = scalar_lea.vmem %s73_s5, 32 }
  0xce   :  { %p7634_p5 = scmp.ne.s32.totalorder %s73_s5, %s7633_s12  ;;  %p7638_p6 = scmp.lt.s32.totalorder %s73_s5, %s73_s5 }
  0xcf   :  { %p7639_p7 = scmp.lt.s32.totalorder %s7637_s22, %s7633_s12 }
  0xd1   :  { %p7640_p8 = por %p7639_p7, %p7638_p6 }
  0xd3   :  { %p7641_p9 = pnand %p7640_p8, %p7634_p5 }
  0xd5   :  { %7644 = shalt.err (!%p7641_p9)
}
  0xd6   :  { %75 = dma.hbm_to_vmem [thread:$0]  %s9248_s29, 16, %s73_s5, [#allocation6]  }
  0xd7   :  { %s9249_s13 = sld [smem:[#allocation47_spill]] }
  0xdd   :  { %s7645_s19 = scalar_lea.hbm %s9249_s13, 16 }
  0xde   :  { %p7646_p10 = scmp.ne.s32.totalorder %s9249_s13, %s7645_s19  ;;  %p7649_p11 = scmp.lt.u32.totalorder %s7645_s19, %s9249_s13 }
  0xe0   :  { %p7651_p12 = pnand %p7649_p11, %p7646_p10 }
  0xe2   :  { %7654 = shalt.err (!%p7651_p12)
}
  0xe3   :  { %s7655_s17 = scalar_lea.vmem %s97_s26, 16  ;;  %s7659_s27 = scalar_lea.vmem %s97_s26, 32 }
  0xe4   :  { %p7656_p13 = scmp.ne.s32.totalorder %s97_s26, %s7655_s17  ;;  %p7660_p0 = scmp.lt.s32.totalorder %s97_s26, %s97_s26 }
  0xe5   :  { %p7661_p1 = scmp.lt.s32.totalorder %s7659_s27, %s7655_s17 }
  0xe7   :  { %p7662_p2 = por %p7661_p1, %p7660_p0 }
  0xe9   :  { %p7663_p3 = pnand %p7662_p2, %p7656_p13 }
  0xeb   :  { %7666 = shalt.err (!%p7663_p3)
}
  0xec   :  { %99 = dma.hbm_to_vmem [thread:$0]  %s9249_s13, 16, %s97_s26, [#allocation9]  }
  0xed   :  { %s7856_s28 = smov [#allocation13]   ;;  %s7857_s1 = smov [#allocation16]  }
  0xee   :  { %s117_s7 = sshll.u32 %s7856_s28, 4  ;;  %s143_s15 = sshll.u32 %s7857_s1, 4  ;;  %s118_s7 = int_to_ptr.vmem [resolvable:$true] %s117_s7  ;;  %s144_s15 = int_to_ptr.vmem [resolvable:$true] %s143_s15 }
  0xef   :  { %s7667_s24 = scalar_lea.hbm %s9209_s8, 512 }
  0xf0   :  { %p7668_p4 = scmp.ne.s32.totalorder %s9209_s8, %s7667_s24  ;;  %p7671_p5 = scmp.lt.u32.totalorder %s7667_s24, %s9209_s8 }
  0xf2   :  { %p7673_p6 = pnand %p7671_p5, %p7668_p4 }
  0xf4   :  { %7676 = shalt.err (!%p7673_p6)
}
  0xf5   :  { %s7677_s26 = scalar_lea.vmem %s118_s7, 512  ;;  %p7682_p8 = scmp.lt.s32.totalorder %s118_s7, %s118_s7 }
  0xf6   :  { %p7678_p7 = scmp.ne.s32.totalorder %s118_s7, %s7677_s26  ;;  %p7683_p9 = scmp.lt.s32.totalorder %s7677_s26, %s7677_s26 }
  0xf8   :  { %p7684_p10 = por %p7683_p9, %p7682_p8 }
  0xfa   :  { %p7685_p11 = pnand %p7684_p10, %p7678_p7 }
  0xfc   :  { %7688 = shalt.err (!%p7685_p11)
}
  0xfd   :  { %123 = dma.hbm_to_vmem [thread:$0]  %s9209_s8, 512, %s118_s7, [#allocation12], %s7843_s0, %s7843_s0, %s7844_s4  }
  0xfe   :  { %s7689_s6 = scalar_lea.hbm %s9212_s11, 512 }
  0xff   :  { %p7690_p12 = scmp.ne.s32.totalorder %s9212_s11, %s7689_s6  ;;  %p7693_p13 = scmp.lt.u32.totalorder %s7689_s6, %s9212_s11 }
 0x101   :  { %p7695_p0 = pnand %p7693_p13, %p7690_p12 }
 0x103   :  { %7698 = shalt.err (!%p7695_p0)
}
 0x104   :  { %s7699_s28 = scalar_lea.vmem %s144_s15, 512  ;;  %p7704_p2 = scmp.lt.s32.totalorder %s144_s15, %s144_s15 }
 0x105   :  { %p7700_p1 = scmp.ne.s32.totalorder %s144_s15, %s7699_s28  ;;  %p7705_p3 = scmp.lt.s32.totalorder %s7699_s28, %s7699_s28 }
 0x107   :  { %p7706_p4 = por %p7705_p3, %p7704_p2 }
 0x109   :  { %p7707_p5 = pnand %p7706_p4, %p7700_p1 }
 0x10b   :  { %7710 = shalt.err (!%p7707_p5)
}
 0x10c   :  { %149 = dma.hbm_to_vmem [thread:$0]  %s9212_s11, 512, %s144_s15, [#allocation15], %s7843_s0, %s7843_s0, %s7844_s4  }
 0x10d   :  { %s7858_s1 = smov [#allocation19]   ;;  %s7859_s22 = smov [#allocation22]  }
 0x10e   :  { %s170_s12 = sshll.u32 %s7858_s1, 4  ;;  %s190_s24 = sshll.u32 %s7859_s22, 4  ;;  %s171_s12 = int_to_ptr.vmem [resolvable:$true] %s170_s12  ;;  %s191_s24 = int_to_ptr.vmem [resolvable:$true] %s190_s24 }
 0x10f   :  { %s7711_s23 = scalar_lea.hbm %s9215_s14, 32 }
 0x110   :  { %p7712_p6 = scmp.ne.s32.totalorder %s9215_s14, %s7711_s23  ;;  %p7715_p7 = scmp.lt.u32.totalorder %s7711_s23, %s9215_s14 }
 0x112   :  { %p7717_p8 = pnand %p7715_p7, %p7712_p6 }
 0x114   :  { %7720 = shalt.err (!%p7717_p8)
}
 0x115   :  { %s7721_s11 = scalar_lea.vmem %s171_s12, 32  ;;  %p7726_p10 = scmp.lt.s32.totalorder %s171_s12, %s171_s12 }
 0x116   :  { %p7722_p9 = scmp.ne.s32.totalorder %s171_s12, %s7721_s11  ;;  %p7727_p11 = scmp.lt.s32.totalorder %s7721_s11, %s7721_s11 }
 0x118   :  { %p7728_p12 = por %p7727_p11, %p7726_p10 }
 0x11a   :  { %p7729_p13 = pnand %p7728_p12, %p7722_p9 }
 0x11c   :  { %7732 = shalt.err (!%p7729_p13)
}
 0x11d   :  { %173 = dma.hbm_to_vmem [thread:$0]  %s9215_s14, 32, %s171_s12, [#allocation18]  }
 0x11e   :  { %s7733_s10 = scalar_lea.hbm %s9217_s16, 32 }
 0x11f   :  { %p7734_p0 = scmp.ne.s32.totalorder %s9217_s16, %s7733_s10  ;;  %p7737_p1 = scmp.lt.u32.totalorder %s7733_s10, %s9217_s16 }
 0x121   :  { %p7739_p2 = pnand %p7737_p1, %p7734_p0 }
 0x123   :  { %7742 = shalt.err (!%p7739_p2)
}
 0x124   :  { %s7743_s29 = scalar_lea.vmem %s191_s24, 32  ;;  %p7748_p4 = scmp.lt.s32.totalorder %s191_s24, %s191_s24 }
 0x125   :  { %p7744_p3 = scmp.ne.s32.totalorder %s191_s24, %s7743_s29  ;;  %p7749_p5 = scmp.lt.s32.totalorder %s7743_s29, %s7743_s29 }
 0x127   :  { %p7750_p6 = por %p7749_p5, %p7748_p4 }
 0x129   :  { %p7751_p7 = pnand %p7750_p6, %p7744_p3 }
 0x12b   :  { %7754 = shalt.err (!%p7751_p7)
}
 0x12c   :  { %193 = dma.hbm_to_vmem [thread:$0]  %s9217_s16, 32, %s191_s24, [#allocation21]  }
 0x12d   :  { %s7860_s8 = smov [#allocation25]   ;;  %s7861_s1 = smov [#allocation28]  }
 0x12e   :  { %s212_s7 = sshll.u32 %s7860_s8, 4  ;;  %s232_s12 = sshll.u32 %s7861_s1, 4  ;;  %s213_s7 = int_to_ptr.vmem [resolvable:$true] %s212_s7  ;;  %s233_s12 = int_to_ptr.vmem [resolvable:$true] %s232_s12 }
 0x12f   :  { %s7755_s30 = scalar_lea.hbm %s9219_s18, 16 }
 0x130   :  { %p7756_p8 = scmp.ne.s32.totalorder %s9219_s18, %s7755_s30  ;;  %p7759_p9 = scmp.lt.u32.totalorder %s7755_s30, %s9219_s18 }
 0x132   :  { %p7761_p10 = pnand %p7759_p9, %p7756_p8 }
 0x134   :  { %7764 = shalt.err (!%p7761_p10)
}
 0x135   :  { %s7765_s16 = scalar_lea.vmem %s213_s7, 16  ;;  %s7769_s24 = scalar_lea.vmem %s213_s7, 32 }
 0x136   :  { %p7766_p11 = scmp.ne.s32.totalorder %s213_s7, %s7765_s16  ;;  %p7770_p12 = scmp.lt.s32.totalorder %s213_s7, %s213_s7 }
 0x137   :  { %p7771_p13 = scmp.lt.s32.totalorder %s7769_s24, %s7765_s16 }
 0x139   :  { %p7772_p0 = por %p7771_p13, %p7770_p12 }
 0x13b   :  { %p7773_p1 = pnand %p7772_p0, %p7766_p11 }
 0x13d   :  { %7776 = shalt.err (!%p7773_p1)
}
 0x13e   :  { %215 = dma.hbm_to_vmem [thread:$0]  %s9219_s18, 16, %s213_s7, [#allocation24]  }
 0x13f   :  { %s7777_s15 = scalar_lea.hbm %s9221_s20, 16 }
 0x140   :  { %p7778_p2 = scmp.ne.s32.totalorder %s9221_s20, %s7777_s15  ;;  %p7781_p3 = scmp.lt.u32.totalorder %s7777_s15, %s9221_s20 }
 0x142   :  { %p7783_p4 = pnand %p7781_p3, %p7778_p2 }
 0x144   :  { %7786 = shalt.err (!%p7783_p4)
}
 0x145   :  { %s7787_s27 = scalar_lea.vmem %s233_s12, 16  ;;  %s7791_s5 = scalar_lea.vmem %s233_s12, 32 }
 0x146   :  { %p7788_p5 = scmp.ne.s32.totalorder %s233_s12, %s7787_s27  ;;  %p7792_p6 = scmp.lt.s32.totalorder %s233_s12, %s233_s12 }
 0x147   :  { %p7793_p7 = scmp.lt.s32.totalorder %s7791_s5, %s7787_s27 }
 0x149   :  { %p7794_p8 = por %p7793_p7, %p7792_p6 }
 0x14b   :  { %p7795_p9 = pnand %p7794_p8, %p7788_p5 }
 0x14d   :  { %7798 = shalt.err (!%p7795_p9)
}
 0x14e   :  { %235 = dma.hbm_to_vmem [thread:$0]  %s9221_s20, 16, %s233_s12, [#allocation27]  }
 0x14f   :  { %s7862_s14 = smov [#allocation29]   ;;  %s7799_s1 = scalar_lea.hbm %s9222_s21, 16 }
 0x150   :  { %s242_s28 = sshll.u32 %s7862_s14, 4  ;;  %p7800_p10 = scmp.ne.s32.totalorder %s9222_s21, %s7799_s1  ;;  %s243_s28 = int_to_ptr.vmem [resolvable:$true] %s242_s28 }
 0x151   :  { %p7803_p11 = scmp.lt.u32.totalorder %s7799_s1, %s9222_s21 }
 0x153   :  { %p7805_p12 = pnand %p7803_p11, %p7800_p10 }
 0x155   :  { %7808 = shalt.err (!%p7805_p12)
}
 0x156   :  { %s7809_s19 = scalar_lea.vmem %s243_s28, 16  ;;  %s7813_s20 = scalar_lea.vmem %s243_s28, 32 }
 0x157   :  { %p7810_p13 = scmp.ne.s32.totalorder %s243_s28, %s7809_s19  ;;  %p7814_p0 = scmp.lt.s32.totalorder %s243_s28, %s243_s28 }
 0x158   :  { %p7815_p1 = scmp.lt.s32.totalorder %s7813_s20, %s7809_s19 }
 0x15a   :  { %p7816_p2 = por %p7815_p1, %p7814_p0 }
 0x15c   :  { %p7817_p3 = pnand %p7816_p2, %p7810_p13 }
 0x15e   :  { %7820 = shalt.err (!%p7817_p3)
}
 0x15f   :  { %245 = dma.hbm_to_vmem [thread:$0]  %s9222_s21, 16, %s243_s28, [#allocation30]  }
 0x160   :  { %7821 = dma.done.wait [#allocation4], 256  }
 0x161   :  { %7822 = vsyncadd [#allocation4], 4294967040 }
 0x162   :  { %7823 = dma.done.wait [#allocation6], 400  }
 0x163   :  { %7824 = vsyncadd [#allocation6], 4294966896 }
 0x164   :  { %7825 = dma.done.wait [#allocation9], 528  }
 0x165   :  { %7826 = vsyncadd [#allocation9], 4294966768 }
 0x166   :  { %7827 = dma.done.wait [#allocation12], 1024  }
 0x167   :  { %7828 = vsyncadd [#allocation12], 4294966272 }
 0x168   :  { %7829 = dma.done.wait [#allocation15], 1024  }
 0x169   :  { %7830 = vsyncadd [#allocation15], 4294966272 }
 0x16a   :  { %7831 = dma.done.wait [#allocation18], 1056  }
 0x16b   :  { %7832 = vsyncadd [#allocation18], 4294966240 }
 0x16c   :  { %7833 = dma.done.wait [#allocation21], 64  }
 0x16d   :  { %7834 = vsyncadd [#allocation21], 4294967232 }
 0x16e   :  { %7835 = dma.done.wait [#allocation24], 4112  }
 0x16f   :  { %7836 = vsyncadd [#allocation24], 4294963184 }
 0x170   :  { %7837 = dma.done.wait [#allocation27], 32  }
 0x171   :  { %7838 = vsyncadd [#allocation27], 4294967264 }
 0x172   :  { %7839 = dma.done.wait [#allocation30], 16  }
 0x173   :  { %7840 = vsyncadd [#allocation30], 4294967280  ;;  %v7863_v1 = vmov 0.0|0.0   ;;  %vm7864_vm0 = vmmov 0   ;;  %v7865_v2 = vmov 0.0   ;;  %vm352_vm1 = vcmask 146432  }
 0x174   :  { %6799 = vmatprep.subr.bf16.mxu0 %v7863_v1  ;;  %6197 = vmatprep.mubr.msk.f32.mxu0 %vm7864_vm0, %v7865_v2  ;;  %v309_v3 = vld [vmem:[#allocation5] sm:$0xff]  ;;  %v310_v4 = vld [vmem:[#allocation5 + $0x8] sm:$0xff]  ;;  %v344_v6 = vld [vmem:[#allocation3] sm:$0xff]  ;;  %vm359_vm2 = vcmask 1041408   ;;  %s9250_s16 = sld [smem:[#allocation43_spill]]  ;;  %v302_v24 = vlaneseq  ;;  %v7866_v29 = vmov 0.5  }
 0x175   :  { %v6783_v5 = vpack.c.bf16 %v310_v4, %v309_v3  ;;  %v311_v7 = vld [vmem:[#allocation5 + $0x10] sm:$0x3]  ;;  %6164 = vmatprep.mubr.msk.f32.mxu1 %vm352_vm1, %v344_v6  ;;  %v345_v10 = vld [vmem:[#allocation3 + $0x8] sm:$0xff]  ;;  %s7867_s3 = smov 64   ;;  %s7868_s10 = smov 32   ;;  %v329_v50 = vld [vmem:[#allocation8 + $0x8] sm:$0xff] }
 0x176   :  { %v5773_v17 = vld [vmem:[#allocation7] ss:$0 sm:$0xff]  ;;  %v303_v26 = vand.u32 127, %v302_v24  ;;  %s9251_s27 = sld [smem:[#allocation45_spill]]  ;;  %v328_v48 = vld [vmem:[#allocation8] sm:$0xff]  ;;  %v330_v54 = vld [vmem:[#allocation8 + $0x10] sm:$0xff] }
 0x177   :  { %6784 = vmatprep.subr.bf16.mxu1 %v6783_v5  ;;  %v8318_v53 = vpack.c.bf16 %v329_v50, %v328_v48  ;;  %v331_v55 = vld [vmem:[#allocation8 + $0x18] sm:$0xff]  ;;  %vm567_vm6 = vcmask 1041409   ;;  %vm438_vm7 = vcmask 261120   ;;  %s9252_s30 = sld [smem:[#allocation49_spill]]  ;;  %vm5757_vm8 = vcmask 1024   ;;  %s9253_s21 = sld [smem:[#allocation50_spill]] }
 0x178   :  { %6786 = vmatpush3.bf16.msra.mxu1 %v6783_v5  ;;  %vm304_vm3 = vcmp.ge.s32.totalorder %v303_v26, 64  ;;  %vm305_vm4 = vcmp.lt.s32.totalorder %v303_v26, 96  ;;  %v8325_v57 = vpack.c.bf16 %v331_v55, %v330_v54  ;;  %v317_v26 = vld [vmem:[#allocation11 + $0x8] sm:$0xff] }
 0x179   :  { %6162 = vmatprep.subr.msk.mxu1 %vm359_vm2, %v311_v7  ;;  %vm306_vm5 = vmand %vm304_vm3, %vm305_vm4  ;;  %6801 = vmatpush3.bf16.msra.mxu0 %v8318_v53 }
 0x17a   :  { %v324_v8 = vld [vmem:[%s9250_s16] sm:$0xff]  ;;  %v325_v9 = vld [vmem:[%s9250_s16 + $0x8] sm:$0xff]  ;;  %v326_v12 = vld [vmem:[%s9250_s16 + $0x10] sm:$0xff]  ;;  %v8286_v30 = vsel %vm306_vm5, 1.0, %v7866_v29  ;;  %v8289_v32 = vsel %vm306_vm5, 0.0, %v7866_v29  ;;  %6802 = vmatprep.subr.bf16.mxu0 %v7863_v1 }
 0x17b   :  { %v8257_v11 = vpack.c.bf16 %v325_v9, %v324_v8  ;;  %v327_v13 = vld [vmem:[%s9250_s16 + $0x18] sm:$0xff]  ;;  %v319_v29 = vld [vmem:[#allocation11 + $0x18] sm:$0xff] }
 0x17c   :  { %6163 = vmatpush3.msk.msra.mxu1 %vm359_vm2, %v311_v7  ;;  %v8269_v14 = vpack.c.bf16 %v327_v13, %v326_v12  ;;  %v312_v46 = vld [vmem:[%s9251_s27] sm:$0xff]  ;;  %v313_v47 = vld [vmem:[%s9251_s27 + $0x8] sm:$0xff]  ;;  %v314_v51 = vld [vmem:[%s9251_s27 + $0x10] sm:$0xff] }
 0x17d   :  { %6165 = vmatmul.mubr.msk.f32.vlgmr.msra.gmra.mrb[0].mxu1 %vm352_vm1, %v345_v10  ;;  %6787 = vmatprep.subr.bf16.mxu1 %v7863_v1  ;;  %v8310_v49 = vpack.c.bf16 %v313_v47, %v312_v46  ;;  %v315_v52 = vld [vmem:[%s9251_s27 + $0x18] sm:$0xff]  ;;  %v8342_v7 = vld [vmem:[#allocation10] ss:$0 sm:$0xff] }
 0x17e   :  { %6789 = vmatpush3.bf16.msra.mxu1 %v8257_v11  ;;  %6175 = vmatprep.mubr.msk.f32.mxu1 %vm7864_vm0, %v7865_v2  ;;  %v8321_v56 = vpack.c.bf16 %v315_v52, %v314_v51 }
 0x17f   :  { %6790 = vmatprep.subr.bf16.mxu1 %v7863_v1  ;;  %6804 = vmatpush3.bf16.msra.mxu0 %v8325_v57 }
 0x180   :  { %6817 = vmatprep.subr.bf16.mxu0 %v7863_v1 }
 0x182   :  { %6792 = vmatpush3.bf16.msra.mxu1 %v8269_v14  ;;  %6198 = vmatmul.mubr.f32.vlgmr.msra.gmra.mrb[0].mxu0 %v7865_v2 }
 0x183   :  { %6793 = vmatprep.subr.bf16.mxu1 %v7863_v1  ;;  %6230 = vmatprep.mubr.msk.f32.mxu0 %vm7864_vm0, %v7865_v2 }
 0x185   :  { %6176 = vmatmul.mubr.f32.vlgmr.msra.gmra.mrb[2].mxu1 %v7865_v2 }
 0x186   :  { %6186 = vmatprep.mubr.msk.f32.mxu1 %vm7864_vm0, %v7865_v2  ;;  %6795 = vmatpush3.bf16.msra.mxu1 %v8310_v49 }
 0x187   :  { %6796 = vmatprep.subr.bf16.mxu1 %v7863_v1 }
 0x18a   :  { %6798 = vmatpush3.bf16.msra.mxu1 %v8321_v56 }
 0x18b   :  { %6805 = vmatprep.subr.bf16.mxu1 %v7863_v1 }
 0x250   :  { %v6166_v15 = vpop.f32.mrb[0].mxu1 }
 0x251   :  { %v429_v16 = vpop.f32.mrb[1].mxu1  ;;  %v8281_v20 = vadd.f32 %v6166_v15, %v5773_v17 }
 0x252   :  { %v8279_v18 = vadd.f32 %v5773_v17, %v429_v16 }
 0x255   :  { %v709_v5 = vpop.f32.mrb[0].mxu0 }
 0x256   :  { %v6199_v6 = vpop.f32.mrb[1].mxu0 }
 0x258   :  { %v508_v19 = vpop.f32.mrb[2].mxu1 }
 0x259   :  { %v513_v21 = vrot.slane %v508_v19, 1  ;;  %v516_v22 = vadd.f32 %v508_v19, %v8279_v18  ;;  %v6177_v23 = vpop.f32.mrb[3].mxu1 }
 0x25b   :  { %v517_v25 = vadd.f32 %v513_v21, %v8281_v20  ;;  %7262 = vtanh.f32 %v516_v22 }
 0x25d   :  { %7264 = vtanh.f32 %v517_v25  ;;  %v316_v25 = vld [vmem:[#allocation11] sm:$0xff] }
 0x265   :  { %v7263_v27 = vpop.eup %7262 }
 0x266   :  { %v520_v34 = vmul.f32 %v7263_v27, %v8286_v30  ;;  %v318_v27 = vld [vmem:[#allocation11 + $0x10] sm:$0xff] }
 0x267   :  { %v7265_v28 = vpop.eup %7264 }
 0x268   :  { %v521_v31 = vmul.f32 %v7265_v28, %v8286_v30  ;;  %v522_v35 = vadd.f32 %v520_v34, %v8289_v32  ;;  %v8352_v28 = vpack.c.bf16 %v317_v26, %v316_v25 }
 0x26a   :  { %v523_v33 = vadd.f32 %v521_v31, %v8289_v32  ;;  %v524_v43 = vmul.f32 0.0, %v522_v35  ;;  %v8355_v31 = vpack.c.bf16 %v319_v29, %v318_v27 }
 0x26c   :  { %530 = vrot.lane.b32.xlu0 %v523_v33, %s7867_s3  ;;  %v525_v40 = vmul.f32 0.0, %v523_v33 }
 0x270   :  { %528 = vrot.lane.b32.xlu0 %v522_v35, %s7867_s3 }
 0x2de   :  { %v531_v36 = vpop.permute.xlu0 %530 }
 0x2df   :  { %v535_v37 = vmul.f32 %v531_v36, %v523_v33  ;;  %v332_v36 = vld [vmem:[#allocation13] sm:$0xff] }
 0x2e1   :  { %540 = vrot.lane.b32.xlu1 %v535_v37, %s7868_s10  ;;  %v333_v37 = vld [vmem:[#allocation13 + $0x8] sm:$0xff] }
 0x2e2   :  { %v529_v38 = vpop.permute.xlu0 %528 }
 0x2e3   :  { %v534_v39 = vmul.f32 %v529_v38, %v522_v35  ;;  %v8362_v38 = vpack.c.bf16 %v333_v37, %v332_v36 }
 0x2e5   :  { %538 = vrot.lane.b32.xlu1 %v534_v39, %s7868_s10  ;;  %v334_v39 = vld [vmem:[#allocation13 + $0x10] sm:$0xff] }
 0x353   :  { %v541_v41 = vpop.permute.xlu1 %540 }
 0x354   :  { %v8298_v42 = vadd.f32 %v541_v41, %v525_v40  ;;  %v335_v40 = vld [vmem:[#allocation13 + $0x18] sm:$0xff] }
 0x356   :  { %7266 = vtanh.f32 %v8298_v42  ;;  %v1163_v6 = vrot.slane %v8298_v42, 7 }
 0x357   :  { %v539_v44 = vpop.permute.xlu1 %538 }
 0x358   :  { %v8301_v45 = vadd.f32 %v539_v44, %v524_v43  ;;  %v8369_v43 = vpack.c.bf16 %v335_v40, %v334_v39 }
 0x35a   :  { %7268 = vtanh.f32 %v8301_v45 }
 0x360   :  { %v7267_v58 = vpop.eup %7266 }
 0x361   :  { %552 = vrot.lane.b32.xlu0 %v7267_v58, %s7867_s3 }
 0x364   :  { %v7269_v59 = vpop.eup %7268 }
 0x365   :  { %550 = vrot.lane.b32.xlu1 %v7269_v59, %s7867_s3 }
 0x3d3   :  { %v553_v60 = vpop.permute.xlu0 %552 }
 0x3d4   :  { %v557_v61 = vmul.f32 %v553_v60, %v523_v33 }
 0x3d6   :  { %v566_v63 = vrot.slane %v557_v61, 7 }
 0x3d7   :  { %v551_v62 = vpop.permute.xlu1 %550 }
 0x3d8   :  { %v556_v0 = vmul.f32 %v551_v62, %v522_v35 }
 0x3da   :  { %v568_v3 = vsel %vm567_vm6, %v566_v63, %v556_v0 }
 0x3db   :  { %569 = vrot.lane.b32.xlu0 %v568_v3, %s7868_s10 }
 0x44d   :  { %v570_v4 = vpop.permute.xlu0 %569 }
 0x44e   :  { %6187 = vmatmul.mubr.msk.f32.vlgmr.msra.gmra.mrb[4].mxu1 %vm438_vm7, %v570_v4 }
 0x44f   :  { %6208 = vmatprep.mubr.msk.f32.mxu1 %vm7864_vm0, %v7865_v2  ;;  %6807 = vmatpush3.bf16.msra.mxu1 %v8352_v28 }
 0x450   :  { %6808 = vmatprep.subr.bf16.mxu1 %v7863_v1 }
 0x453   :  { %6810 = vmatpush3.bf16.msra.mxu1 %v8355_v31 }
 0x454   :  { %6811 = vmatprep.subr.bf16.mxu1 %v7863_v1 }
 0x521   :  { %v639_v8 = vpop.f32.mrb[4].mxu1 }
 0x522   :  { %v640_v9 = vadd.f32 %v8342_v7, %v639_v8  ;;  %v6188_v10 = vpop.f32.mrb[5].mxu1  ;;  %v1162_v8 = vrot.slane %v8301_v45, 7 }
 0x524   :  { %v713_v12 = vadd.f32 %v709_v5, %v640_v9 }
 0x526   :  { %7270 = vtanh.f32 %v713_v12 }
 0x530   :  { %v7271_v13 = vpop.eup %7270 }
 0x531   :  { %v715_v15 = vmul.f32 %v7271_v13, %v8286_v30 }
 0x533   :  { %v716_v16 = vadd.f32 %v715_v15, %v8289_v32 }
 0x535   :  { %719 = vrot.lane.b32.xlu1 %v716_v16, %s7867_s3  ;;  %v717_v21 = vmul.f32 0.0, %v716_v16 }
 0x5a7   :  { %v720_v17 = vpop.permute.xlu1 %719 }
 0x5a8   :  { %v722_v19 = vmul.f32 %v720_v17, %v716_v16 }
 0x5aa   :  { %724 = vrot.lane.b32.xlu0 %v722_v19, %s7868_s10 }
 0x61c   :  { %v725_v22 = vpop.permute.xlu0 %724 }
 0x61d   :  { %v8349_v23 = vadd.f32 %v725_v22, %v717_v21 }
 0x61f   :  { %7272 = vtanh.f32 %v8349_v23 }
 0x629   :  { %v7273_v33 = vpop.eup %7272 }
 0x62a   :  { %730 = vrot.lane.b32.xlu1 %v7273_v33, %s7867_s3 }
 0x69c   :  { %v731_v34 = vpop.permute.xlu1 %730 }
 0x69d   :  { %v733_v35 = vmul.f32 %v731_v34, %v716_v16 }
 0x69f   :  { %741 = vrot.lane.b32.xlu0 %v733_v35, %s7868_s10 }
 0x711   :  { %v8364_v41 = vpop.permute.xlu0 %741 }
 0x712   :  { %6209 = vmatmul.mubr.msk.f32.vlgmr.msra.gmra.mrb[6].mxu1 %vm438_vm7, %v8364_v41 }
 0x713   :  { %6813 = vmatpush3.bf16.msra.mxu1 %v8362_v38  ;;  %6219 = vmatprep.mubr.msk.f32.mxu1 %vm7864_vm0, %v7865_v2 }
 0x714   :  { %6814 = vmatprep.subr.bf16.mxu1 %v7863_v1 }
 0x717   :  { %6816 = vmatpush3.bf16.msra.mxu1 %v8369_v43 }
 0x718   :  { %6829 = vmatprep.subr.bf16.mxu1 %v7863_v1 }
 0x71a   :  { %6220 = vmatmul.mubr.f32.vlgmr.msra.gmra.mrb[6].mxu1 %v7865_v2 }
 0x71b   :  { %6831 = vmatpush3.bf16.msra.mxu1 %v8257_v11  ;;  %6252 = vmatprep.mubr.msk.f32.mxu1 %vm7864_vm0, %v7865_v2 }
 0x71c   :  { %6832 = vmatprep.subr.bf16.mxu1 %v7863_v1 }
 0x71f   :  { %6834 = vmatpush3.bf16.msra.mxu1 %v8269_v14 }
 0x720   :  { %6835 = vmatprep.subr.bf16.mxu1 %v7863_v1 }
 0x722   :  { %6253 = vmatmul.mubr.msk.f32.vlgmr.msra.gmra.mrb[8].mxu1 %vm438_vm7, %v570_v4  ;;  %v8403_v4 = vld [vmem:[%s9210_s9] ss:$0 sm:$0xff] }
 0x723   :  { %6837 = vmatpush3.bf16.msra.mxu1 %v8310_v49  ;;  %6263 = vmatprep.mubr.msk.f32.mxu1 %vm7864_vm0, %v7865_v2 }
 0x724   :  { %6838 = vmatprep.subr.bf16.mxu1 %v7863_v1 }
 0x727   :  { %6840 = vmatpush3.bf16.msra.mxu1 %v8321_v56 }
 0x728   :  { %6841 = vmatprep.subr.bf16.mxu1 %v7863_v1 }
 0x7ed   :  { %v881_v44 = vpop.f32.mrb[6].mxu1 }
 0x7ee   :  { %v6221_v46 = vpop.f32.mrb[7].mxu1  ;;  %v7165_v5 = vadd.f32 %v8403_v4, %v881_v44 }
 0x7ef   :  { %v320_v46 = vld [vmem:[#allocation14] sm:$0xff] }
 0x7f5   :  { %v1144_v47 = vpop.f32.mrb[8].mxu1 }
 0x7f6   :  { %v1149_v48 = vrot.slane %v1144_v47, 7  ;;  %v1153_v50 = vadd.f32 %v1144_v47, %v8281_v20  ;;  %v6254_v51 = vpop.f32.mrb[9].mxu1  ;;  %v321_v47 = vld [vmem:[#allocation14 + $0x8] sm:$0xff] }
 0x7f8   :  { %v1152_v52 = vadd.f32 %v1149_v48, %v8279_v18  ;;  %7274 = vtanh.f32 %v1153_v50  ;;  %v8440_v48 = vpack.c.bf16 %v321_v47, %v320_v46  ;;  %v322_v50 = vld [vmem:[#allocation14 + $0x10] sm:$0xff] }
 0x7fa   :  { %7276 = vtanh.f32 %v1152_v52  ;;  %6819 = vmatpush3.bf16.msra.mxu0 %v8440_v48 }
 0x7fb   :  { %7278 = vtanh.f32 %v7165_v5  ;;  %6820 = vmatprep.subr.bf16.mxu0 %v7863_v1  ;;  %v338_v5 = vld [vmem:[#allocation16 + $0x10] sm:$0xff] }
 0x802   :  { %v7275_v54 = vpop.eup %7274 }
 0x803   :  { %v1157_v55 = vmul.f32 %v7275_v54, %v8286_v30 }
 0x804   :  { %v7277_v58 = vpop.eup %7276 }
 0x805   :  { %v1159_v59 = vadd.f32 %v1157_v55, %v8289_v32  ;;  %v1156_v60 = vmul.f32 %v7277_v58, %v8286_v30  ;;  %v7279_v17 = vpop.eup %7278 }
 0x806   :  { %v887_v19 = vmul.f32 %v7279_v17, %v8286_v30 }
 0x807   :  { %1172 = vrot.lane.b32.xlu0 %v1159_v59, %s7867_s3  ;;  %v1158_v61 = vadd.f32 %v1156_v60, %v8289_v32  ;;  %v1167_v9 = vmul.f32 %v1163_v6, %v1159_v59  ;;  %v339_v6 = vld [vmem:[#allocation16 + $0x18] sm:$0xff] }
 0x808   :  { %v888_v45 = vadd.f32 %v887_v19, %v8289_v32 }
 0x809   :  { %1170 = vrot.lane.b32.xlu1 %v1158_v61, %s7867_s3  ;;  %v1166_v13 = vmul.f32 %v1162_v8, %v1158_v61 }
 0x80a   :  { %v889_v36 = vmul.f32 0.0, %v888_v45 }
 0x879   :  { %v1173_v62 = vpop.permute.xlu0 %1172 }
 0x87a   :  { %v1177_v63 = vmul.f32 %v1173_v62, %v1159_v59 }
 0x87b   :  { %v1171_v0 = vpop.permute.xlu1 %1170 }
 0x87c   :  { %v1176_v3 = vmul.f32 %v1171_v0, %v1158_v61  ;;  %1182 = vrot.lane.b32.xlu0 %v1177_v63, %s7868_s10  ;;  %v336_v63 = vld [vmem:[#allocation16] sm:$0xff]  ;;  %v337_v0 = vld [vmem:[#allocation16 + $0x8] sm:$0xff] }
 0x87e   :  { %1180 = vrot.lane.b32.xlu1 %v1176_v3, %s7868_s10  ;;  %v8457_v3 = vpack.c.bf16 %v337_v0, %v336_v63 }
 0x8ee   :  { %v1183_v10 = vpop.permute.xlu0 %1182 }
 0x8ef   :  { %v8408_v12 = vadd.f32 %v1183_v10, %v1167_v9  ;;  %v8461_v9 = vpack.c.bf16 %v339_v6, %v338_v5 }
 0x8f0   :  { %v1181_v15 = vpop.permute.xlu1 %1180 }
 0x8f1   :  { %7280 = vtanh.f32 %v8408_v12  ;;  %v8411_v16 = vadd.f32 %v1181_v15, %v1166_v13 }
 0x8f3   :  { %7282 = vtanh.f32 %v8411_v16 }
 0x8fb   :  { %v7281_v21 = vpop.eup %7280 }
 0x8fc   :  { %1194 = vrot.lane.b32.xlu0 %v7281_v21, %s7867_s3 }
 0x8fd   :  { %v7283_v42 = vpop.eup %7282 }
 0x8fe   :  { %1192 = vrot.lane.b32.xlu1 %v7283_v42, %s7867_s3 }
 0x900   :  { %891 = vrot.lane.b32.xlu0 %v888_v45, %s7867_s3 }
 0x96e   :  { %v1195_v22 = vpop.permute.xlu0 %1194 }
 0x96f   :  { %v1199_v29 = vmul.f32 %v1195_v22, %v1159_v59 }
 0x970   :  { %v1193_v25 = vpop.permute.xlu1 %1192 }
 0x971   :  { %v1198_v26 = vmul.f32 %v1193_v25, %v1158_v61 }
 0x972   :  { %v892_v27 = vpop.permute.xlu0 %891 }
 0x973   :  { %v1202_v33 = vrot.slane %v1198_v26, 1  ;;  %v894_v34 = vmul.f32 %v892_v27, %v888_v45 }
 0x975   :  { %896 = vrot.lane.b32.xlu0 %v894_v34, %s7868_s10  ;;  %v1203_v35 = vsel %vm567_vm6, %v1199_v29, %v1202_v33 }
 0x976   :  { %1204 = vrot.lane.b32.xlu1 %v1203_v35, %s7868_s10 }
 0x9e7   :  { %v897_v37 = vpop.permute.xlu0 %896 }
 0x9e8   :  { %v8422_v39 = vadd.f32 %v897_v37, %v889_v36  ;;  %v8424_v40 = vpop.permute.xlu1 %1204 }
 0x9e9   :  { %6264 = vmatmul.mubr.msk.f32.vlgmr.msra.gmra.mrb[10].mxu1 %vm438_vm7, %v8424_v40 }
 0x9ea   :  { %7284 = vtanh.f32 %v8422_v39  ;;  %6843 = vmatpush3.bf16.msra.mxu1 %v8318_v53  ;;  %6274 = vmatprep.mubr.msk.f32.mxu1 %vm7864_vm0, %v7865_v2 }
 0x9eb   :  { %6844 = vmatprep.subr.bf16.mxu1 %v7863_v1 }
 0x9ee   :  { %6846 = vmatpush3.bf16.msra.mxu1 %v8325_v57 }
 0x9ef   :  { %6859 = vmatprep.subr.bf16.mxu1 %v7863_v1 }
 0x9f1   :  { %6275 = vmatmul.mubr.msk.f32.vlgmr.msra.gmra.mrb[10].mxu1 %vm438_vm7, %v8364_v41  ;;  %v323_v41 = vld [vmem:[#allocation14 + $0x18] sm:$0xff] }
 0x9f2   :  { %6307 = vmatprep.mubr.msk.f32.mxu1 %vm7864_vm0, %v7865_v2  ;;  %6861 = vmatpush3.bf16.msra.mxu1 %v8440_v48  ;;  %v8446_v51 = vpack.c.bf16 %v323_v41, %v322_v50 }
 0x9f3   :  { %6862 = vmatprep.subr.bf16.mxu1 %v7863_v1 }
 0x9f4   :  { %v7285_v44 = vpop.eup %7284  ;;  %6822 = vmatpush3.bf16.msra.mxu0 %v8446_v51 }
 0x9f5   :  { %902 = vrot.lane.b32.xlu0 %v7285_v44, %s7867_s3  ;;  %6823 = vmatprep.subr.bf16.mxu0 %v7863_v1 }
 0x9f6   :  { %6864 = vmatpush3.bf16.msra.mxu1 %v8446_v51 }
 0x9f7   :  { %6865 = vmatprep.subr.bf16.mxu1 %v7863_v1 }
 0xa67   :  { %v903_v52 = vpop.permute.xlu0 %902 }
 0xa68   :  { %v905_v54 = vmul.f32 %v903_v52, %v888_v45 }
 0xa6a   :  { %913 = vrot.lane.b32.xlu0 %v905_v54, %s7868_s10 }
 0xac4   :  { %v1344_v55 = vpop.f32.mrb[10].mxu1 }
 0xac5   :  { %v7167_v58 = vadd.f32 %v8342_v7, %v1344_v55  ;;  %v6276_v59 = vpop.f32.mrb[11].mxu1 }
 0xac7   :  { %7286 = vtanh.f32 %v7167_v58 }
 0xad1   :  { %v7287_v60 = vpop.eup %7286 }
 0xad2   :  { %v1350_v61 = vmul.f32 %v7287_v60, %v8286_v30  ;;  %v1791_v60 = vrot.slane %v8411_v16, 7 }
 0xad4   :  { %v1351_v62 = vadd.f32 %v1350_v61, %v8289_v32  ;;  %v1792_v61 = vrot.slane %v8408_v12, 7 }
 0xad6   :  { %1354 = vrot.lane.b32.xlu1 %v1351_v62, %s7867_s3  ;;  %v1352_v19 = vmul.f32 %v1351_v62, %v8349_v23 }
 0xadc   :  { %v914_v8 = vpop.permute.xlu0 %913 }
 0xadd   :  { %6231 = vmatmul.mubr.msk.f32.vlgmr.msra.gmra.mrb[2].mxu0 %vm438_vm7, %v914_v8 }
 0xade   :  { %6825 = vmatpush3.bf16.msra.mxu0 %v8457_v3  ;;  %6241 = vmatprep.mubr.msk.f32.mxu0 %vm7864_vm0, %v7865_v2 }
 0xadf   :  { %6826 = vmatprep.subr.bf16.mxu0 %v7863_v1 }
 0xae2   :  { %6828 = vmatpush3.bf16.msra.mxu0 %v8461_v9 }
 0xae3   :  { %6847 = vmatprep.subr.bf16.mxu0 %v7863_v1 }
 0xae5   :  { %6242 = vmatmul.mubr.f32.vlgmr.msra.gmra.mrb[2].mxu0 %v7865_v2 }
 0xae6   :  { %6849 = vmatpush3.bf16.msra.mxu0 %v8352_v28  ;;  %6285 = vmatprep.mubr.msk.f32.mxu0 %vm7864_vm0, %v7865_v2 }
 0xae7   :  { %6850 = vmatprep.subr.bf16.mxu0 %v7863_v1 }
 0xaea   :  { %6852 = vmatpush3.bf16.msra.mxu0 %v8355_v31 }
 0xaeb   :  { %6853 = vmatprep.subr.bf16.mxu0 %v7863_v1 }
 0xb48   :  { %v1355_v10 = vpop.permute.xlu1 %1354 }
 0xb49   :  { %v1357_v13 = vmul.f32 %v1355_v10, %v1351_v62 }
 0xb4b   :  { %1359 = vrot.lane.b32.xlu1 %v1357_v13, %s7868_s10 }
 0xbb8   :  { %v8476_v15 = vpop.f32.mrb[2].mxu0 }
 0xbb9   :  { %v6243_v17 = vpop.f32.mrb[3].mxu0 }
 0xbbd   :  { %v1360_v21 = vpop.permute.xlu1 %1359 }
 0xbbe   :  { %v8479_v42 = vadd.f32 %v1360_v21, %v1352_v19  ;;  %v8536_v19 = vld [vmem:[%s9252_s30] ss:$0 sm:$0xff] }
 0xbbf   :  { %v7166_v21 = vadd.f32 %v8536_v19, %v8476_v15 }
 0xbc0   :  { %7288 = vtanh.f32 %v8479_v42 }
 0xbca   :  { %v7289_v45 = vpop.eup %7288 }
 0xbcb   :  { %1365 = vrot.lane.b32.xlu1 %v7289_v45, %s7867_s3 }
 0xc3d   :  { %v1366_v22 = vpop.permute.xlu1 %1365 }
 0xc3e   :  { %v1368_v25 = vmul.f32 %v1366_v22, %v1351_v62 }
 0xc40   :  { %1370 = vrot.lane.b32.xlu1 %v1368_v25, %s7868_s10 }
 0xcb2   :  { %v8484_v26 = vpop.permute.xlu1 %1370 }
 0xcb3   :  { %6286 = vmatmul.mubr.msk.f32.vlgmr.msra.gmra.mrb[4].mxu0 %vm438_vm7, %v8484_v26 }
 0xcb4   :  { %6855 = vmatpush3.bf16.msra.mxu0 %v8362_v38  ;;  %6296 = vmatprep.mubr.msk.f32.mxu0 %vm7864_vm0, %v7865_v2 }
 0xcb5   :  { %6856 = vmatprep.subr.bf16.mxu0 %v7863_v1 }
 0xcb8   :  { %6858 = vmatpush3.bf16.msra.mxu0 %v8369_v43 }
 0xcb9   :  { %6871 = vmatprep.subr.bf16.mxu0 %v7863_v1 }
 0xcbb   :  { %6297 = vmatmul.mubr.msk.f32.vlgmr.msra.gmra.mrb[4].mxu0 %vm438_vm7, %v914_v8 }
 0xcbc   :  { %6873 = vmatpush3.bf16.msra.mxu0 %v8257_v11  ;;  %6329 = vmatprep.mubr.msk.f32.mxu0 %vm7864_vm0, %v7865_v2 }
 0xcbd   :  { %6874 = vmatprep.subr.bf16.mxu0 %v7863_v1 }
 0xcc0   :  { %6876 = vmatpush3.bf16.msra.mxu0 %v8269_v14 }
 0xcc1   :  { %6877 = vmatprep.subr.bf16.mxu0 %v7863_v1 }
 0xcc3   :  { %6330 = vmatmul.mubr.msk.f32.vlgmr.msra.gmra.mrb[6].mxu0 %vm438_vm7, %v8424_v40 }
 0xcc4   :  { %6879 = vmatpush3.bf16.msra.mxu0 %v8310_v49  ;;  %6340 = vmatprep.mubr.msk.f32.mxu0 %vm7864_vm0, %v7865_v2 }
 0xcc5   :  { %6880 = vmatprep.subr.bf16.mxu0 %v7863_v1 }
 0xcc8   :  { %6882 = vmatpush3.bf16.msra.mxu0 %v8321_v56 }
 0xcc9   :  { %6883 = vmatprep.subr.bf16.mxu0 %v7863_v1 }
 0xd8e   :  { %v1510_v23 = vpop.f32.mrb[4].mxu0 }
 0xd8f   :  { %v6298_v27 = vpop.f32.mrb[5].mxu0  ;;  %v7168_v59 = vadd.f32 %v8403_v4, %v1510_v23 }
 0xd96   :  { %v1772_v29 = vpop.f32.mrb[6].mxu0 }
 0xd97   :  { %v1777_v33 = vrot.slane %v1772_v29, 6  ;;  %v1778_v34 = vrot.slane %v1772_v29, 7  ;;  %v6331_v35 = vpop.f32.mrb[7].mxu0 }
 0xd99   :  { %v1781_v36 = vadd.f32 %v1777_v33, %v8279_v18  ;;  %v1782_v37 = vadd.f32 %v1778_v34, %v8281_v20 }
 0xd9b   :  { %7290 = vtanh.f32 %v1781_v36 }
 0xd9c   :  { %7292 = vtanh.f32 %v1782_v37 }
 0xd9d   :  { %7294 = vtanh.f32 %v7168_v59 }
 0xda5   :  { %v7291_v40 = vpop.eup %7290 }
 0xda6   :  { %v7293_v44 = vpop.eup %7292  ;;  %v1785_v46 = vmul.f32 %v7291_v40, %v8286_v30 }
 0xda7   :  { %v1786_v47 = vmul.f32 %v7293_v44, %v8286_v30  ;;  %v7295_v10 = vpop.eup %7294 }
 0xda8   :  { %v1787_v50 = vadd.f32 %v1785_v46, %v8289_v32  ;;  %v1516_v17 = vmul.f32 %v7295_v10, %v8286_v30 }
 0xda9   :  { %v1788_v41 = vadd.f32 %v1786_v47, %v8289_v32 }
 0xdaa   :  { %1799 = vrot.lane.b32.xlu0 %v1787_v50, %s7867_s3  ;;  %v1795_v62 = vmul.f32 %v1791_v60, %v1787_v50  ;;  %v1517_v12 = vadd.f32 %v1516_v17, %v8289_v32 }
 0xdab   :  { %1801 = vrot.lane.b32.xlu1 %v1788_v41, %s7867_s3  ;;  %v1796_v63 = vmul.f32 %v1792_v61, %v1788_v41 }
 0xe1c   :  { %v1800_v52 = vpop.permute.xlu0 %1799 }
 0xe1d   :  { %v1802_v54 = vpop.permute.xlu1 %1801  ;;  %v1805_v55 = vmul.f32 %v1800_v52, %v1787_v50 }
 0xe1e   :  { %v1806_v58 = vmul.f32 %v1802_v54, %v1788_v41 }
 0xe1f   :  { %1809 = vrot.lane.b32.xlu0 %v1805_v55, %s7868_s10 }
 0xe20   :  { %1811 = vrot.lane.b32.xlu1 %v1806_v58, %s7868_s10 }
 0xe91   :  { %v1810_v0 = vpop.permute.xlu0 %1809 }
 0xe92   :  { %v1812_v5 = vpop.permute.xlu1 %1811  ;;  %v8522_v6 = vadd.f32 %v1810_v0, %v1795_v62 }
 0xe93   :  { %v8524_v8 = vadd.f32 %v1812_v5, %v1796_v63 }
 0xe94   :  { %7296 = vtanh.f32 %v8522_v6 }
 0xe95   :  { %7298 = vtanh.f32 %v8524_v8 }
 0xe96   :  { %7300 = vtanh.f32 %v7166_v21 }
 0xe9e   :  { %v7297_v13 = vpop.eup %7296 }
 0xe9f   :  { %v7299_v16 = vpop.eup %7298  ;;  %1821 = vrot.lane.b32.xlu0 %v7297_v13, %s7867_s3 }
 0xea0   :  { %1823 = vrot.lane.b32.xlu1 %v7299_v16, %s7867_s3  ;;  %v7301_v23 = vpop.eup %7300 }
 0xea1   :  { %v1059_v34 = vmul.f32 %v7301_v23, %v8286_v30 }
 0xea3   :  { %v1060_v36 = vadd.f32 %v1059_v34, %v8289_v32 }
 0xea4   :  { %1520 = vrot.lane.b32.xlu1 %v1517_v12, %s7867_s3 }
 0xf11   :  { %v1822_v45 = vpop.permute.xlu0 %1821 }
 0xf12   :  { %v1824_v22 = vpop.permute.xlu1 %1823  ;;  %v1827_v25 = vmul.f32 %v1822_v45, %v1787_v50 }
 0xf13   :  { %v1828_v27 = vmul.f32 %v1824_v22, %v1788_v41 }
 0xf14   :  { %v1831_v29 = vrot.slane %v1827_v25, 2 }
 0xf15   :  { %v1832_v33 = vrot.slane %v1828_v27, 1 }
 0xf16   :  { %v1521_v37 = vpop.permute.xlu1 %1520 }
 0xf17   :  { %v1833_v35 = vsel %vm567_vm6, %v1832_v33, %v1831_v29  ;;  %v1523_v15 = vmul.f32 %v1521_v37, %v1517_v12 }
 0xf18   :  { %1834 = vrot.lane.b32.xlu0 %v1833_v35, %s7868_s10 }
 0xf1c   :  { %1063 = vrot.lane.b32.xlu0 %v1060_v36, %s7867_s3 }
 0xf20   :  { %1525 = vrot.lane.b32.xlu0 %v1523_v15, %s7868_s10 }
 0xf8a   :  { %v8546_v40 = vpop.permute.xlu0 %1834 }
 0xf8b   :  { %6341 = vmatmul.mubr.msk.f32.vlgmr.msra.gmra.mrb[8].mxu0 %vm438_vm7, %v8546_v40 }
 0xf8c   :  { %6885 = vmatpush3.bf16.msra.mxu0 %v8318_v53  ;;  %6351 = vmatprep.mubr.msk.f32.mxu0 %vm7864_vm0, %v7865_v2 }
 0xf8d   :  { %6886 = vmatprep.subr.bf16.mxu0 %v7863_v1 }
 0xf8e   :  { %v1064_v50 = vpop.permute.xlu0 %1063 }
 0xf8f   :  { %v1066_v59 = vmul.f32 %v1064_v50, %v1060_v36 }
 0xf90   :  { %6888 = vmatpush3.bf16.msra.mxu0 %v8325_v57 }
 0xf91   :  { %6901 = vmatprep.subr.bf16.mxu0 %v7863_v1 }
 0xf92   :  { %v1526_v41 = vpop.permute.xlu0 %1525 }
 0xf93   :  { %6352 = vmatmul.mubr.msk.f32.vlgmr.msra.gmra.mrb[8].mxu0 %vm438_vm7, %v8484_v26  ;;  %v1518_v26 = vmul.f32 %v1517_v12, %v8422_v39  ;;  %v1061_v39 = vmul.f32 0.0, %v1060_v36 }
 0xf94   :  { %6903 = vmatpush3.bf16.msra.mxu0 %v8440_v48  ;;  %6384 = vmatprep.mubr.msk.f32.mxu0 %vm7864_vm0, %v7865_v2 }
 0xf95   :  { %6904 = vmatprep.subr.bf16.mxu0 %v7863_v1  ;;  %v8566_v52 = vadd.f32 %v1526_v41, %v1518_v26 }
 0xf98   :  { %6906 = vmatpush3.bf16.msra.mxu0 %v8446_v51 }
 0xf99   :  { %6907 = vmatprep.subr.bf16.mxu0 %v7863_v1 }
0x1066   :  { %v1974_v44 = vpop.f32.mrb[8].mxu0 }
0x1067   :  { %v7170_v46 = vadd.f32 %v8342_v7, %v1974_v44  ;;  %v6353_v47 = vpop.f32.mrb[9].mxu0 }
0x1069   :  { %7302 = vtanh.f32 %v7170_v46 }
0x106a   :  { %7304 = vtanh.f32 %v8566_v52 }
0x1073   :  { %v7303_v54 = vpop.eup %7302 }
0x1074   :  { %v1980_v55 = vmul.f32 %v7303_v54, %v8286_v30  ;;  %v7305_v60 = vpop.eup %7304 }
0x1076   :  { %v1981_v58 = vadd.f32 %v1980_v55, %v8289_v32 }
0x1078   :  { %1984 = vrot.lane.b32.xlu1 %v1981_v58, %s7867_s3  ;;  %v1982_v17 = vmul.f32 %v1981_v58, %v8479_v42 }
0x107c   :  { %1068 = vrot.lane.b32.xlu1 %v1066_v59, %s7868_s10 }
0x1080   :  { %1531 = vrot.lane.b32.xlu1 %v7305_v60, %s7867_s3 }
0x10ea   :  { %v1985_v61 = vpop.permute.xlu1 %1984 }
0x10eb   :  { %v1987_v62 = vmul.f32 %v1985_v61, %v1981_v58 }
0x10ed   :  { %1989 = vrot.lane.b32.xlu0 %v1987_v62, %s7868_s10 }
0x10ee   :  { %v1069_v63 = vpop.permute.xlu1 %1068 }
0x10ef   :  { %v8575_v0 = vadd.f32 %v1069_v63, %v1061_v39  ;;  %v2421_v63 = vrot.slane %v8522_v6, 7 }
0x10f1   :  { %7306 = vtanh.f32 %v8575_v0 }
0x10f2   :  { %v1532_v10 = vpop.permute.xlu1 %1531 }
0x10f3   :  { %v1534_v13 = vmul.f32 %v1532_v10, %v1517_v12 }
0x10fb   :  { %v7307_v5 = vpop.eup %7306 }
0x10fc   :  { %1074 = vrot.lane.b32.xlu0 %v7307_v5, %s7867_s3  ;;  %v2422_v5 = vrot.slane %v8524_v8, 7 }
0x1100   :  { %1536 = vrot.lane.b32.xlu0 %v1534_v13, %s7868_s10 }
0x115f   :  { %v1990_v16 = vpop.permute.xlu0 %1989 }
0x1160   :  { %v8581_v21 = vadd.f32 %v1990_v16, %v1982_v17 }
0x1162   :  { %7308 = vtanh.f32 %v8581_v21 }
0x116c   :  { %v7309_v45 = vpop.eup %7308 }
0x116d   :  { %1995 = vrot.lane.b32.xlu1 %v7309_v45, %s7867_s3 }
0x116e   :  { %v1075_v22 = vpop.permute.xlu0 %1074 }
0x116f   :  { %v1077_v25 = vmul.f32 %v1075_v22, %v1060_v36 }
0x1171   :  { %1611 = vrot.lane.b32.xlu1 %v1077_v25, %s7868_s10 }
0x1172   :  { %v1537_v23 = vpop.permute.xlu0 %1536 }
0x1173   :  { %6308 = vmatmul.mubr.msk.f32.vlgmr.msra.gmra.mrb[12].mxu1 %vm438_vm7, %v1537_v23 }
0x1174   :  { %6867 = vmatpush3.bf16.msra.mxu1 %v8457_v3  ;;  %6318 = vmatprep.mubr.msk.f32.mxu1 %vm7864_vm0, %v7865_v2 }
0x1175   :  { %6868 = vmatprep.subr.bf16.mxu1 %v7863_v1 }
0x1178   :  { %6870 = vmatpush3.bf16.msra.mxu1 %v8461_v9 }
0x1179   :  { %6889 = vmatprep.subr.bf16.mxu1 %v7863_v1 }
0x11df   :  { %v1996_v42 = vpop.permute.xlu1 %1995 }
0x11e0   :  { %v1998_v12 = vmul.f32 %v1996_v42, %v1981_v58 }
0x11e2   :  { %2000 = vrot.lane.b32.xlu0 %v1998_v12, %s7868_s10 }
0x11e3   :  { %v1612_v27 = vpop.permute.xlu1 %1611 }
0x11e4   :  { %6319 = vmatmul.mubr.msk.f32.vlgmr.msra.gmra.mrb[12].mxu1 %vm438_vm7, %v1612_v27 }
0x11e5   :  { %6891 = vmatpush3.bf16.msra.mxu1 %v8352_v28  ;;  %6362 = vmatprep.mubr.msk.f32.mxu1 %vm7864_vm0, %v7865_v2 }
0x11e6   :  { %6892 = vmatprep.subr.bf16.mxu1 %v7863_v1 }
0x11e9   :  { %6894 = vmatpush3.bf16.msra.mxu1 %v8355_v31 }
0x11ea   :  { %6895 = vmatprep.subr.bf16.mxu1 %v7863_v1 }
0x1254   :  { %v8601_v29 = vpop.permute.xlu0 %2000 }
0x1255   :  { %6363 = vmatmul.mubr.msk.f32.vlgmr.msra.gmra.mrb[14].mxu1 %vm438_vm7, %v8601_v29 }
0x1256   :  { %6897 = vmatpush3.bf16.msra.mxu1 %v8362_v38  ;;  %6373 = vmatprep.mubr.msk.f32.mxu1 %vm7864_vm0, %v7865_v2 }
0x1257   :  { %6898 = vmatprep.subr.bf16.mxu1 %v7863_v1 }
0x125a   :  { %6900 = vmatpush3.bf16.msra.mxu1 %v8369_v43 }
0x125b   :  { %6913 = vmatprep.subr.bf16.mxu1 %v7863_v1 }
0x125d   :  { %6374 = vmatmul.mubr.msk.f32.vlgmr.msra.gmra.mrb[14].mxu1 %vm438_vm7, %v1537_v23 }
0x125e   :  { %6915 = vmatpush3.bf16.msra.mxu1 %v8257_v11  ;;  %6406 = vmatprep.mubr.msk.f32.mxu1 %vm7864_vm0, %v7865_v2 }
0x125f   :  { %6916 = vmatprep.subr.bf16.mxu1 %v7863_v1 }
0x1262   :  { %6918 = vmatpush3.bf16.msra.mxu1 %v8269_v14 }
0x1263   :  { %6919 = vmatprep.subr.bf16.mxu1 %v7863_v1 }
0x1265   :  { %6407 = vmatmul.mubr.msk.f32.vlgmr.msra.gmra.mrb[16].mxu1 %vm438_vm7, %v8546_v40 }
0x1266   :  { %6921 = vmatpush3.bf16.msra.mxu1 %v8310_v49  ;;  %6417 = vmatprep.mubr.msk.f32.mxu1 %vm7864_vm0, %v7865_v2 }
0x1267   :  { %6922 = vmatprep.subr.bf16.mxu1 %v7863_v1 }
0x126a   :  { %6924 = vmatpush3.bf16.msra.mxu1 %v8321_v56 }
0x126b   :  { %6925 = vmatprep.subr.bf16.mxu1 %v7863_v1 }
0x12b7   :  { %v1681_v33 = vpop.f32.mrb[12].mxu1 }
0x12b8   :  { %v6320_v34 = vpop.f32.mrb[13].mxu1  ;;  %v7169_v12 = vadd.f32 %v8536_v19, %v1681_v33 }
0x1330   :  { %v2140_v35 = vpop.f32.mrb[14].mxu1 }
0x1331   :  { %v6375_v36 = vpop.f32.mrb[15].mxu1  ;;  %v7171_v39 = vadd.f32 %v8403_v4, %v2140_v35 }
0x1338   :  { %v2402_v37 = vpop.f32.mrb[16].mxu1 }
0x1339   :  { %v2407_v15 = vrot.slane %v2402_v37, 5  ;;  %v2408_v44 = vrot.slane %v2402_v37, 6  ;;  %v6408_v46 = vpop.f32.mrb[17].mxu1 }
0x133b   :  { %v2411_v40 = vadd.f32 %v2407_v15, %v8279_v18  ;;  %v2412_v47 = vadd.f32 %v2408_v44, %v8281_v20 }
0x133d   :  { %7310 = vtanh.f32 %v2411_v40 }
0x133e   :  { %7312 = vtanh.f32 %v2412_v47 }
0x133f   :  { %7314 = vtanh.f32 %v7171_v39 }
0x1347   :  { %v7311_v50 = vpop.eup %7310 }
0x1348   :  { %v7313_v41 = vpop.eup %7312  ;;  %v2415_v26 = vmul.f32 %v7311_v50, %v8286_v30 }
0x1349   :  { %v2416_v54 = vmul.f32 %v7313_v41, %v8286_v30  ;;  %v7315_v25 = vpop.eup %7314 }
0x134a   :  { %v2417_v55 = vadd.f32 %v2415_v26, %v8289_v32  ;;  %v2146_v42 = vmul.f32 %v7315_v25, %v8286_v30 }
0x134b   :  { %v2418_v58 = vadd.f32 %v2416_v54, %v8289_v32 }
0x134c   :  { %2429 = vrot.lane.b32.xlu1 %v2417_v55, %s7867_s3  ;;  %v2425_v10 = vmul.f32 %v2421_v63, %v2417_v55  ;;  %v2147_v8 = vadd.f32 %v2146_v42, %v8289_v32 }
0x134d   :  { %2431 = vrot.lane.b32.xlu0 %v2418_v58, %s7867_s3  ;;  %v2426_v13 = vmul.f32 %v2422_v5, %v2418_v58 }
0x13be   :  { %v2430_v59 = vpop.permute.xlu1 %2429 }
0x13bf   :  { %v2432_v60 = vpop.permute.xlu0 %2431  ;;  %v2435_v61 = vmul.f32 %v2430_v59, %v2417_v55 }
0x13c0   :  { %v2436_v62 = vmul.f32 %v2432_v60, %v2418_v58 }
0x13c1   :  { %2439 = vrot.lane.b32.xlu1 %v2435_v61, %s7868_s10 }
0x13c2   :  { %2441 = vrot.lane.b32.xlu0 %v2436_v62, %s7868_s10 }
0x1433   :  { %v2440_v17 = vpop.permute.xlu1 %2439 }
0x1434   :  { %v2442_v16 = vpop.permute.xlu0 %2441  ;;  %v8639_v45 = vadd.f32 %v2440_v17, %v2425_v10 }
0x1435   :  { %v8641_v22 = vadd.f32 %v2442_v16, %v2426_v13 }
0x1436   :  { %7316 = vtanh.f32 %v8639_v45 }
0x1437   :  { %7318 = vtanh.f32 %v8641_v22 }
0x1438   :  { %7320 = vtanh.f32 %v7169_v12 }
0x1440   :  { %v7317_v23 = vpop.eup %7316 }
0x1441   :  { %v7319_v6 = vpop.eup %7318  ;;  %2451 = vrot.lane.b32.xlu1 %v7317_v23, %s7867_s3 }
0x1442   :  { %2453 = vrot.lane.b32.xlu0 %v7319_v6, %s7867_s3  ;;  %v7321_v36 = vpop.eup %7320 }
0x1443   :  { %v1687_v46 = vmul.f32 %v7321_v36, %v8286_v30 }
0x1445   :  { %v1688_v47 = vadd.f32 %v1687_v46, %v8289_v32 }
0x1446   :  { %2150 = vrot.lane.b32.xlu0 %v2147_v8, %s7867_s3 }
0x14b3   :  { %v2452_v27 = vpop.permute.xlu1 %2451 }
0x14b4   :  { %v2454_v34 = vpop.permute.xlu0 %2453  ;;  %v2457_v35 = vmul.f32 %v2452_v27, %v2417_v55 }
0x14b5   :  { %v2458_v37 = vmul.f32 %v2454_v34, %v2418_v58 }
0x14b6   :  { %v2461_v15 = vrot.slane %v2457_v35, 3 }
0x14b7   :  { %v2462_v44 = vrot.slane %v2458_v37, 2 }
0x14b8   :  { %v2151_v50 = vpop.permute.xlu0 %2150 }
0x14b9   :  { %v2463_v40 = vsel %vm567_vm6, %v2462_v44, %v2461_v15  ;;  %v2153_v33 = vmul.f32 %v2151_v50, %v2147_v8 }
0x14ba   :  { %2464 = vrot.lane.b32.xlu1 %v2463_v40, %s7868_s10 }
0x14be   :  { %1691 = vrot.lane.b32.xlu1 %v1688_v47, %s7867_s3 }
0x14c2   :  { %2155 = vrot.lane.b32.xlu1 %v2153_v33, %s7868_s10 }
0x152c   :  { %v8657_v41 = vpop.permute.xlu1 %2464 }
0x152d   :  { %6418 = vmatmul.mubr.msk.f32.vlgmr.msra.gmra.mrb[18].mxu1 %vm438_vm7, %v8657_v41 }
0x152e   :  { %6927 = vmatpush3.bf16.msra.mxu1 %v8318_v53  ;;  %6428 = vmatprep.mubr.msk.f32.mxu1 %vm7864_vm0, %v7865_v2 }
0x152f   :  { %6928 = vmatprep.subr.bf16.mxu1 %v7863_v1 }
0x1530   :  { %v1692_v58 = vpop.permute.xlu1 %1691 }
0x1531   :  { %v1694_v63 = vmul.f32 %v1692_v58, %v1688_v47 }
0x1532   :  { %6930 = vmatpush3.bf16.msra.mxu1 %v8325_v57 }
0x1533   :  { %6943 = vmatprep.subr.bf16.mxu1 %v7863_v1 }
0x1534   :  { %v2156_v59 = vpop.permute.xlu1 %2155 }
0x1535   :  { %6429 = vmatmul.mubr.msk.f32.vlgmr.msra.gmra.mrb[18].mxu1 %vm438_vm7, %v8601_v29  ;;  %v2148_v29 = vmul.f32 %v2147_v8, %v8566_v52  ;;  %v1689_v52 = vmul.f32 %v1688_v47, %v8575_v0 }
0x1536   :  { %6945 = vmatpush3.bf16.msra.mxu1 %v8440_v48  ;;  %6461 = vmatprep.mubr.msk.f32.mxu1 %vm7864_vm0, %v7865_v2 }
0x1537   :  { %6946 = vmatprep.subr.bf16.mxu1 %v7863_v1  ;;  %v8677_v60 = vadd.f32 %v2156_v59, %v2148_v29 }
0x153a   :  { %6948 = vmatpush3.bf16.msra.mxu1 %v8446_v51 }
0x153b   :  { %6949 = vmatprep.subr.bf16.mxu1 %v7863_v1 }
0x1608   :  { %v2604_v26 = vpop.f32.mrb[18].mxu1 }
0x1609   :  { %v7173_v54 = vadd.f32 %v8342_v7, %v2604_v26  ;;  %v6430_v55 = vpop.f32.mrb[19].mxu1 }
0x160b   :  { %7322 = vtanh.f32 %v7173_v54 }
0x160c   :  { %7324 = vtanh.f32 %v8677_v60 }
0x1615   :  { %v7323_v61 = vpop.eup %7322 }
0x1616   :  { %v2610_v62 = vmul.f32 %v7323_v61, %v8286_v30  ;;  %v7325_v7 = vpop.eup %7324 }
0x1618   :  { %v2611_v39 = vadd.f32 %v2610_v62, %v8289_v32 }
0x161a   :  { %2614 = vrot.lane.b32.xlu0 %v2611_v39, %s7867_s3  ;;  %v2612_v42 = vmul.f32 %v2611_v39, %v8581_v21 }
0x161e   :  { %1696 = vrot.lane.b32.xlu0 %v1694_v63, %s7868_s10 }
0x1622   :  { %2161 = vrot.lane.b32.xlu0 %v7325_v7, %s7867_s3 }
0x168c   :  { %v2615_v5 = vpop.permute.xlu0 %2614 }
0x168d   :  { %v2617_v10 = vmul.f32 %v2615_v5, %v2611_v39 }
0x168f   :  { %2619 = vrot.lane.b32.xlu1 %v2617_v10, %s7868_s10 }
0x1690   :  { %v1697_v13 = vpop.permute.xlu0 %1696 }
0x1691   :  { %v8687_v17 = vadd.f32 %v1697_v13, %v1689_v52  ;;  %v3051_v52 = vrot.slane %v8639_v45, 7  ;;  %v3052_v13 = vrot.slane %v8641_v22, 7 }
0x1693   :  { %7326 = vtanh.f32 %v8687_v17 }
0x1694   :  { %v2162_v25 = vpop.permute.xlu0 %2161 }
0x1695   :  { %v2164_v23 = vmul.f32 %v2162_v25, %v2147_v8 }
0x169d   :  { %v7327_v16 = vpop.eup %7326 }
0x169e   :  { %1702 = vrot.lane.b32.xlu1 %v7327_v16, %s7867_s3 }
0x16a2   :  { %2166 = vrot.lane.b32.xlu1 %v2164_v23, %s7868_s10 }
0x1701   :  { %v2620_v6 = vpop.permute.xlu1 %2619 }
0x1702   :  { %v8693_v12 = vadd.f32 %v2620_v6, %v2612_v42 }
0x1704   :  { %7328 = vtanh.f32 %v8693_v12 }
0x170e   :  { %v7329_v0 = vpop.eup %7328 }
0x170f   :  { %2625 = vrot.lane.b32.xlu0 %v7329_v0, %s7867_s3 }
0x1710   :  { %v1703_v27 = vpop.permute.xlu1 %1702 }
0x1711   :  { %v1705_v34 = vmul.f32 %v1703_v27, %v1688_v47 }
0x1713   :  { %2241 = vrot.lane.b32.xlu0 %v1705_v34, %s7868_s10 }
0x1714   :  { %v2167_v35 = vpop.permute.xlu1 %2166 }
0x1715   :  { %6385 = vmatmul.mubr.msk.f32.vlgmr.msra.gmra.mrb[10].mxu0 %vm438_vm7, %v2167_v35 }
0x1716   :  { %6909 = vmatpush3.bf16.msra.mxu0 %v8457_v3  ;;  %6395 = vmatprep.mubr.msk.f32.mxu0 %vm7864_vm0, %v7865_v2 }
0x1717   :  { %6910 = vmatprep.subr.bf16.mxu0 %v7863_v1 }
0x171a   :  { %6912 = vmatpush3.bf16.msra.mxu0 %v8461_v9 }
0x171b   :  { %6931 = vmatprep.subr.bf16.mxu0 %v7863_v1 }
0x1781   :  { %v2626_v21 = vpop.permute.xlu0 %2625 }
0x1782   :  { %v2628_v8 = vmul.f32 %v2626_v21, %v2611_v39 }
0x1784   :  { %2630 = vrot.lane.b32.xlu1 %v2628_v8, %s7868_s10 }
0x1785   :  { %v2242_v36 = vpop.permute.xlu0 %2241 }
0x1786   :  { %6396 = vmatmul.mubr.msk.f32.vlgmr.msra.gmra.mrb[10].mxu0 %vm438_vm7, %v2242_v36 }
0x1787   :  { %6933 = vmatpush3.bf16.msra.mxu0 %v8352_v28  ;;  %6439 = vmatprep.mubr.msk.f32.mxu0 %vm7864_vm0, %v7865_v2 }
0x1788   :  { %6934 = vmatprep.subr.bf16.mxu0 %v7863_v1 }
0x178b   :  { %6936 = vmatpush3.bf16.msra.mxu0 %v8355_v31 }
0x178c   :  { %6937 = vmatprep.subr.bf16.mxu0 %v7863_v1 }
0x17f6   :  { %v8713_v37 = vpop.permute.xlu1 %2630 }
0x17f7   :  { %6440 = vmatmul.mubr.msk.f32.vlgmr.msra.gmra.mrb[12].mxu0 %vm438_vm7, %v8713_v37 }
0x17f8   :  { %6939 = vmatpush3.bf16.msra.mxu0 %v8362_v38  ;;  %6450 = vmatprep.mubr.msk.f32.mxu0 %vm7864_vm0, %v7865_v2 }
0x17f9   :  { %6940 = vmatprep.subr.bf16.mxu0 %v7863_v1 }
0x17fc   :  { %6942 = vmatpush3.bf16.msra.mxu0 %v8369_v43 }
0x17fd   :  { %6955 = vmatprep.subr.bf16.mxu0 %v7863_v1 }
0x17ff   :  { %6451 = vmatmul.mubr.msk.f32.vlgmr.msra.gmra.mrb[12].mxu0 %vm438_vm7, %v2167_v35 }
0x1800   :  { %6957 = vmatpush3.bf16.msra.mxu0 %v8257_v11  ;;  %6483 = vmatprep.mubr.msk.f32.mxu0 %vm7864_vm0, %v7865_v2 }
0x1801   :  { %6958 = vmatprep.subr.bf16.mxu0 %v7863_v1 }
0x1804   :  { %6960 = vmatpush3.bf16.msra.mxu0 %v8269_v14 }
0x1805   :  { %6961 = vmatprep.subr.bf16.mxu0 %v7863_v1 }
0x1807   :  { %6484 = vmatmul.mubr.msk.f32.vlgmr.msra.gmra.mrb[14].mxu0 %vm438_vm7, %v8657_v41 }
0x1808   :  { %6963 = vmatpush3.bf16.msra.mxu0 %v8310_v49  ;;  %6494 = vmatprep.mubr.msk.f32.mxu0 %vm7864_vm0, %v7865_v2 }
0x1809   :  { %6964 = vmatprep.subr.bf16.mxu0 %v7863_v1 }
0x180c   :  { %6966 = vmatpush3.bf16.msra.mxu0 %v8321_v56 }
0x180d   :  { %6967 = vmatprep.subr.bf16.mxu0 %v7863_v1 }
0x1859   :  { %v2311_v15 = vpop.f32.mrb[10].mxu0 }
0x185a   :  { %v6397_v44 = vpop.f32.mrb[11].mxu0  ;;  %v7172_v35 = vadd.f32 %v8536_v19, %v2311_v15 }
0x18d2   :  { %v2770_v46 = vpop.f32.mrb[12].mxu0 }
0x18d3   :  { %v6452_v40 = vpop.f32.mrb[13].mxu0  ;;  %v7174_v10 = vadd.f32 %v8403_v4, %v2770_v46 }
0x18da   :  { %v3032_v47 = vpop.f32.mrb[14].mxu0 }
0x18db   :  { %v3037_v50 = vrot.slane %v3032_v47, 4  ;;  %v3038_v33 = vrot.slane %v3032_v47, 5  ;;  %v6485_v26 = vpop.f32.mrb[15].mxu0 }
0x18dd   :  { %v3041_v41 = vadd.f32 %v3037_v50, %v8279_v18  ;;  %v3042_v54 = vadd.f32 %v3038_v33, %v8281_v20 }
0x18df   :  { %7330 = vtanh.f32 %v3041_v41 }
0x18e0   :  { %7332 = vtanh.f32 %v3042_v54 }
0x18e1   :  { %7334 = vtanh.f32 %v7174_v10 }
0x18e9   :  { %v7331_v55 = vpop.eup %7330 }
0x18ea   :  { %v7333_v58 = vpop.eup %7332  ;;  %v3045_v59 = vmul.f32 %v7331_v55, %v8286_v30 }
0x18eb   :  { %v3046_v29 = vmul.f32 %v7333_v58, %v8286_v30  ;;  %v7335_v27 = vpop.eup %7334  ;;  %v8787_v58 = vld [vmem:[#allocation10] ss:$0 sm:$0xff] }
0x18ec   :  { %v3047_v61 = vadd.f32 %v3045_v59, %v8289_v32  ;;  %v2776_v4 = vmul.f32 %v7335_v27, %v8286_v30 }
0x18ed   :  { %v3048_v62 = vadd.f32 %v3046_v29, %v8289_v32 }
0x18ee   :  { %3059 = vrot.lane.b32.xlu0 %v3047_v61, %s7867_s3  ;;  %v3055_v16 = vmul.f32 %v3051_v52, %v3047_v61  ;;  %v2777_v22 = vadd.f32 %v2776_v4, %v8289_v32 }
0x18ef   :  { %3061 = vrot.lane.b32.xlu1 %v3048_v62, %s7867_s3  ;;  %v3056_v25 = vmul.f32 %v3052_v13, %v3048_v62 }
0x1960   :  { %v3060_v39 = vpop.permute.xlu0 %3059 }
0x1961   :  { %v3062_v63 = vpop.permute.xlu1 %3061  ;;  %v3065_v7 = vmul.f32 %v3060_v39, %v3047_v61 }
0x1962   :  { %v3066_v5 = vmul.f32 %v3062_v63, %v3048_v62 }
0x1963   :  { %3069 = vrot.lane.b32.xlu0 %v3065_v7, %s7868_s10 }
0x1964   :  { %3071 = vrot.lane.b32.xlu1 %v3066_v5, %s7868_s10 }
0x19d5   :  { %v3070_v23 = vpop.permute.xlu0 %3069 }
0x19d6   :  { %v3072_v42 = vpop.permute.xlu1 %3071  ;;  %v8751_v6 = vadd.f32 %v3070_v23, %v3055_v16 }
0x19d7   :  { %v8753_v0 = vadd.f32 %v3072_v42, %v3056_v25 }
0x19d8   :  { %7336 = vtanh.f32 %v8751_v6 }
0x19d9   :  { %7338 = vtanh.f32 %v8753_v0 }
0x19da   :  { %7340 = vtanh.f32 %v7172_v35 }
0x19e2   :  { %v7337_v34 = vpop.eup %7336 }
0x19e3   :  { %v7339_v45 = vpop.eup %7338  ;;  %3081 = vrot.lane.b32.xlu0 %v7337_v34, %s7867_s3 }
0x19e4   :  { %3083 = vrot.lane.b32.xlu1 %v7339_v45, %s7867_s3  ;;  %v7341_v44 = vpop.eup %7340 }
0x19e5   :  { %v2317_v50 = vmul.f32 %v7341_v44, %v8286_v30 }
0x19e7   :  { %v2318_v26 = vadd.f32 %v2317_v50, %v8289_v32 }
0x19e8   :  { %2780 = vrot.lane.b32.xlu1 %v2777_v22, %s7867_s3 }
0x1a55   :  { %v3082_v21 = vpop.permute.xlu0 %3081 }
0x1a56   :  { %v3084_v8 = vpop.permute.xlu1 %3083  ;;  %v3087_v36 = vmul.f32 %v3082_v21, %v3047_v61 }
0x1a57   :  { %v3088_v46 = vmul.f32 %v3084_v8, %v3048_v62  ;;  %v2778_v62 = vmul.f32 %v2777_v22, %v8677_v60  ;;  %v2319_v60 = vmul.f32 %v2318_v26, %v8687_v17 }
0x1a58   :  { %v3091_v40 = vrot.slane %v3087_v36, 4 }
0x1a59   :  { %v3092_v47 = vrot.slane %v3088_v46, 3 }
0x1a5a   :  { %v2781_v41 = vpop.permute.xlu1 %2780 }
0x1a5b   :  { %v3093_v33 = vsel %vm567_vm6, %v3092_v47, %v3091_v40  ;;  %v2783_v15 = vmul.f32 %v2781_v41, %v2777_v22 }
0x1a5c   :  { %3094 = vrot.lane.b32.xlu0 %v3093_v33, %s7868_s10 }
0x1a60   :  { %2321 = vrot.lane.b32.xlu0 %v2318_v26, %s7867_s3 }
0x1a64   :  { %2785 = vrot.lane.b32.xlu0 %v2783_v15, %s7868_s10 }
0x1ace   :  { %v8769_v54 = vpop.permute.xlu0 %3094 }
0x1acf   :  { %6495 = vmatmul.mubr.msk.f32.vlgmr.msra.gmra.mrb[16].mxu0 %vm438_vm7, %v8769_v54 }
0x1ad0   :  { %6969 = vmatpush3.bf16.msra.mxu0 %v8318_v53  ;;  %6505 = vmatprep.mubr.msk.f32.mxu0 %vm7864_vm0, %v7865_v2 }
0x1ad1   :  { %6970 = vmatprep.subr.bf16.mxu0 %v7863_v1 }
0x1ad2   :  { %v2322_v61 = vpop.permute.xlu0 %2321 }
0x1ad3   :  { %v2324_v10 = vmul.f32 %v2322_v61, %v2318_v26 }
0x1ad4   :  { %6972 = vmatpush3.bf16.msra.mxu0 %v8325_v57 }
0x1ad5   :  { %6985 = vmatprep.subr.bf16.mxu0 %v7863_v1 }
0x1ad7   :  { %6506 = vmatmul.mubr.msk.f32.vlgmr.msra.gmra.mrb[16].mxu0 %vm438_vm7, %v8713_v37  ;;  %v2786_v37 = vpop.permute.xlu0 %2785 }
0x1ad8   :  { %6987 = vmatpush3.bf16.msra.mxu0 %v8440_v48  ;;  %6538 = vmatprep.mubr.msk.f32.mxu0 %vm7864_vm0, %v7865_v2  ;;  %v8791_v39 = vadd.f32 %v2786_v37, %v2778_v62 }
0x1ad9   :  { %6988 = vmatprep.subr.bf16.mxu0 %v7863_v1 }
0x1adc   :  { %6990 = vmatpush3.bf16.msra.mxu0 %v8446_v51 }
0x1add   :  { %6991 = vmatprep.subr.bf16.mxu0 %v7863_v1 }
0x1baa   :  { %v3234_v55 = vpop.f32.mrb[16].mxu0 }
0x1bab   :  { %v7176_v59 = vadd.f32 %v8787_v58, %v3234_v55  ;;  %v6507_v29 = vpop.f32.mrb[17].mxu0 }
0x1bad   :  { %7342 = vtanh.f32 %v7176_v59 }
0x1bae   :  { %7344 = vtanh.f32 %v8791_v39 }
0x1bb7   :  { %v7343_v63 = vpop.eup %7342 }
0x1bb8   :  { %v3240_v7 = vmul.f32 %v7343_v63, %v8286_v30  ;;  %v7345_v52 = vpop.eup %7344 }
0x1bba   :  { %v3241_v5 = vadd.f32 %v3240_v7, %v8289_v32 }
0x1bbc   :  { %3244 = vrot.lane.b32.xlu1 %v3241_v5, %s7867_s3  ;;  %v3242_v4 = vmul.f32 %v3241_v5, %v8693_v12 }
0x1bc0   :  { %2326 = vrot.lane.b32.xlu1 %v2324_v10, %s7868_s10 }
0x1bc4   :  { %2791 = vrot.lane.b32.xlu1 %v7345_v52, %s7867_s3 }
0x1c2e   :  { %v3245_v13 = vpop.permute.xlu1 %3244 }
0x1c2f   :  { %v3247_v16 = vmul.f32 %v3245_v13, %v3241_v5 }
0x1c31   :  { %3249 = vrot.lane.b32.xlu0 %v3247_v16, %s7868_s10  ;;  %v8865_v16 = vld [vmem:[%s9210_s9] ss:$0 sm:$0xff] }
0x1c32   :  { %v2327_v25 = vpop.permute.xlu1 %2326 }
0x1c33   :  { %v8801_v23 = vadd.f32 %v2327_v25, %v2319_v60  ;;  %v3681_v25 = vrot.slane %v8751_v6, 7 }
0x1c35   :  { %7346 = vtanh.f32 %v8801_v23 }
0x1c36   :  { %v2792_v27 = vpop.permute.xlu1 %2791 }
0x1c37   :  { %v2794_v34 = vmul.f32 %v2792_v27, %v2777_v22 }
0x1c3f   :  { %v7347_v42 = vpop.eup %7346 }
0x1c40   :  { %2332 = vrot.lane.b32.xlu0 %v7347_v42, %s7867_s3  ;;  %v3682_v42 = vrot.slane %v8753_v0, 7 }
0x1c44   :  { %2796 = vrot.lane.b32.xlu0 %v2794_v34, %s7868_s10 }
0x1ca3   :  { %v3250_v45 = vpop.permute.xlu0 %3249 }
0x1ca4   :  { %v8807_v35 = vadd.f32 %v3250_v45, %v3242_v4 }
0x1ca6   :  { %7348 = vtanh.f32 %v8807_v35 }
0x1cb0   :  { %v7349_v17 = vpop.eup %7348 }
0x1cb1   :  { %3255 = vrot.lane.b32.xlu1 %v7349_v17, %s7867_s3 }
0x1cb2   :  { %v2333_v21 = vpop.permute.xlu0 %2332 }
0x1cb3   :  { %v2335_v8 = vmul.f32 %v2333_v21, %v2318_v26 }
0x1cb5   :  { %2871 = vrot.lane.b32.xlu1 %v2335_v8, %s7868_s10 }
0x1cb6   :  { %v2797_v36 = vpop.permute.xlu0 %2796 }
0x1cb7   :  { %6462 = vmatmul.mubr.msk.f32.vlgmr.msra.gmra.mrb[20].mxu1 %vm438_vm7, %v2797_v36 }
0x1cb8   :  { %6951 = vmatpush3.bf16.msra.mxu1 %v8457_v3  ;;  %6472 = vmatprep.mubr.msk.f32.mxu1 %vm7864_vm0, %v7865_v2 }
0x1cb9   :  { %6952 = vmatprep.subr.bf16.mxu1 %v7863_v1 }
0x1cbc   :  { %6954 = vmatpush3.bf16.msra.mxu1 %v8461_v9 }
0x1cbd   :  { %6973 = vmatprep.subr.bf16.mxu1 %v7863_v1 }
0x1d23   :  { %v3256_v12 = vpop.permute.xlu1 %3255 }
0x1d24   :  { %v3258_v22 = vmul.f32 %v3256_v12, %v3241_v5 }
0x1d26   :  { %3260 = vrot.lane.b32.xlu0 %v3258_v22, %s7868_s10 }
0x1d27   :  { %v2872_v44 = vpop.permute.xlu1 %2871 }
0x1d28   :  { %6473 = vmatmul.mubr.msk.f32.vlgmr.msra.gmra.mrb[20].mxu1 %vm438_vm7, %v2872_v44 }
0x1d29   :  { %6975 = vmatpush3.bf16.msra.mxu1 %v8352_v28  ;;  %6516 = vmatprep.mubr.msk.f32.mxu1 %vm7864_vm0, %v7865_v2 }
0x1d2a   :  { %6976 = vmatprep.subr.bf16.mxu1 %v7863_v1 }
0x1d2d   :  { %6978 = vmatpush3.bf16.msra.mxu1 %v8355_v31 }
0x1d2e   :  { %6979 = vmatprep.subr.bf16.mxu1 %v7863_v1 }
0x1d98   :  { %v8827_v46 = vpop.permute.xlu0 %3260 }
0x1d99   :  { %6517 = vmatmul.mubr.msk.f32.vlgmr.msra.gmra.mrb[22].mxu1 %vm438_vm7, %v8827_v46 }
0x1d9a   :  { %6981 = vmatpush3.bf16.msra.mxu1 %v8362_v38  ;;  %6527 = vmatprep.mubr.msk.f32.mxu1 %vm7864_vm0, %v7865_v2 }
0x1d9b   :  { %6982 = vmatprep.subr.bf16.mxu1 %v7863_v1 }
0x1d9e   :  { %6984 = vmatpush3.bf16.msra.mxu1 %v8369_v43 }
0x1d9f   :  { %6997 = vmatprep.subr.bf16.mxu1 %v7863_v1 }
0x1da1   :  { %6528 = vmatmul.mubr.msk.f32.vlgmr.msra.gmra.mrb[22].mxu1 %vm438_vm7, %v2797_v36 }
0x1da2   :  { %6999 = vmatpush3.bf16.msra.mxu1 %v8257_v11  ;;  %6560 = vmatprep.mubr.msk.f32.mxu1 %vm7864_vm0, %v7865_v2 }
0x1da3   :  { %7000 = vmatprep.subr.bf16.mxu1 %v7863_v1 }
0x1da6   :  { %7002 = vmatpush3.bf16.msra.mxu1 %v8269_v14 }
0x1da7   :  { %7003 = vmatprep.subr.bf16.mxu1 %v7863_v1 }
0x1da9   :  { %6561 = vmatmul.mubr.msk.f32.vlgmr.msra.gmra.mrb[24].mxu1 %vm438_vm7, %v8769_v54 }
0x1daa   :  { %7005 = vmatpush3.bf16.msra.mxu1 %v8310_v49  ;;  %6571 = vmatprep.mubr.msk.f32.mxu1 %vm7864_vm0, %v7865_v2 }
0x1dab   :  { %7006 = vmatprep.subr.bf16.mxu1 %v7863_v1 }
0x1dae   :  { %7008 = vmatpush3.bf16.msra.mxu1 %v8321_v56 }
0x1daf   :  { %7009 = vmatprep.subr.bf16.mxu1 %v7863_v1 }
0x1dfb   :  { %v2941_v40 = vpop.f32.mrb[20].mxu1 }
0x1dfc   :  { %v6474_v47 = vpop.f32.mrb[21].mxu1  ;;  %v7175_v22 = vadd.f32 %v8536_v19, %v2941_v40 }
0x1e74   :  { %v3400_v50 = vpop.f32.mrb[22].mxu1 }
0x1e75   :  { %v6529_v33 = vpop.f32.mrb[23].mxu1  ;;  %v7177_v60 = vadd.f32 %v8865_v16, %v3400_v50 }
0x1e7c   :  { %v3662_v26 = vpop.f32.mrb[24].mxu1 }
0x1e7d   :  { %v3667_v41 = vrot.slane %v3662_v26, 3  ;;  %v3668_v15 = vrot.slane %v3662_v26, 4  ;;  %v6562_v55 = vpop.f32.mrb[25].mxu1 }
0x1e7f   :  { %v3671_v54 = vadd.f32 %v3667_v41, %v8279_v18  ;;  %v3672_v59 = vadd.f32 %v3668_v15, %v8281_v20 }
0x1e81   :  { %7350 = vtanh.f32 %v3671_v54 }
0x1e82   :  { %7352 = vtanh.f32 %v3672_v59 }
0x1e83   :  { %7354 = vtanh.f32 %v7177_v60 }
0x1e8b   :  { %v7351_v29 = vpop.eup %7350 }
0x1e8c   :  { %v7353_v61 = vpop.eup %7352  ;;  %v3675_v37 = vmul.f32 %v7351_v29, %v8286_v30 }
0x1e8d   :  { %v3676_v62 = vmul.f32 %v7353_v61, %v8286_v30  ;;  %v7355_v8 = vpop.eup %7354 }
0x1e8e   :  { %v3677_v63 = vadd.f32 %v3675_v37, %v8289_v32  ;;  %v3406_v12 = vmul.f32 %v7355_v8, %v8286_v30 }
0x1e8f   :  { %v3678_v7 = vadd.f32 %v3676_v62, %v8289_v32 }
0x1e90   :  { %3689 = vrot.lane.b32.xlu1 %v3677_v63, %s7867_s3  ;;  %v3685_v27 = vmul.f32 %v3681_v25, %v3677_v63  ;;  %v3407_v0 = vadd.f32 %v3406_v12, %v8289_v32 }
0x1e91   :  { %3691 = vrot.lane.b32.xlu0 %v3678_v7, %s7867_s3  ;;  %v3686_v34 = vmul.f32 %v3682_v42, %v3678_v7 }
0x1f02   :  { %v3690_v5 = vpop.permute.xlu1 %3689 }
0x1f03   :  { %v3692_v10 = vpop.permute.xlu0 %3691  ;;  %v3695_v52 = vmul.f32 %v3690_v5, %v3677_v63 }
0x1f04   :  { %v3696_v13 = vmul.f32 %v3692_v10, %v3678_v7 }
0x1f05   :  { %3699 = vrot.lane.b32.xlu1 %v3695_v52, %s7868_s10 }
0x1f06   :  { %3701 = vrot.lane.b32.xlu0 %v3696_v13, %s7868_s10 }
0x1f77   :  { %v3700_v4 = vpop.permute.xlu1 %3699 }
0x1f78   :  { %v3702_v45 = vpop.permute.xlu0 %3701  ;;  %v8870_v17 = vadd.f32 %v3700_v4, %v3685_v27 }
0x1f79   :  { %v8872_v21 = vadd.f32 %v3702_v45, %v3686_v34 }
0x1f7a   :  { %7356 = vtanh.f32 %v8870_v17 }
0x1f7b   :  { %7358 = vtanh.f32 %v8872_v21 }
0x1f7c   :  { %7360 = vtanh.f32 %v7175_v22 }
0x1f84   :  { %v7357_v36 = vpop.eup %7356 }
0x1f85   :  { %v7359_v6 = vpop.eup %7358  ;;  %3711 = vrot.lane.b32.xlu1 %v7357_v36, %s7867_s3 }
0x1f86   :  { %3713 = vrot.lane.b32.xlu0 %v7359_v6, %s7867_s3  ;;  %v7361_v33 = vpop.eup %7360 }
0x1f87   :  { %v2947_v55 = vmul.f32 %v7361_v33, %v8286_v30 }
0x1f89   :  { %v2948_v59 = vadd.f32 %v2947_v55, %v8289_v32 }
0x1f8a   :  { %3410 = vrot.lane.b32.xlu0 %v3407_v0, %s7867_s3 }
0x1ff7   :  { %v3712_v44 = vpop.permute.xlu1 %3711 }
0x1ff8   :  { %v3714_v47 = vpop.permute.xlu0 %3713  ;;  %v3717_v50 = vmul.f32 %v3712_v44, %v3677_v63 }
0x1ff9   :  { %v3718_v26 = vmul.f32 %v3714_v47, %v3678_v7 }
0x1ffa   :  { %v3721_v41 = vrot.slane %v3717_v50, 5 }
0x1ffb   :  { %v3722_v15 = vrot.slane %v3718_v26, 4 }
0x1ffc   :  { %v3411_v29 = vpop.permute.xlu0 %3410 }
0x1ffd   :  { %v3723_v54 = vsel %vm567_vm6, %v3722_v15, %v3721_v41  ;;  %v3413_v19 = vmul.f32 %v3411_v29, %v3407_v0 }
0x1ffe   :  { %3724 = vrot.lane.b32.xlu1 %v3723_v54, %s7868_s10 }
0x2002   :  { %2951 = vrot.lane.b32.xlu1 %v2948_v59, %s7867_s3 }
0x2006   :  { %3415 = vrot.lane.b32.xlu1 %v3413_v19, %s7868_s10 }
0x2070   :  { %v8888_v40 = vpop.permute.xlu1 %3724 }
0x2071   :  { %6572 = vmatmul.mubr.msk.f32.vlgmr.msra.gmra.mrb[26].mxu1 %vm438_vm7, %v8888_v40 }
0x2072   :  { %7011 = vmatpush3.bf16.msra.mxu1 %v8318_v53  ;;  %6582 = vmatprep.mubr.msk.f32.mxu1 %vm7864_vm0, %v7865_v2 }
0x2073   :  { %7012 = vmatprep.subr.bf16.mxu1 %v7863_v1 }
0x2074   :  { %v2952_v63 = vpop.permute.xlu1 %2951 }
0x2075   :  { %v2954_v60 = vmul.f32 %v2952_v63, %v2948_v59 }
0x2076   :  { %7014 = vmatpush3.bf16.msra.mxu1 %v8325_v57 }
0x2077   :  { %7027 = vmatprep.subr.bf16.mxu1 %v7863_v1 }
0x2078   :  { %v3416_v7 = vpop.permute.xlu1 %3415 }
0x2079   :  { %6583 = vmatmul.mubr.msk.f32.vlgmr.msra.gmra.mrb[26].mxu1 %vm438_vm7, %v8827_v46  ;;  %v3408_v46 = vmul.f32 %v3407_v0, %v8791_v39  ;;  %v2949_v39 = vmul.f32 %v2948_v59, %v8801_v23 }
0x207a   :  { %7029 = vmatpush3.bf16.msra.mxu1 %v8440_v48  ;;  %6615 = vmatprep.mubr.msk.f32.mxu1 %vm7864_vm0, %v7865_v2 }
0x207b   :  { %7030 = vmatprep.subr.bf16.mxu1 %v7863_v1  ;;  %v8908_v5 = vadd.f32 %v3416_v7, %v3408_v46 }
0x207e   :  { %7032 = vmatpush3.bf16.msra.mxu1 %v8446_v51 }
0x207f   :  { %7033 = vmatprep.subr.bf16.mxu1 %v7863_v1 }
0x214c   :  { %v3864_v61 = vpop.f32.mrb[26].mxu1 }
0x214d   :  { %v7179_v37 = vadd.f32 %v8787_v58, %v3864_v61  ;;  %v6584_v62 = vpop.f32.mrb[27].mxu1 }
0x214f   :  { %7362 = vtanh.f32 %v7179_v37 }
0x2150   :  { %7364 = vtanh.f32 %v8908_v5 }
0x2159   :  { %v7363_v10 = vpop.eup %7362 }
0x215a   :  { %v3870_v52 = vmul.f32 %v7363_v10, %v8286_v30  ;;  %v7365_v25 = vpop.eup %7364 }
0x215c   :  { %v3871_v13 = vadd.f32 %v3870_v52, %v8289_v32 }
0x215e   :  { %3874 = vrot.lane.b32.xlu0 %v3871_v13, %s7867_s3  ;;  %v3872_v12 = vmul.f32 %v3871_v13, %v8807_v35 }
0x2162   :  { %2956 = vrot.lane.b32.xlu0 %v2954_v60, %s7868_s10 }
0x2166   :  { %3421 = vrot.lane.b32.xlu0 %v7365_v25, %s7867_s3 }
0x21d0   :  { %v3875_v42 = vpop.permute.xlu0 %3874 }
0x21d1   :  { %v3877_v27 = vmul.f32 %v3875_v42, %v3871_v13 }
0x21d3   :  { %3879 = vrot.lane.b32.xlu1 %v3877_v27, %s7868_s10 }
0x21d4   :  { %v2957_v34 = vpop.permute.xlu0 %2956 }
0x21d5   :  { %v8918_v4 = vadd.f32 %v2957_v34, %v2949_v39  ;;  %v4311_v39 = vrot.slane %v8870_v17, 7  ;;  %v4312_v34 = vrot.slane %v8872_v21, 7 }
0x21d7   :  { %7366 = vtanh.f32 %v8918_v4 }
0x21d8   :  { %v3422_v8 = vpop.permute.xlu0 %3421 }
0x21d9   :  { %v3424_v36 = vmul.f32 %v3422_v8, %v3407_v0 }
0x21e1   :  { %v7367_v45 = vpop.eup %7366 }
0x21e2   :  { %2962 = vrot.lane.b32.xlu1 %v7367_v45, %s7867_s3 }
0x21e6   :  { %3426 = vrot.lane.b32.xlu1 %v3424_v36, %s7868_s10 }
0x2245   :  { %v3880_v6 = vpop.permute.xlu1 %3879 }
0x2246   :  { %v8924_v22 = vadd.f32 %v3880_v6, %v3872_v12 }
0x2248   :  { %7368 = vtanh.f32 %v8924_v22 }
0x2252   :  { %v7369_v23 = vpop.eup %7368 }
0x2253   :  { %3885 = vrot.lane.b32.xlu0 %v7369_v23, %s7867_s3 }
0x2254   :  { %v2963_v44 = vpop.permute.xlu1 %2962 }
0x2255   :  { %v2965_v47 = vmul.f32 %v2963_v44, %v2948_v59 }
0x2257   :  { %3501 = vrot.lane.b32.xlu0 %v2965_v47, %s7868_s10 }
0x2258   :  { %v3427_v50 = vpop.permute.xlu1 %3426 }
0x2259   :  { %6539 = vmatmul.mubr.msk.f32.vlgmr.msra.gmra.mrb[18].mxu0 %vm438_vm7, %v3427_v50 }
0x225a   :  { %6993 = vmatpush3.bf16.msra.mxu0 %v8457_v3  ;;  %6549 = vmatprep.mubr.msk.f32.mxu0 %vm7864_vm0, %v7865_v2 }
0x225b   :  { %6994 = vmatprep.subr.bf16.mxu0 %v7863_v1 }
0x225e   :  { %6996 = vmatpush3.bf16.msra.mxu0 %v8461_v9 }
0x225f   :  { %7015 = vmatprep.subr.bf16.mxu0 %v7863_v1 }
0x22c5   :  { %v3886_v35 = vpop.permute.xlu0 %3885 }
0x22c6   :  { %v3888_v0 = vmul.f32 %v3886_v35, %v3871_v13  ;;  %v8996_v35 = vld [vmem:[%s9252_s30] ss:$0 sm:$0xff] }
0x22c8   :  { %3890 = vrot.lane.b32.xlu1 %v3888_v0, %s7868_s10 }
0x22c9   :  { %v3502_v33 = vpop.permute.xlu0 %3501 }
0x22ca   :  { %6550 = vmatmul.mubr.msk.f32.vlgmr.msra.gmra.mrb[18].mxu0 %vm438_vm7, %v3502_v33 }
0x22cb   :  { %7017 = vmatpush3.bf16.msra.mxu0 %v8352_v28  ;;  %6593 = vmatprep.mubr.msk.f32.mxu0 %vm7864_vm0, %v7865_v2 }
0x22cc   :  { %7018 = vmatprep.subr.bf16.mxu0 %v7863_v1 }
0x22cf   :  { %7020 = vmatpush3.bf16.msra.mxu0 %v8355_v31 }
0x22d0   :  { %7021 = vmatprep.subr.bf16.mxu0 %v7863_v1 }
0x233a   :  { %v8944_v26 = vpop.permute.xlu1 %3890 }
0x233b   :  { %6594 = vmatmul.mubr.msk.f32.vlgmr.msra.gmra.mrb[20].mxu0 %vm438_vm7, %v8944_v26 }
0x233c   :  { %7023 = vmatpush3.bf16.msra.mxu0 %v8362_v38  ;;  %6604 = vmatprep.mubr.msk.f32.mxu0 %vm7864_vm0, %v7865_v2 }
0x233d   :  { %7024 = vmatprep.subr.bf16.mxu0 %v7863_v1 }
0x2340   :  { %7026 = vmatpush3.bf16.msra.mxu0 %v8369_v43 }
0x2341   :  { %7039 = vmatprep.subr.bf16.mxu0 %v7863_v1 }
0x2343   :  { %6605 = vmatmul.mubr.msk.f32.vlgmr.msra.gmra.mrb[20].mxu0 %vm438_vm7, %v3427_v50 }
0x2344   :  { %7041 = vmatpush3.bf16.msra.mxu0 %v8257_v11  ;;  %6637 = vmatprep.mubr.msk.f32.mxu0 %vm7864_vm0, %v7865_v2 }
0x2345   :  { %7042 = vmatprep.subr.bf16.mxu0 %v7863_v1 }
0x2348   :  { %7044 = vmatpush3.bf16.msra.mxu0 %v8269_v14 }
0x2349   :  { %7045 = vmatprep.subr.bf16.mxu0 %v7863_v1 }
0x234b   :  { %6638 = vmatmul.mubr.msk.f32.vlgmr.msra.gmra.mrb[22].mxu0 %vm438_vm7, %v8888_v40 }
0x234c   :  { %7047 = vmatpush3.bf16.msra.mxu0 %v8310_v49  ;;  %6648 = vmatprep.mubr.msk.f32.mxu0 %vm7864_vm0, %v7865_v2 }
0x234d   :  { %7048 = vmatprep.subr.bf16.mxu0 %v7863_v1 }
0x2350   :  { %7050 = vmatpush3.bf16.msra.mxu0 %v8321_v56 }
0x2351   :  { %7051 = vmatprep.subr.bf16.mxu0 %v7863_v1 }
0x239d   :  { %v3571_v41 = vpop.f32.mrb[18].mxu0 }
0x239e   :  { %v6551_v15 = vpop.f32.mrb[19].mxu0  ;;  %v7178_v0 = vadd.f32 %v8996_v35, %v3571_v41 }
0x2416   :  { %v4030_v55 = vpop.f32.mrb[20].mxu0 }
0x2417   :  { %v6606_v54 = vpop.f32.mrb[21].mxu0  ;;  %v7180_v27 = vadd.f32 %v8865_v16, %v4030_v55 }
0x241e   :  { %v4292_v59 = vpop.f32.mrb[22].mxu0 }
0x241f   :  { %v4297_v29 = vrot.slane %v4292_v59, 2  ;;  %v4298_v19 = vrot.slane %v4292_v59, 3  ;;  %v6639_v61 = vpop.f32.mrb[23].mxu0 }
0x2421   :  { %v4301_v40 = vadd.f32 %v4297_v29, %v8279_v18  ;;  %v4302_v37 = vadd.f32 %v4298_v19, %v8281_v20 }
0x2423   :  { %7370 = vtanh.f32 %v4301_v40 }
0x2424   :  { %7372 = vtanh.f32 %v4302_v37 }
0x2425   :  { %7374 = vtanh.f32 %v7180_v27 }
0x242d   :  { %v7371_v62 = vpop.eup %7370 }
0x242e   :  { %v7373_v63 = vpop.eup %7372  ;;  %v4305_v7 = vmul.f32 %v7371_v62, %v8286_v30 }
0x242f   :  { %v4306_v46 = vmul.f32 %v7373_v63, %v8286_v30  ;;  %v7375_v44 = vpop.eup %7374 }
0x2430   :  { %v4307_v10 = vadd.f32 %v4305_v7, %v8289_v32  ;;  %v4036_v50 = vmul.f32 %v7375_v44, %v8286_v30 }
0x2431   :  { %v4308_v52 = vadd.f32 %v4306_v46, %v8289_v32 }
0x2432   :  { %4319 = vrot.lane.b32.xlu0 %v4307_v10, %s7867_s3  ;;  %v4315_v45 = vmul.f32 %v4311_v39, %v4307_v10  ;;  %v4037_v21 = vadd.f32 %v4036_v50, %v8289_v32 }
0x2433   :  { %4321 = vrot.lane.b32.xlu1 %v4308_v52, %s7867_s3  ;;  %v4316_v8 = vmul.f32 %v4312_v34, %v4308_v52 }
0x24a4   :  { %v4320_v13 = vpop.permute.xlu0 %4319 }
0x24a5   :  { %v4322_v60 = vpop.permute.xlu1 %4321  ;;  %v4325_v25 = vmul.f32 %v4320_v13, %v4307_v10 }
0x24a6   :  { %v4326_v42 = vmul.f32 %v4322_v60, %v4308_v52 }
0x24a7   :  { %4329 = vrot.lane.b32.xlu0 %v4325_v25, %s7868_s10 }
0x24a8   :  { %4331 = vrot.lane.b32.xlu1 %v4326_v42, %s7868_s10 }
0x2519   :  { %v4330_v36 = vpop.permute.xlu0 %4329 }
0x251a   :  { %v4332_v12 = vpop.permute.xlu1 %4331  ;;  %v8982_v6 = vadd.f32 %v4330_v36, %v4315_v45 }
0x251b   :  { %v8984_v23 = vadd.f32 %v4332_v12, %v4316_v8 }
0x251c   :  { %7376 = vtanh.f32 %v8982_v6 }
0x251d   :  { %7378 = vtanh.f32 %v8984_v23 }
0x251e   :  { %7380 = vtanh.f32 %v7178_v0 }
0x2526   :  { %v7377_v47 = vpop.eup %7376 }
0x2527   :  { %v7379_v17 = vpop.eup %7378  ;;  %4341 = vrot.lane.b32.xlu0 %v7377_v47, %s7867_s3 }
0x2528   :  { %4343 = vrot.lane.b32.xlu1 %v7379_v17, %s7867_s3  ;;  %v7381_v54 = vpop.eup %7380 }
0x2529   :  { %v3577_v61 = vmul.f32 %v7381_v54, %v8286_v30 }
0x252b   :  { %v3578_v37 = vadd.f32 %v3577_v61, %v8289_v32 }
0x252c   :  { %4040 = vrot.lane.b32.xlu1 %v4037_v21, %s7867_s3 }
0x2599   :  { %v4342_v33 = vpop.permute.xlu0 %4341 }
0x259a   :  { %v4344_v15 = vpop.permute.xlu1 %4343  ;;  %v4347_v55 = vmul.f32 %v4342_v33, %v4307_v10 }
0x259b   :  { %v4348_v59 = vmul.f32 %v4344_v15, %v4308_v52 }
0x259c   :  { %v4351_v29 = vrot.slane %v4347_v55, 6 }
0x259d   :  { %v4352_v19 = vrot.slane %v4348_v59, 5 }
0x259e   :  { %v4041_v62 = vpop.permute.xlu1 %4040 }
0x259f   :  { %v4353_v40 = vsel %vm567_vm6, %v4352_v19, %v4351_v29  ;;  %v4043_v41 = vmul.f32 %v4041_v62, %v4037_v21 }
0x25a0   :  { %4354 = vrot.lane.b32.xlu0 %v4353_v40, %s7868_s10 }
0x25a4   :  { %3581 = vrot.lane.b32.xlu0 %v3578_v37, %s7867_s3 }
0x25a8   :  { %4045 = vrot.lane.b32.xlu0 %v4043_v41, %s7868_s10 }
0x2612   :  { %v9005_v63 = vpop.permute.xlu0 %4354 }
0x2613   :  { %6649 = vmatmul.mubr.msk.f32.vlgmr.msra.gmra.mrb[24].mxu0 %vm438_vm7, %v9005_v63 }
0x2614   :  { %7053 = vmatpush3.bf16.msra.mxu0 %v8318_v53  ;;  %6659 = vmatprep.mubr.msk.f32.mxu0 %vm7864_vm0, %v7865_v2 }
0x2615   :  { %7054 = vmatprep.subr.bf16.mxu0 %v7863_v1 }
0x2616   :  { %v3582_v52 = vpop.permute.xlu0 %3581 }
0x2617   :  { %v3584_v39 = vmul.f32 %v3582_v52, %v3578_v37 }
0x2618   :  { %7056 = vmatpush3.bf16.msra.mxu0 %v8325_v57 }
0x2619   :  { %7069 = vmatprep.subr.bf16.mxu0 %v7863_v1 }
0x261a   :  { %v4046_v13 = vpop.permute.xlu0 %4045 }
0x261b   :  { %6660 = vmatmul.mubr.msk.f32.vlgmr.msra.gmra.mrb[24].mxu0 %vm438_vm7, %v8944_v26  ;;  %v4038_v26 = vmul.f32 %v4037_v21, %v8908_v5  ;;  %v3579_v5 = vmul.f32 %v3578_v37, %v8918_v4 }
0x261c   :  { %7071 = vmatpush3.bf16.msra.mxu0 %v8440_v48  ;;  %6692 = vmatprep.mubr.msk.f32.mxu0 %vm7864_vm0, %v7865_v2 }
0x261d   :  { %7072 = vmatprep.subr.bf16.mxu0 %v7863_v1  ;;  %v9025_v60 = vadd.f32 %v4046_v13, %v4038_v26 }
0x2620   :  { %7074 = vmatpush3.bf16.msra.mxu0 %v8446_v51 }
0x2621   :  { %7075 = vmatprep.subr.bf16.mxu0 %v7863_v1 }
0x26ee   :  { %v4494_v7 = vpop.f32.mrb[24].mxu0 }
0x26ef   :  { %v7182_v46 = vadd.f32 %v8787_v58, %v4494_v7  ;;  %v6661_v10 = vpop.f32.mrb[25].mxu0 }
0x26f1   :  { %7382 = vtanh.f32 %v7182_v46 }
0x26f2   :  { %7384 = vtanh.f32 %v9025_v60 }
0x26fb   :  { %v7383_v25 = vpop.eup %7382 }
0x26fc   :  { %v4500_v42 = vmul.f32 %v7383_v25, %v8286_v30  ;;  %v7385_v34 = vpop.eup %7384 }
0x26fe   :  { %v4501_v27 = vadd.f32 %v4500_v42, %v8289_v32 }
0x2700   :  { %4504 = vrot.lane.b32.xlu1 %v4501_v27, %s7867_s3  ;;  %v4502_v17 = vmul.f32 %v4501_v27, %v8924_v22 }
0x2704   :  { %3586 = vrot.lane.b32.xlu1 %v3584_v39, %s7868_s10  ;;  %v4942_v39 = vrot.slane %v8984_v23, 7 }
0x2708   :  { %4051 = vrot.lane.b32.xlu1 %v7385_v34, %s7867_s3 }
0x2772   :  { %v4505_v45 = vpop.permute.xlu1 %4504 }
0x2773   :  { %v4507_v8 = vmul.f32 %v4505_v45, %v4501_v27 }
0x2775   :  { %4509 = vrot.lane.b32.xlu0 %v4507_v8, %s7868_s10 }
0x2776   :  { %v3587_v36 = vpop.permute.xlu1 %3586 }
0x2777   :  { %v9035_v12 = vadd.f32 %v3587_v36, %v3579_v5 }
0x2779   :  { %7386 = vtanh.f32 %v9035_v12 }
0x277a   :  { %v4052_v47 = vpop.permute.xlu1 %4051 }
0x277b   :  { %v4054_v50 = vmul.f32 %v4052_v47, %v4037_v21 }
0x2783   :  { %v7387_v44 = vpop.eup %7386 }
0x2784   :  { %3592 = vrot.lane.b32.xlu0 %v7387_v44, %s7867_s3 }
0x2788   :  { %4056 = vrot.lane.b32.xlu0 %v4054_v50, %s7868_s10 }
0x27e7   :  { %v4510_v0 = vpop.permute.xlu0 %4509 }
0x27e8   :  { %v9041_v33 = vadd.f32 %v4510_v0, %v4502_v17 }
0x27ea   :  { %7388 = vtanh.f32 %v9041_v33 }
0x27f4   :  { %v7389_v4 = vpop.eup %7388 }
0x27f5   :  { %4515 = vrot.lane.b32.xlu1 %v7389_v4, %s7867_s3 }
0x27f6   :  { %v3593_v15 = vpop.permute.xlu0 %3592 }
0x27f7   :  { %v3595_v55 = vmul.f32 %v3593_v15, %v3578_v37 }
0x27f9   :  { %4131 = vrot.lane.b32.xlu1 %v3595_v55, %s7868_s10 }
0x27fa   :  { %v4057_v54 = vpop.permute.xlu0 %4056 }
0x27fb   :  { %6616 = vmatmul.mubr.msk.f32.vlgmr.msra.gmra.mrb[28].mxu1 %vm438_vm7, %v4057_v54 }
0x27fc   :  { %7035 = vmatpush3.bf16.msra.mxu1 %v8457_v3  ;;  %6626 = vmatprep.mubr.msk.f32.mxu1 %vm7864_vm0, %v7865_v2 }
0x27fd   :  { %7036 = vmatprep.subr.bf16.mxu1 %v7863_v1 }
0x2800   :  { %7038 = vmatpush3.bf16.msra.mxu1 %v8461_v9 }
0x2801   :  { %7057 = vmatprep.subr.bf16.mxu1 %v7863_v1 }
0x2867   :  { %v4516_v22 = vpop.permute.xlu1 %4515 }
0x2868   :  { %v4518_v21 = vmul.f32 %v4516_v22, %v4501_v27  ;;  %v4941_v27 = vrot.slane %v8982_v6, 7 }
0x286a   :  { %4520 = vrot.lane.b32.xlu0 %v4518_v21, %s7868_s10 }
0x286b   :  { %v4132_v59 = vpop.permute.xlu1 %4131 }
0x286c   :  { %6627 = vmatmul.mubr.msk.f32.vlgmr.msra.gmra.mrb[28].mxu1 %vm438_vm7, %v4132_v59 }
0x286d   :  { %7059 = vmatpush3.bf16.msra.mxu1 %v8352_v28  ;;  %6670 = vmatprep.mubr.msk.f32.mxu1 %vm7864_vm0, %v7865_v2 }
0x286e   :  { %7060 = vmatprep.subr.bf16.mxu1 %v7863_v1 }
0x2871   :  { %7062 = vmatpush3.bf16.msra.mxu1 %v8355_v31 }
0x2872   :  { %7063 = vmatprep.subr.bf16.mxu1 %v7863_v1 }
0x28dc   :  { %v9061_v29 = vpop.permute.xlu0 %4520 }
0x28dd   :  { %6671 = vmatmul.mubr.msk.f32.vlgmr.msra.gmra.mrb[30].mxu1 %vm438_vm7, %v9061_v29 }
0x28de   :  { %7065 = vmatpush3.bf16.msra.mxu1 %v8362_v38  ;;  %6681 = vmatprep.mubr.msk.f32.mxu1 %vm7864_vm0, %v7865_v2 }
0x28df   :  { %7066 = vmatprep.subr.bf16.mxu1 %v7863_v1 }
0x28e2   :  { %7068 = vmatpush3.bf16.msra.mxu1 %v8369_v43 }
0x28e3   :  { %7081 = vmatprep.subr.bf16.mxu1 %v7863_v1 }
0x28e5   :  { %6682 = vmatmul.mubr.msk.f32.vlgmr.msra.gmra.mrb[30].mxu1 %vm438_vm7, %v4057_v54 }
0x28e6   :  { %7083 = vmatpush3.bf16.msra.mxu1 %v8257_v11  ;;  %6714 = vmatprep.mubr.msk.f32.mxu1 %vm7864_vm0, %v7865_v2 }
0x28e7   :  { %7084 = vmatprep.subr.bf16.mxu1 %v7863_v1 }
0x28ea   :  { %7086 = vmatpush3.bf16.msra.mxu1 %v8269_v14 }
0x28eb   :  { %7087 = vmatprep.subr.bf16.mxu1 %v7863_v1 }
0x28ed   :  { %6715 = vmatmul.mubr.msk.f32.vlgmr.msra.gmra.mrb[32].mxu1 %vm438_vm7, %v9005_v63 }
0x28ee   :  { %7089 = vmatpush3.bf16.msra.mxu1 %v8310_v49  ;;  %6725 = vmatprep.mubr.msk.f32.mxu1 %vm7864_vm0, %v7865_v2 }
0x28ef   :  { %7090 = vmatprep.subr.bf16.mxu1 %v7863_v1 }
0x28f2   :  { %7092 = vmatpush3.bf16.msra.mxu1 %v8321_v56 }
0x28f3   :  { %7093 = vmatprep.subr.bf16.mxu1 %v7863_v1 }
0x293f   :  { %v4201_v11 = vpop.f32.mrb[28].mxu1 }
0x2940   :  { %v6628_v19 = vpop.f32.mrb[29].mxu1  ;;  %v7181_v23 = vadd.f32 %v8996_v35, %v4201_v11 }
0x29b8   :  { %v4660_v61 = vpop.f32.mrb[30].mxu1 }
0x29b9   :  { %v6683_v14 = vpop.f32.mrb[31].mxu1  ;;  %v7183_v42 = vadd.f32 %v8865_v16, %v4660_v61 }
0x29c0   :  { %v4922_v40 = vpop.f32.mrb[32].mxu1 }
0x29c1   :  { %v4927_v37 = vrot.slane %v4922_v40, 1  ;;  %v4928_v62 = vrot.slane %v4922_v40, 2  ;;  %v6716_v41 = vpop.f32.mrb[33].mxu1 }
0x29c3   :  { %v4931_v63 = vadd.f32 %v4927_v37, %v8279_v18  ;;  %v4932_v49 = vadd.f32 %v4928_v62, %v8281_v20 }
0x29c5   :  { %7390 = vtanh.f32 %v4931_v63 }
0x29c6   :  { %7392 = vtanh.f32 %v4932_v49 }
0x29c7   :  { %7394 = vtanh.f32 %v7183_v42 }
0x29cf   :  { %v7391_v7 = vpop.eup %7390 }
0x29d0   :  { %v7393_v46 = vpop.eup %7392  ;;  %v4935_v56 = vmul.f32 %v7391_v7, %v8286_v30 }
0x29d1   :  { %v4936_v10 = vmul.f32 %v7393_v46, %v8286_v30  ;;  %v7395_v47 = vpop.eup %7394 }
0x29d2   :  { %v4937_v52 = vadd.f32 %v4935_v56, %v8289_v32  ;;  %v4666_v17 = vmul.f32 %v7395_v47, %v8286_v30 }
0x29d3   :  { %v4938_v13 = vadd.f32 %v4936_v10, %v8289_v32 }
0x29d4   :  { %4949 = vrot.lane.b32.xlu1 %v4937_v52, %s7867_s3  ;;  %v4945_v34 = vmul.f32 %v4941_v27, %v4937_v52  ;;  %v4667_v6 = vadd.f32 %v4666_v17, %v8289_v32 }
0x29d5   :  { %4951 = vrot.lane.b32.xlu0 %v4938_v13, %s7867_s3  ;;  %v4946_v45 = vmul.f32 %v4942_v39, %v4938_v13 }
0x2a46   :  { %v4950_v26 = vpop.permute.xlu1 %4949 }
0x2a47   :  { %v4952_v18 = vpop.permute.xlu0 %4951  ;;  %v4955_v25 = vmul.f32 %v4950_v26, %v4937_v52 }
0x2a48   :  { %v4956_v20 = vmul.f32 %v4952_v18, %v4938_v13 }
0x2a49   :  { %4959 = vrot.lane.b32.xlu1 %v4955_v25, %s7868_s10 }
0x2a4a   :  { %4961 = vrot.lane.b32.xlu0 %v4956_v20, %s7868_s10 }
0x2abb   :  { %v4960_v8 = vpop.permute.xlu1 %4959 }
0x2abc   :  { %v4962_v5 = vpop.permute.xlu0 %4961  ;;  %v4965_v36 = vadd.f32 %v4960_v8, %v4945_v34 }
0x2abd   :  { %v4966_v44 = vadd.f32 %v4962_v5, %v4946_v45 }
0x2abe   :  { %7396 = vtanh.f32 %v4965_v36 }
0x2abf   :  { %7398 = vtanh.f32 %v4966_v44 }
0x2ac0   :  { %7400 = vtanh.f32 %v7181_v23 }
0x2ac8   :  { %v7397_v50 = vpop.eup %7396 }
0x2ac9   :  { %v7399_v0 = vpop.eup %7398  ;;  %4971 = vrot.lane.b32.xlu1 %v7397_v50, %s7867_s3 }
0x2aca   :  { %4973 = vrot.lane.b32.xlu0 %v7399_v0, %s7867_s3  ;;  %v7401_v54 = vpop.eup %7400 }
0x2acb   :  { %v4207_v19 = vmul.f32 %v7401_v54, %v8286_v30 }
0x2acd   :  { %v4208_v14 = vadd.f32 %v4207_v19, %v8289_v32 }
0x2ace   :  { %4670 = vrot.lane.b32.xlu0 %v4667_v6, %s7867_s3 }
0x2b3b   :  { %v4972_v4 = vpop.permute.xlu1 %4971 }
0x2b3c   :  { %v4974_v15 = vpop.permute.xlu0 %4973  ;;  %v4977_v55 = vmul.f32 %v4972_v4, %v4937_v52 }
0x2b3d   :  { %v4978_v22 = vmul.f32 %v4974_v15, %v4938_v13 }
0x2b3e   :  { %v4981_v21 = vrot.slane %v4977_v55, 7 }
0x2b3f   :  { %v4982_v59 = vrot.slane %v4978_v22, 6 }
0x2b40   :  { %v4671_v40 = vpop.permute.xlu0 %4670 }
0x2b41   :  { %v4983_v61 = vsel %vm567_vm6, %v4982_v59, %v4981_v21  ;;  %v4673_v11 = vmul.f32 %v4671_v40, %v4667_v6 }
0x2b42   :  { %4984 = vrot.lane.b32.xlu1 %v4983_v61, %s7868_s10 }
0x2b46   :  { %4211 = vrot.lane.b32.xlu1 %v4208_v14, %s7867_s3 }
0x2b4a   :  { %4675 = vrot.lane.b32.xlu1 %v4673_v11, %s7868_s10 }
0x2bb4   :  { %v4985_v37 = vpop.permute.xlu1 %4984 }
0x2bb5   :  { %6726 = vmatmul.mubr.msk.f32.vlgmr.msra.gmra.mrb[34].mxu1 %vm438_vm7, %v4985_v37 }
0x2bb6   :  { %7095 = vmatpush3.bf16.msra.mxu1 %v8318_v53  ;;  %6736 = vmatprep.mubr.msk.f32.mxu1 %vm7864_vm0, %v7865_v2 }
0x2bb7   :  { %7096 = vmatprep.subr.bf16.mxu1 %v7863_v1 }
0x2bb8   :  { %v4212_v41 = vpop.permute.xlu1 %4211 }
0x2bb9   :  { %v4214_v46 = vmul.f32 %v4212_v41, %v4208_v14 }
0x2bba   :  { %7098 = vmatpush3.bf16.msra.mxu1 %v8325_v57 }
0x2bbb   :  { %7111 = vmatprep.subr.bf16.mxu1 %v7863_v1 }
0x2bbc   :  { %v4676_v63 = vpop.permute.xlu1 %4675 }
0x2bbd   :  { %6737 = vmatmul.mubr.msk.f32.vlgmr.msra.gmra.mrb[34].mxu1 %vm438_vm7, %v9061_v29  ;;  %v4668_v29 = vmul.f32 %v4667_v6, %v9025_v60  ;;  %v4209_v60 = vmul.f32 %v4208_v14, %v9035_v12 }
0x2bbe   :  { %7113 = vmatpush3.bf16.msra.mxu1 %v8440_v48  ;;  %6769 = vmatprep.mubr.msk.f32.mxu1 %vm7864_vm0, %v7865_v2 }
0x2bbf   :  { %7114 = vmatprep.subr.bf16.mxu1 %v7863_v1  ;;  %v9128_v49 = vadd.f32 %v4676_v63, %v4668_v29 }
0x2bc2   :  { %7116 = vmatpush3.bf16.msra.mxu1 %v8446_v51 }
0x2bc3   :  { %7117 = vmatprep.subr.bf16.mxu1 %v7863_v1 }
0x2c90   :  { %v5124_v53 = vpop.f32.mrb[34].mxu1 }
0x2c91   :  { %v7185_v62 = vadd.f32 %v8787_v58, %v5124_v53  ;;  %v6738_v57 = vpop.f32.mrb[35].mxu1 }
0x2c93   :  { %7402 = vtanh.f32 %v7185_v62 }
0x2c94   :  { %7404 = vtanh.f32 %v9128_v49 }
0x2c9d   :  { %v7403_v48 = vpop.eup %7402 }
0x2c9e   :  { %v5130_v7 = vmul.f32 %v7403_v48, %v8286_v30  ;;  %v7405_v58 = vpop.eup %7404 }
0x2ca0   :  { %v5131_v51 = vadd.f32 %v5130_v7, %v8289_v32 }
0x2ca2   :  { %5134 = vrot.lane.b32.xlu0 %v5131_v51, %s7867_s3  ;;  %v5132_v20 = vmul.f32 %v5131_v51, %v9041_v33 }
0x2ca6   :  { %4216 = vrot.lane.b32.xlu0 %v4214_v46, %s7868_s10 }
0x2caa   :  { %4681 = vrot.lane.b32.xlu0 %v7405_v58, %s7867_s3 }
0x2d14   :  { %v5135_v56 = vpop.permute.xlu0 %5134 }
0x2d15   :  { %v5137_v10 = vmul.f32 %v5135_v56, %v5131_v51  ;;  %v5487_v56 = vld [vmem:[#allocation17 + $0x8] sm:$0xff] }
0x2d17   :  { %5139 = vrot.lane.b32.xlu1 %v5137_v10, %s7868_s10  ;;  %v5489_v10 = vld [vmem:[#allocation17 + $0x18] sm:$0xff] }
0x2d18   :  { %v4217_v52 = vpop.permute.xlu0 %4216 }
0x2d19   :  { %v4219_v13 = vadd.f32 %v4217_v52, %v4209_v60  ;;  %v7123_v60 = vpack.c.bf16 %v5489_v10, %v5487_v56  ;;  %v5488_v52 = vld [vmem:[#allocation17 + $0x10] sm:$0xff]  ;;  %v5497_v10 = vshrl.u32 %v302_v24, 7 }
0x2d1b   :  { %7406 = vtanh.f32 %v4219_v13 }
0x2d1c   :  { %v4682_v18 = vpop.permute.xlu0 %4681 }
0x2d1d   :  { %v4684_v25 = vmul.f32 %v4682_v18, %v4667_v6 }
0x2d25   :  { %v7407_v26 = vpop.eup %7406 }
0x2d26   :  { %4222 = vrot.lane.b32.xlu1 %v7407_v26, %s7867_s3  ;;  %v5493_v26 = vld [vmem:[#allocation17 + $0x38] sm:$0xff] }
0x2d2a   :  { %4686 = vrot.lane.b32.xlu1 %v4684_v25, %s7868_s10  ;;  %v5492_v25 = vld [vmem:[#allocation17 + $0x30] sm:$0xff] }
0x2d89   :  { %v5140_v42 = vpop.permute.xlu1 %5139 }
0x2d8a   :  { %v5142_v27 = vadd.f32 %v5140_v42, %v5132_v20 }
0x2d8c   :  { %7408 = vtanh.f32 %v5142_v27  ;;  %v5628_v27 = vld [vmem:[#allocation23 + $0x80] sm:$0xff] }
0x2d96   :  { %v7409_v39 = vpop.eup %7408 }
0x2d97   :  { %5145 = vrot.lane.b32.xlu0 %v7409_v39, %s7867_s3  ;;  %v5629_v39 = vld [vmem:[#allocation23 + $0x88] sm:$0xff] }
0x2d98   :  { %v4223_v34 = vpop.permute.xlu1 %4222 }
0x2d99   :  { %v4225_v12 = vmul.f32 %v4223_v34, %v4208_v14  ;;  %v7131_v34 = vpack.c.bf16 %v5629_v39, %v5628_v27 }
0x2d9b   :  { %4761 = vrot.lane.b32.xlu0 %v4225_v12, %s7868_s10 }
0x2d9c   :  { %v4687_v45 = vpop.permute.xlu1 %4686 }
0x2d9d   :  { %6693 = vmatmul.mubr.msk.f32.vlgmr.msra.gmra.mrb[26].mxu0 %vm438_vm7, %v4687_v45 }
0x2d9e   :  { %7077 = vmatpush3.bf16.msra.mxu0 %v8457_v3  ;;  %6703 = vmatprep.mubr.msk.f32.mxu0 %vm7864_vm0, %v7865_v2 }
0x2d9f   :  { %7078 = vmatprep.subr.bf16.mxu0 %v7863_v1 }
0x2da2   :  { %7080 = vmatpush3.bf16.msra.mxu0 %v8461_v9 }
0x2da3   :  { %7099 = vmatprep.subr.bf16.mxu0 %v7863_v1 }
0x2e09   :  { %v5146_v33 = vpop.permute.xlu0 %5145 }
0x2e0a   :  { %v5148_v8 = vmul.f32 %v5146_v33, %v5131_v51  ;;  %v5612_v33 = vld [vmem:[#allocation23] sm:$0xff] }
0x2e0c   :  { %5150 = vrot.lane.b32.xlu1 %v5148_v8, %s7868_s10  ;;  %v5613_v8 = vld [vmem:[#allocation23 + $0x8] sm:$0xff] }
0x2e0d   :  { %v4762_v5 = vpop.permute.xlu0 %4761 }
0x2e0e   :  { %6704 = vmatmul.mubr.msk.f32.vlgmr.msra.gmra.mrb[26].mxu0 %vm438_vm7, %v4762_v5  ;;  %v5630_v5 = vld [vmem:[#allocation23 + $0x90] sm:$0xff] }
0x2e0f   :  { %7101 = vmatpush3.bf16.msra.mxu0 %v8352_v28  ;;  %6747 = vmatprep.mubr.msk.f32.mxu0 %vm7864_vm0, %v7865_v2 }
0x2e10   :  { %7102 = vmatprep.subr.bf16.mxu0 %v7863_v1 }
0x2e13   :  { %7104 = vmatpush3.bf16.msra.mxu0 %v8355_v31 }
0x2e14   :  { %7105 = vmatprep.subr.bf16.mxu0 %v7863_v1 }
0x2e7e   :  { %v5151_v36 = vpop.permute.xlu1 %5150 }
0x2e7f   :  { %6748 = vmatmul.mubr.msk.f32.vlgmr.msra.gmra.mrb[28].mxu0 %vm438_vm7, %v5151_v36  ;;  %v5631_v36 = vld [vmem:[#allocation23 + $0x98] sm:$0xff] }
0x2e80   :  { %7107 = vmatpush3.bf16.msra.mxu0 %v8362_v38  ;;  %6758 = vmatprep.mubr.msk.f32.mxu0 %vm7864_vm0, %v7865_v2 }
0x2e81   :  { %7108 = vmatprep.subr.bf16.mxu0 %v7863_v1 }
0x2e84   :  { %7110 = vmatpush3.bf16.msra.mxu0 %v8369_v43 }
0x2e85   :  { %7124 = vmatprep.subr.bf16.mxu0 %v7123_v60  ;;  %v5494_v60 = vld [vmem:[#allocation19] sm:$0x3] }
0x2e87   :  { %6759 = vmatmul.mubr.msk.f32.vlgmr.msra.gmra.mrb[28].mxu0 %vm438_vm7, %v4687_v45 }
0x2e88   :  { %5575 = vmatprep.mubr.f32.mxu0 %v7865_v2 }
0x2ee1   :  { %v4831_v28 = vpop.f32.mrb[26].mxu0 }
0x2ee2   :  { %v7184_v31 = vadd.f32 %v8996_v35, %v4831_v28  ;;  %v6705_v44 = vpop.f32.mrb[27].mxu0  ;;  %v7133_v28 = vpack.c.bf16 %v5613_v8, %v5612_v33 }
0x2ee3   :  { %v5614_v44 = vld [vmem:[#allocation23 + $0x10] sm:$0xff] }
0x2ee4   :  { %7410 = vtanh.f32 %v7184_v31  ;;  %v7135_v31 = vpack.c.bf16 %v5631_v36, %v5630_v5 }
0x2eee   :  { %v7411_v47 = vpop.eup %7410 }
0x2eef   :  { %v4837_v50 = vmul.f32 %v7411_v47, %v8286_v30  ;;  %v5615_v47 = vld [vmem:[#allocation23 + $0x18] sm:$0xff] }
0x2ef1   :  { %v4838_v38 = vadd.f32 %v4837_v50, %v8289_v32 }
0x2ef3   :  { %4841 = vrot.lane.b32.xlu1 %v4838_v38, %s7867_s3  ;;  %v4839_v54 = vmul.f32 %v4838_v38, %v4219_v13  ;;  %v5491_v13 = vld [vmem:[#allocation17 + $0x28] sm:$0xff] }
0x2ef4   :  { %v7127_v18 = vpack.c.bf16 %v5493_v26, %v5491_v13  ;;  %v5582_v13 = vld [vmem:[#allocation20] sm:$0x3] }
0x2f5a   :  { %v5290_v17 = vpop.f32.mrb[28].mxu0 }
0x2f5b   :  { %v7186_v0 = vadd.f32 %v8865_v16, %v5290_v17  ;;  %v6760_v43 = vpop.f32.mrb[29].mxu0  ;;  %v5633_v17 = vld [vmem:[#allocation23 + $0xa8] sm:$0xff] }
0x2f5d   :  { %7412 = vtanh.f32 %v7186_v0  ;;  %v7137_v0 = vpack.c.bf16 %v5615_v47, %v5614_v44 }
0x2f65   :  { %v4842_v6 = vpop.permute.xlu1 %4841 }
0x2f66   :  { %v4844_v23 = vmul.f32 %v4842_v6, %v4838_v38  ;;  %v5616_v6 = vld [vmem:[#allocation23 + $0x20] sm:$0xff] }
0x2f67   :  { %v7413_v4 = vpop.eup %7412 }
0x2f68   :  { %4846 = vrot.lane.b32.xlu1 %v4844_v23, %s7868_s10  ;;  %v5296_v15 = vmul.f32 %v7413_v4, %v8286_v30  ;;  %v5617_v23 = vld [vmem:[#allocation23 + $0x28] sm:$0xff]  ;;  %v5634_v4 = vld [vmem:[#allocation23 + $0xb0] sm:$0xff] }
0x2f6a   :  { %v5297_v55 = vadd.f32 %v5296_v15, %v8289_v32  ;;  %v5635_v15 = vld [vmem:[#allocation23 + $0xb8] sm:$0xff] }
0x2f6c   :  { %5300 = vrot.lane.b32.xlu0 %v5297_v55, %s7867_s3  ;;  %v5298_v61 = vmul.f32 %v5297_v55, %v9128_v49 }
0x2fda   :  { %v4847_v22 = vpop.permute.xlu1 %4846 }
0x2fdb   :  { %v4849_v21 = vadd.f32 %v4847_v22, %v4839_v54  ;;  %v7143_v54 = vpack.c.bf16 %v5635_v15, %v5634_v4  ;;  %v5618_v22 = vld [vmem:[#allocation23 + $0x30] sm:$0xff] }
0x2fdd   :  { %7414 = vtanh.f32 %v4849_v21 }
0x2fde   :  { %v5301_v59 = vpop.permute.xlu0 %5300 }
0x2fdf   :  { %v5303_v19 = vmul.f32 %v5301_v59, %v5297_v55  ;;  %v5636_v59 = vld [vmem:[#allocation23 + $0xc0] sm:$0xff] }
0x2fe1   :  { %5305 = vrot.lane.b32.xlu0 %v5303_v19, %s7868_s10  ;;  %v5637_v19 = vld [vmem:[#allocation23 + $0xc8] sm:$0xff] }
0x2fe7   :  { %v7415_v16 = vpop.eup %7414 }
0x2fe8   :  { %4852 = vrot.lane.b32.xlu1 %v7415_v16, %s7867_s3 }
0x3053   :  { %v5306_v14 = vpop.permute.xlu0 %5305 }
0x3054   :  { %v5308_v40 = vadd.f32 %v5306_v14, %v5298_v61  ;;  %v7147_v61 = vpack.c.bf16 %v5637_v19, %v5636_v59  ;;  %v5620_v14 = vld [vmem:[#allocation23 + $0x40] sm:$0xff] }
0x3056   :  { %7416 = vtanh.f32 %v5308_v40  ;;  %v5621_v40 = vld [vmem:[#allocation23 + $0x48] sm:$0xff] }
0x305a   :  { %v4853_v11 = vpop.permute.xlu1 %4852 }
0x305b   :  { %v4855_v37 = vmul.f32 %v4853_v11, %v4838_v38  ;;  %v5632_v38 = vld [vmem:[#allocation23 + $0xa0] sm:$0xff]  ;;  %v5638_v11 = vld [vmem:[#allocation23 + $0xd0] sm:$0xff] }
0x305c   :  { %v7139_v43 = vpack.c.bf16 %v5633_v17, %v5632_v38  ;;  %v5835_v17 = vld [vmem:[#allocation28] ss:$0 sm:$0xff] }
0x305d   :  { %5391 = vrot.lane.b32.xlu1 %v4855_v37, %s7868_s10  ;;  %v5639_v37 = vld [vmem:[#allocation23 + $0xd8] sm:$0xff] }
0x3060   :  { %v7417_v53 = vpop.eup %7416 }
0x3061   :  { %5311 = vrot.lane.b32.xlu0 %v7417_v53, %s7867_s3  ;;  %v7149_v53 = vpack.c.bf16 %v5621_v40, %v5620_v14 }
0x30cf   :  { %v5392_v63 = vpop.permute.xlu1 %5391 }
0x30d3   :  { %v5312_v62 = vpop.permute.xlu0 %5311 }
0x30d4   :  { %v5314_v57 = vmul.f32 %v5312_v62, %v5297_v55  ;;  %v7141_v55 = vpack.c.bf16 %v5617_v23, %v5616_v6  ;;  %v7151_v62 = vpack.c.bf16 %v5639_v37, %v5638_v11  ;;  %v5836_v6 = vld [vmem:[#allocation29] ss:$0 sm:$0xff] }
0x30d6   :  { %5316 = vrot.lane.b32.xlu0 %v5314_v57, %s7868_s10  ;;  %v5622_v57 = vld [vmem:[#allocation23 + $0x50] sm:$0xff] }
0x3148   :  { %v5317_v41 = vpop.permute.xlu0 %5316 }
0x3149   :  { %6770 = vmatmul.mubr.msk.f32.vlgmr.msra.gmra.mrb[36].mxu1 %vm438_vm7, %v5317_v41  ;;  %v5623_v41 = vld [vmem:[#allocation23 + $0x58] sm:$0xff] }
0x314a   :  { %7119 = vmatpush3.bf16.msra.mxu1 %v8457_v3  ;;  %6780 = vmatprep.mubr.msk.f32.mxu1 %vm7864_vm0, %v7865_v2 }
0x314b   :  { %7120 = vmatprep.subr.bf16.mxu1 %v7863_v1 }
0x314e   :  { %7122 = vmatpush3.bf16.msra.mxu1 %v8461_v9 }
0x3151   :  { %6781 = vmatmul.mubr.msk.f32.vlgmr.msra.gmra.mrb[36].mxu1 %vm438_vm7, %v5392_v63  ;;  %v7153_v63 = vpack.c.bf16 %v5623_v41, %v5622_v57 }
0x3224   :  { %v5461_v29 = vpop.f32.mrb[36].mxu1 }
0x3225   :  { %v7187_v49 = vadd.f32 %v8996_v35, %v5461_v29  ;;  %v6782_v48 = vpop.f32.mrb[37].mxu1  ;;  %v5486_v35 = vld [vmem:[#allocation17] sm:$0xff] }
0x3226   :  { %v5640_v29 = vld [vmem:[#allocation23 + $0xe0] sm:$0xff] }
0x3227   :  { %7418 = vtanh.f32 %v7187_v49  ;;  %v5641_v49 = vld [vmem:[#allocation23 + $0xe8] sm:$0xff] }
0x3228   :  { %v7155_v48 = vpack.c.bf16 %v5641_v49, %v5640_v29 }
0x3231   :  { %v7419_v7 = vpop.eup %7418 }
0x3232   :  { %v5467_v51 = vmul.f32 %v7419_v7, %v8286_v30  ;;  %v7125_v30 = vpack.c.bf16 %v5488_v52, %v5486_v35  ;;  %v5624_v7 = vld [vmem:[#allocation23 + $0x60] sm:$0xff]  ;;  %v5498_v35 = vsub.s32 0, %v5497_v10  ;;  %v5502_v52 = vsub.s32 1, %v5497_v10 }
0x3234   :  { %v5468_v3 = vadd.f32 %v5467_v51, %v8289_v32  ;;  %v5490_v32 = vld [vmem:[#allocation17 + $0x20] sm:$0xff]  ;;  %7126 = vmatpush1.bf16.msra.mxu0 %v7125_v30  ;;  %v5625_v51 = vld [vmem:[#allocation23 + $0x68] sm:$0xff]  ;;  %v5499_v26 = vrot.slane %v5494_v60, %v5498_v35 }
0x3235   :  { %v7129_v20 = vpack.c.bf16 %v5492_v25, %v5490_v32  ;;  %7128 = vmatprep.subr.bf16.mxu0 %v7127_v18  ;;  %v5596_v30 = vld [vmem:[#allocation22] sm:$0x3]  ;;  %v5503_v18 = vrot.slane %v5494_v60, %v5502_v52  ;;  %v5587_v32 = vrot.slane %v5582_v13, %v5498_v35 }
0x3236   :  { %5471 = vrot.lane.b32.xlu0 %v5468_v3, %s7867_s3  ;;  %v5469_v1 = vmul.f32 %v5468_v3, %v4849_v21  ;;  %v5619_v21 = vld [vmem:[#allocation23 + $0x38] sm:$0xff]  ;;  %v5601_v27 = vrot.slane %v5596_v30, %v5498_v35 }
0x3237   :  { %v7145_v16 = vpack.c.bf16 %v5619_v21, %v5618_v22 }
0x3238   :  { %7130 = vmatpush1.bf16.msra.mxu0 %v7129_v20  ;;  %v5591_v20 = vrot.slane %v5582_v13, %v5502_v52 }
0x3239   :  { %7132 = vmatprep.subr.bf16.mxu0 %v7131_v34 }
0x32a8   :  { %v5472_v2 = vpop.permute.xlu0 %5471 }
0x32a9   :  { %v5474_v46 = vmul.f32 %v5472_v2, %v5468_v3  ;;  %v5642_v2 = vld [vmem:[#allocation23 + $0xf0] sm:$0xff] }
0x32ab   :  { %5476 = vrot.lane.b32.xlu1 %v5474_v46, %s7868_s10  ;;  %v5643_v46 = vld [vmem:[#allocation23 + $0xf8] sm:$0xff] }
0x331d   :  { %v5477_v9 = vpop.permute.xlu1 %5476 }
0x331e   :  { %v5479_v58 = vadd.f32 %v5477_v9, %v5469_v1  ;;  %v7159_v1 = vpack.c.bf16 %v5643_v46, %v5642_v2  ;;  %v5626_v9 = vld [vmem:[#allocation23 + $0x70] sm:$0xff] }
0x3320   :  { %7420 = vtanh.f32 %v5479_v58  ;;  %v5627_v58 = vld [vmem:[#allocation23 + $0x78] sm:$0xff] }
0x3321   :  { %v7161_v56 = vpack.c.bf16 %v5627_v58, %v5626_v9 }
0x332a   :  { %v7421_v42 = vpop.eup %7420 }
0x332b   :  { %5482 = vrot.lane.b32.xlu0 %v7421_v42, %s7867_s3 }
0x339d   :  { %v5483_v12 = vpop.permute.xlu0 %5482 }
0x339e   :  { %v5485_v45 = vmul.f32 %v5483_v12, %v5468_v3  ;;  %v7157_v3 = vpack.c.bf16 %v5625_v51, %v5624_v7  ;;  %v5605_v12 = vrot.slane %v5596_v30, %v5502_v52 }
0x33a0   :  { %5507 = vrot.lane.b32.xlu1 %v5485_v45, %s7868_s10 }
0x3412   :  { %v5508_v50 = vpop.permute.xlu1 %5507 }
0x3413   :  { %5832 = vmatmul.mubr.msk.f32.vlgmr.msra.gmra.mrb[30].mxu0 %vm438_vm7, %v5508_v50  ;;  %v5834_v50 = vld [vmem:[#allocation26] ss:$0 sm:$0xff] }
0x3414   :  { %7134 = vmatpush3.bf16.msra.mxu0 %v7133_v28 }
0x3415   :  { %7136 = vmatprep.subr.bf16.mxu0 %v7135_v31  ;;  %v5833_v31 = vld [vmem:[#allocation25] ss:$0 sm:$0xff] }
0x3418   :  { %7138 = vmatpush3.bf16.msra.mxu0 %v7137_v0 }
0x3419   :  { %7140 = vmatprep.subr.bf16.mxu0 %v7139_v43 }
0x341c   :  { %7142 = vmatpush3.bf16.msra.mxu0 %v7141_v55  ;;  %v5837_v55 = vld [vmem:[#allocation2] ss:$0 sm:$0xff] }
0x341d   :  { %7144 = vmatprep.subr.bf16.mxu0 %v7143_v54 }
0x3420   :  { %7146 = vmatpush3.bf16.msra.mxu0 %v7145_v16 }
0x3421   :  { %7148 = vmatprep.subr.bf16.mxu0 %v7147_v61 }
0x3424   :  { %7150 = vmatpush3.bf16.msra.mxu0 %v7149_v53 }
0x3425   :  { %7152 = vmatprep.subr.bf16.mxu0 %v7151_v62 }
0x3428   :  { %7154 = vmatpush3.bf16.msra.mxu0 %v7153_v63 }
0x3429   :  { %7156 = vmatprep.subr.bf16.mxu0 %v7155_v48 }
0x342c   :  { %7158 = vmatpush3.bf16.msra.mxu0 %v7157_v3 }
0x342d   :  { %7160 = vmatprep.subr.bf16.mxu0 %v7159_v1 }
0x3430   :  { %7162 = vmatpush3.bf16.msra.mxu0 %v7161_v56 }
0x34e6   :  { %v5577_v25 = vpop.f32.mrb[30].mxu0 }
0x34e7   :  { %v5578_v42 = vadd.f32 %v5577_v25, %v5499_v26  ;;  %v5579_v39 = vpop.f32.mrb[31].mxu0 }
0x34e8   :  { %v5580_v34 = vadd.f32 %v5579_v39, %v5503_v18 }
0x34e9   :  { %v5594_v45 = vmul.f32 %v5587_v32, %v5578_v42 }
0x34ea   :  { %v5595_v33 = vmul.f32 %v5591_v20, %v5580_v34 }
0x34eb   :  { %v5608_v8 = vadd.f32 %v5601_v27, %v5594_v45 }
0x34ec   :  { %v5609_v5 = vadd.f32 %v5605_v12, %v5595_v33 }
0x34ed   :  { %v5610_v36 = vmax.f32 %v5608_v8, 0.0 }
0x34ee   :  { %v5611_v24 = vmax.f32 %v5609_v5, 0.0 }
0x34f0   :  { %5715 = vmatprep.mubr.f32.mxu0 %v5611_v24 }
0x34f1   :  { %5716 = vmatmul.mubr.f32.vlgmr.msra.gmra.mrb[32].mxu0 %v5610_v36 }
0x35c4   :  { %v6155_v28 = vpop.f32.mrb[32].mxu0 }
0x35c5   :  { %v6156_v44 = vpop.f32.mrb[33].mxu0 }
0x35c6   :  { %v6157_v47 = vadd.f32 %v6156_v44, %v6155_v28 }
0x35c8   :  { %v5718_v38 = vadd.f32 %v6157_v47, %v5833_v31 }
0x35ca   :  { %v5728_v0 = vmul.f32 %v5834_v50, %v5718_v38 }
0x35cc   :  { %v5736_v43 = vadd.f32 %v5835_v17, %v5728_v0 }
0x35ce   :  { %v5737_v23 = vmax.f32 %v5736_v43, 0.0 }
0x35d0   :  { %v5745_v4 = vmul.f32 %v5836_v6, %v5737_v23 }
0x35d2   :  { %v5746_v15 = vsel %vm359_vm2, %v5745_v4, 0.0 }
0x35d3   :  { %5747 = vadd.xlane.f32.xlu0 %v5746_v15 }
0x3660   :  { %v5748_v54 = vpop.xlane.xlu0 %5747 }
0x3661   :  { %v5756_v22 = vadd.f32 %v5837_v55, %v5748_v54 }
0x3663   :  { %5758 = vst.msk [vmem:[%s9253_s21] sm:$0x3] %vm5757_vm8, %v5756_v22 }
0x3664   :  { %5763 = vsyncpa [#allocation4], 1 }
0x3665   :  { %5764 = vsyncpa [#allocation6], 1 }
0x3666   :  { %5765 = vsyncpa [#allocation9], 1 }
0x3667   :  { %5766 = vsyncpa [#allocation12], 1 }
0x3668   :  { %5767 = vsyncpa [#allocation15], 1 }
0x3669   :  { %5768 = vsyncpa [#allocation18], 1 }
0x366a   :  { %5769 = vsyncpa [#allocation21], 1 }
0x366b   :  { %5770 = vsyncpa [#allocation24], 1 }
0x366c   :  { %5771 = vsyncpa [#allocation27], 1 }
0x366d   :  { %5772 = vsyncpa [#allocation30], 1 }

</bundles_post_ra>
